<compile_context>
chip_gen: v5e
topology: v5e:2x2
jax: 0.10.0
libtpu: 0.0.40
codegen_flags: <defaults>
</compile_context>

<pallas_src>
import jax
import jax.numpy as jnp
from jax.experimental import pallas as pl
from jax.experimental.pallas import tpu as pltpu

BN_EPS = 1e-5
LEAKY_SLOPE = 0.2
PAD = 128            # lane-dense padded width for the three tiny outputs
NEG = -1e30          # softmax padding logit: exp(NEG - max) == 0 exactly

_VMEM = pl.BlockSpec(memory_space=pltpu.MemorySpace.VMEM)

# Operand order (after x) for the fused kernel.
_ARG_ORDER = (
    "w_pi", "b_pi", "sc_pi", "sh_pi",          # price/indicator + post-act BN
    "w_v", "b_v",                              # attention value projection
    "w_l1", "b_l1", "w_l2", "b_l2",            # layer1/layer2 (BN folded)
    "w_rg", "b_rg",                            # regime_layer (BN folded)
    "w_l3", "b_l3",                            # layer3 -> flat (B, 9)
    "w_a1", "b_a1", "w_a2", "b_a2",            # model_attention
    "expand", "reduce3",                       # constant selector matrices
    "w_r1", "b_r1", "w_r2", "b_r2",            # regime_classifier
    "w_c1x", "w_c1f", "b_c1", "w_c2", "b_c2", "w_c3", "b_c3",   # confidence
)


# ----------------------------------------------------------------------------
# The single fused kernel
# ----------------------------------------------------------------------------
def _ensemble_kernel(
        x_ref,
        w_pi_ref, b_pi_ref, sc_pi_ref, sh_pi_ref,
        w_v_ref, b_v_ref,
        w_l1_ref, b_l1_ref, w_l2_ref, b_l2_ref,
        w_rg_ref, b_rg_ref,
        w_l3_ref, b_l3_ref,
        w_a1_ref, b_a1_ref, w_a2_ref, b_a2_ref,
        expand_ref, reduce3_ref,
        w_r1_ref, b_r1_ref, w_r2_ref, b_r2_ref,
        w_c1x_ref, w_c1f_ref, b_c1_ref, w_c2_ref, b_c2_ref, w_c3_ref, b_c3_ref,
        pred_ref, regime_ref, conf_ref):
    f32 = jnp.float32
    x = x_ref[...]

    def dense(t, w_ref, b_ref):
        return jnp.dot(t, w_ref[...], preferred_element_type=f32) + b_ref[...]

    def leaky(t):
        return jnp.where(t >= 0.0, t, LEAKY_SLOPE * t)

    def relu(t):
        return jnp.maximum(t, 0.0)

    def softmax_lanes(t):                      # full-width (128-lane) softmax
        m = jnp.max(t, axis=-1, keepdims=True)
        e = jnp.exp(t - m)
        return e / jnp.sum(e, axis=-1, keepdims=True)

    # --- three BinaryOptionsModels fused as one block-diagonal chain --------
    # Sequential(Linear, LeakyReLU(0.2), BatchNorm1d, Dropout) for both the
    # price and indicator branches of all three models, in one matmul.
    combined = leaky(dense(x, w_pi_ref, b_pi_ref)) * sc_pi_ref[...] + sh_pi_ref[...]
    # SelfAttention over a length-1 sequence: softmax([score]) == 1.0 exactly,
    # so context == value projection (q/k matmuls are mathematically dead).
    attended = dense(combined, w_v_ref, b_v_ref)
    h = leaky(dense(attended, w_l1_ref, b_l1_ref))     # layer1 + bn1 (folded)
    h = leaky(dense(h, w_l2_ref, b_l2_ref))            # layer2 + bn2 (folded)
    h = leaky(dense(h, w_rg_ref, b_rg_ref))            # regime_layer + bn (folded)
    flat = dense(h, w_l3_ref, b_l3_ref)                # (B, 9) == flat_outputs

    # --- model attention + weighted prediction ------------------------------
    ha = relu(dense(flat, w_a1_ref, b_a1_ref))                     # (B, 32)
    mw = softmax_lanes(dense(ha, w_a2_ref, b_a2_ref))              # (B, 128), lanes 0..2 real
    w_exp = jnp.dot(mw, expand_ref[...], preferred_element_type=f32)   # (B, 9): w[b, m] -> lane 3m+c
    pred_ref[...] = jnp.dot(flat * w_exp, reduce3_ref[...],
                            preferred_element_type=f32)            # (B, 128), lanes 0..2 real

    # --- regime classifier ---------------------------------------------------
    hr = relu(dense(x, w_r1_ref, b_r1_ref))
    regime_ref[...] = softmax_lanes(dense(hr, w_r2_ref, b_r2_ref))  # lanes 0..2 real

    # --- confidence network --------------------------------------------------
    # conf1 weight split into x-part and flat-part avoids an in-kernel concat.
    hc = relu(jnp.dot(x, w_c1x_ref[...], preferred_element_type=f32)
              + jnp.dot(flat, w_c1f_ref[...], preferred_element_type=f32)
              + b_c1_ref[...])
    hc = relu(dense(hc, w_c2_ref, b_c2_ref))
    logit_c = dense(hc, w_c3_ref, b_c3_ref)
    conf_ref[...] = 1.0 / (1.0 + jnp.exp(-logit_c))                 # sigmoid, lane 0 real


# ----------------------------------------------------------------------------
# Wrapper
# ----------------------------------------------------------------------------
def ensemble_forward(fused, x):
    """Returns (weighted_pred (B,3), regime (B,3), confidence (B,1))."""
    b = x.shape[0]
    args = (x,) + tuple(fused[k] for k in _ARG_ORDER)
    out_shape = tuple(jax.ShapeDtypeStruct((b, PAD), jnp.float32) for _ in range(3))
    pred_pad, regime_pad, conf_pad = pl.pallas_call(
        _ensemble_kernel,
        out_shape=out_shape,
        in_specs=[_VMEM] * len(args),
        out_specs=(_VMEM, _VMEM, _VMEM),
    )(*args)
    return pred_pad[:, :3], regime_pad[:, :3], conf_pad[:, :1]


# ----------------------------------------------------------------------------
# Parameter init (deterministic, shapes mirror the PyTorch __init__)
# ----------------------------------------------------------------------------
def init_linear(key, din, dout, scale=0.1):
    kw, kb = jax.random.split(key)
    return {"w": scale * jax.random.normal(kw, (din, dout), jnp.float32),
            "b": scale * jax.random.normal(kb, (1, dout), jnp.float32)}


def init_bn(dout):
    # PyTorch BatchNorm1d defaults (eval mode)
    return {"gamma": jnp.ones((1, dout), jnp.float32),
            "beta": jnp.zeros((1, dout), jnp.float32),
            "mean": jnp.zeros((1, dout), jnp.float32),
            "var": jnp.ones((1, dout), jnp.float32)}


def init_binary_options_model(key, input_size, hidden, output_size=3):
    mid = input_size // 2
    keys = jax.random.split(key, 9)
    p = {}
    p["price"] = {**init_linear(keys[0], mid, hidden // 2), **init_bn(hidden // 2)}
    p["indicator"] = {**init_linear(keys[1], input_size - mid, hidden // 2),
                      **init_bn(hidden // 2)}
    # attn_q / attn_k exist in the PyTorch module but never affect the output
    # (length-1 softmax == 1.0); initialized for parity, not used by the kernel.
    p["attn_q"] = init_linear(keys[2], hidden, hidden)
    p["attn_k"] = init_linear(keys[3], hidden, hidden)
    p["attn_v"] = init_linear(keys[4], hidden, hidden)
    p["layer1"] = {**init_linear(keys[5], hidden, hidden), **init_bn(hidden)}
    p["layer2"] = {**init_linear(keys[6], hidden, hidden // 2), **init_bn(hidden // 2)}
    p["regime"] = {**init_linear(keys[7], hidden // 2, hidden // 4), **init_bn(hidden // 4)}
    p["layer3"] = init_linear(keys[8], hidden // 4, output_size)
    return p


def init_ensemble(key, input_size):
    keys = jax.random.split(key, 10)
    return {
        "models": [init_binary_options_model(keys[0], input_size, 128),
                   init_binary_options_model(keys[1], input_size, 256),
                   init_binary_options_model(keys[2], input_size, 64)],
        "model_attn1": init_linear(keys[3], 3 * 3, 32),
        "model_attn2": init_linear(keys[4], 32, 3),
        "regime1": init_linear(keys[5], input_size, 64),
        "regime2": init_linear(keys[6], 64, 3),
        "conf1": init_linear(keys[7], input_size + 9, 64),
        "conf2": init_linear(keys[8], 64, 32),
        "conf3": init_linear(keys[9], 32, 1),
    }


# ----------------------------------------------------------------------------
# Host-side parameter fusion (BN folding, block-diag merging, output padding)
# ----------------------------------------------------------------------------
def _bn_scale_shift(p):
    s = p["gamma"] * jax.lax.rsqrt(p["var"] + BN_EPS)
    return s, p["beta"] - p["mean"] * s


def _fold_bn(p):
    """BatchNorm(x @ W + b)  ==  x @ (W * s) + (b * s + shift)."""
    s, sh = _bn_scale_shift(p)
    return p["w"] * s, p["b"] * s + sh


def _block_diag(mats):
    rows = sum(m.shape[0] for m in mats)
    cols = sum(m.shape[1] for m in mats)
    out = jnp.zeros((rows, cols), jnp.float32)
    r = c = 0
    for m in mats:
        out = out.at[r:r + m.shape[0], c:c + m.shape[1]].set(m)
        r += m.shape[0]
        c += m.shape[1]
    return out


def _pad_cols(w, b, width, pad_bias):
    wo = jnp.zeros((w.shape[0], width), jnp.float32).at[:, :w.shape[1]].set(w)
    bo = jnp.full((1, width), pad_bias, jnp.float32).at[:, :b.shape[1]].set(b)
    return wo, bo


def fuse_ensemble_params(params):
    models = params["models"]
    in_size = params["regime1"]["w"].shape[0]
    mid = in_size // 2

    w_pi, b_pi, sc_pi, sh_pi = [], [], [], []
    w_v, b_v = [], []
    w_l1, b_l1, w_l2, b_l2, w_rg, b_rg = [], [], [], [], [], []
    w_l3, b_l3 = [], []

    for mp in models:
        hidden = mp["attn_v"]["w"].shape[0]
        half = hidden // 2
        # price/indicator -> one (in, hidden) two-block matrix so a single
        # matmul produces the already-concatenated "combined" activation.
        wb = jnp.zeros((in_size, hidden), jnp.float32)
        wb = wb.at[:mid, :half].set(mp["price"]["w"])
        wb = wb.at[mid:, half:].set(mp["indicator"]["w"])
        w_pi.append(wb)
        b_pi.append(jnp.concatenate([mp["price"]["b"], mp["indicator"]["b"]], axis=1))
        sp, shp = _bn_scale_shift(mp["price"])
        si, shi = _bn_scale_shift(mp["indicator"])
        sc_pi.append(jnp.concatenate([sp, si], axis=1))
        sh_pi.append(jnp.concatenate([shp, shi], axis=1))

        w_v.append(mp["attn_v"]["w"]); b_v.append(mp["attn_v"]["b"])

        w, b = _fold_bn(mp["layer1"]); w_l1.append(w); b_l1.append(b)
        w, b = _fold_bn(mp["layer2"]); w_l2.append(w); b_l2.append(b)
        w, b = _fold_bn(mp["regime"]); w_rg.append(w); b_rg.append(b)

        w_l3.append(mp["layer3"]["w"]); b_l3.append(mp["layer3"]["b"])

    # padded softmax/sigmoid heads (lane-dense outputs, pad lanes -> exactly 0)
    w_a2, b_a2 = _pad_cols(params["model_attn2"]["w"], params["model_attn2"]["b"], PAD, NEG)
    w_r2, b_r2 = _pad_cols(params["regime2"]["w"], params["regime2"]["b"], PAD, NEG)
    w_c3, b_c3 = _pad_cols(params["conf3"]["w"], params["conf3"]["b"], PAD, 0.0)

    # constant selector matrices for the weighted model combination:
    #   expand[m, 3m+c] = 1  ->  w_exp[b, 3m+c] = model_weight[b, m]
    #   reduce3[3m+c, c] = 1 ->  pred[b, c] = sum_m flat[b, 3m+c] * w[b, m]
    m_idx = jnp.arange(PAD)[:, None]
    j_idx = jnp.arange(9)[None, :]
    expand = jnp.where(j_idx // 3 == m_idx, 1.0, 0.0).astype(jnp.float32)   # (128, 9)
    i_idx = jnp.arange(9)[:, None]
    c_idx = jnp.arange(PAD)[None, :]
    reduce3 = jnp.where(i_idx % 3 == c_idx, 1.0, 0.0).astype(jnp.float32)   # (9, 128)

    wc1 = params["conf1"]["w"]            # (in_size + 9, 64) -> split, no concat in-kernel

    return {
        "w_pi": jnp.concatenate(w_pi, axis=1),
        "b_pi": jnp.concatenate(b_pi, axis=1),
        "sc_pi": jnp.concatenate(sc_pi, axis=1),
        "sh_pi": jnp.concatenate(sh_pi, axis=1),
        "w_v": _block_diag(w_v), "b_v": jnp.concatenate(b_v, axis=1),
        "w_l1": _block_diag(w_l1), "b_l1": jnp.concatenate(b_l1, axis=1),
        "w_l2": _block_diag(w_l2), "b_l2": jnp.concatenate(b_l2, axis=1),
        "w_rg": _block_diag(w_rg), "b_rg": jnp.concatenate(b_rg, axis=1),
        "w_l3": _block_diag(w_l3), "b_l3": jnp.concatenate(b_l3, axis=1),
        "w_a1": params["model_attn1"]["w"], "b_a1": params["model_attn1"]["b"],
        "w_a2": w_a2, "b_a2": b_a2,
        "expand": expand, "reduce3": reduce3,
        "w_r1": params["regime1"]["w"], "b_r1": params["regime1"]["b"],
        "w_r2": w_r2, "b_r2": b_r2,
        "w_c1x": wc1[:in_size], "w_c1f": wc1[in_size:], "b_c1": params["conf1"]["b"],
        "w_c2": params["conf2"]["w"], "b_c2": params["conf2"]["b"],
        "w_c3": w_c3, "b_c3": b_c3,
    }


# ----------------------------------------------------------------------------
if __name__ == "__main__":
    key = jax.random.PRNGKey(0)
    pkey, xkey = jax.random.split(key)

    BATCH = 8
    INPUT_SIZE = 32

    params = init_ensemble(pkey, INPUT_SIZE)
    fused = fuse_ensemble_params(params)
    x = jax.random.normal(xkey, (BATCH, INPUT_SIZE), jnp.float32)

    fwd = jax.jit(ensemble_forward)
    weighted_pred, regime, confidence = fwd(fused, x)
    jax.block_until_ready((weighted_pred, regime, confidence))

    assert weighted_pred.shape == (BATCH, 3)
    assert regime.shape == (BATCH, 3)
    assert confidence.shape == (BATCH, 1)
    assert bool(jnp.all(jnp.isfinite(weighted_pred)))
    assert bool(jnp.all(jnp.abs(jnp.sum(regime, axis=1) - 1.0) < 1e-3))
    assert bool(jnp.all((confidence >= 0.0) & (confidence <= 1.0)))
    print("KERNEL_OK")
</pallas_src>

<mosaic_0001>
module attributes {stable_mosaic.version = 11 : i64} {
  func.func @_ensemble_kernel(%arg0: memref<8x32xf32, #tpu.memory_space<vmem>>, %arg1: memref<32x448xf32, #tpu.memory_space<vmem>>, %arg2: memref<1x448xf32, #tpu.memory_space<vmem>>, %arg3: memref<1x448xf32, #tpu.memory_space<vmem>>, %arg4: memref<1x448xf32, #tpu.memory_space<vmem>>, %arg5: memref<448x448xf32, #tpu.memory_space<vmem>>, %arg6: memref<1x448xf32, #tpu.memory_space<vmem>>, %arg7: memref<448x448xf32, #tpu.memory_space<vmem>>, %arg8: memref<1x448xf32, #tpu.memory_space<vmem>>, %arg9: memref<448x224xf32, #tpu.memory_space<vmem>>, %arg10: memref<1x224xf32, #tpu.memory_space<vmem>>, %arg11: memref<224x112xf32, #tpu.memory_space<vmem>>, %arg12: memref<1x112xf32, #tpu.memory_space<vmem>>, %arg13: memref<112x9xf32, #tpu.memory_space<vmem>>, %arg14: memref<1x9xf32, #tpu.memory_space<vmem>>, %arg15: memref<9x32xf32, #tpu.memory_space<vmem>>, %arg16: memref<1x32xf32, #tpu.memory_space<vmem>>, %arg17: memref<32x128xf32, #tpu.memory_space<vmem>>, %arg18: memref<1x128xf32, #tpu.memory_space<vmem>>, %arg19: memref<128x9xf32, #tpu.memory_space<vmem>>, %arg20: memref<9x128xf32, #tpu.memory_space<vmem>>, %arg21: memref<32x64xf32, #tpu.memory_space<vmem>>, %arg22: memref<1x64xf32, #tpu.memory_space<vmem>>, %arg23: memref<64x128xf32, #tpu.memory_space<vmem>>, %arg24: memref<1x128xf32, #tpu.memory_space<vmem>>, %arg25: memref<32x64xf32, #tpu.memory_space<vmem>>, %arg26: memref<9x64xf32, #tpu.memory_space<vmem>>, %arg27: memref<1x64xf32, #tpu.memory_space<vmem>>, %arg28: memref<64x32xf32, #tpu.memory_space<vmem>>, %arg29: memref<1x32xf32, #tpu.memory_space<vmem>>, %arg30: memref<32x128xf32, #tpu.memory_space<vmem>>, %arg31: memref<1x128xf32, #tpu.memory_space<vmem>>, %arg32: memref<8x128xf32, #tpu.memory_space<vmem>>, %arg33: memref<8x128xf32, #tpu.memory_space<vmem>>, %arg34: memref<8x128xf32, #tpu.memory_space<vmem>>) attributes {dimension_semantics = [], scalar_prefetch = 0 : i64, scratch_operands = 0 : i64, tpu.core_type = #tpu.core_type<tc>} {
    %c0 = arith.constant 0 : index
    %c0_0 = arith.constant 0 : index
    %0 = vector.load %arg0[%c0, %c0_0] : memref<8x32xf32, #tpu.memory_space<vmem>>, vector<8x32xf32>
    %c0_1 = arith.constant 0 : index
    %c0_2 = arith.constant 0 : index
    %1 = vector.load %arg1[%c0_1, %c0_2] : memref<32x448xf32, #tpu.memory_space<vmem>>, vector<32x448xf32>
    %cst = arith.constant dense<0.000000e+00> : vector<8x448xf32>
    %2 = tpu.matmul %0, %1, %cst {dimension_numbers = #tpu.dot_dimension_numbers<[1], [0], [0], [1], [0, 0, 1, 1], [], []>} : vector<8x32xf32>, vector<32x448xf32>, vector<8x448xf32> -> vector<8x448xf32>
    %c0_3 = arith.constant 0 : index
    %c0_4 = arith.constant 0 : index
    %3 = vector.load %arg2[%c0_3, %c0_4] : memref<1x448xf32, #tpu.memory_space<vmem>>, vector<1x448xf32>
    %4 = vector.broadcast %3 : vector<1x448xf32> to vector<8x448xf32>
    %5 = arith.addf %2, %4 : vector<8x448xf32>
    %cst_5 = arith.constant 0.000000e+00 : f32
    %6 = vector.broadcast %cst_5 : f32 to vector<8x448xf32>
    %7 = arith.cmpf oge, %5, %6 : vector<8x448xf32>
    %cst_6 = arith.constant 2.000000e-01 : f32
    %8 = vector.broadcast %cst_6 : f32 to vector<8x448xf32>
    %9 = arith.mulf %8, %5 : vector<8x448xf32>
    %10 = arith.select %7, %5, %9 : vector<8x448xi1>, vector<8x448xf32>
    %c0_7 = arith.constant 0 : index
    %c0_8 = arith.constant 0 : index
    %11 = vector.load %arg3[%c0_7, %c0_8] : memref<1x448xf32, #tpu.memory_space<vmem>>, vector<1x448xf32>
    %12 = vector.broadcast %11 : vector<1x448xf32> to vector<8x448xf32>
    %13 = arith.mulf %10, %12 : vector<8x448xf32>
    %c0_9 = arith.constant 0 : index
    %c0_10 = arith.constant 0 : index
    %14 = vector.load %arg4[%c0_9, %c0_10] : memref<1x448xf32, #tpu.memory_space<vmem>>, vector<1x448xf32>
    %15 = vector.broadcast %14 : vector<1x448xf32> to vector<8x448xf32>
    %16 = arith.addf %13, %15 : vector<8x448xf32>
    %c0_11 = arith.constant 0 : index
    %c0_12 = arith.constant 0 : index
    %17 = vector.load %arg5[%c0_11, %c0_12] : memref<448x448xf32, #tpu.memory_space<vmem>>, vector<448x448xf32>
    %cst_13 = arith.constant dense<0.000000e+00> : vector<8x448xf32>
    %18 = tpu.matmul %16, %17, %cst_13 {dimension_numbers = #tpu.dot_dimension_numbers<[1], [0], [0], [1], [0, 0, 1, 1], [], []>} : vector<8x448xf32>, vector<448x448xf32>, vector<8x448xf32> -> vector<8x448xf32>
    %c0_14 = arith.constant 0 : index
    %c0_15 = arith.constant 0 : index
    %19 = vector.load %arg6[%c0_14, %c0_15] : memref<1x448xf32, #tpu.memory_space<vmem>>, vector<1x448xf32>
    %20 = vector.broadcast %19 : vector<1x448xf32> to vector<8x448xf32>
    %21 = arith.addf %18, %20 : vector<8x448xf32>
    %c0_16 = arith.constant 0 : index
    %c0_17 = arith.constant 0 : index
    %22 = vector.load %arg7[%c0_16, %c0_17] : memref<448x448xf32, #tpu.memory_space<vmem>>, vector<448x448xf32>
    %cst_18 = arith.constant dense<0.000000e+00> : vector<8x448xf32>
    %23 = tpu.matmul %21, %22, %cst_18 {dimension_numbers = #tpu.dot_dimension_numbers<[1], [0], [0], [1], [0, 0, 1, 1], [], []>} : vector<8x448xf32>, vector<448x448xf32>, vector<8x448xf32> -> vector<8x448xf32>
    %c0_19 = arith.constant 0 : index
    %c0_20 = arith.constant 0 : index
    %24 = vector.load %arg8[%c0_19, %c0_20] : memref<1x448xf32, #tpu.memory_space<vmem>>, vector<1x448xf32>
    %25 = vector.broadcast %24 : vector<1x448xf32> to vector<8x448xf32>
    %26 = arith.addf %23, %25 : vector<8x448xf32>
    %cst_21 = arith.constant 0.000000e+00 : f32
    %27 = vector.broadcast %cst_21 : f32 to vector<8x448xf32>
    %28 = arith.cmpf oge, %26, %27 : vector<8x448xf32>
    %cst_22 = arith.constant 2.000000e-01 : f32
    %29 = vector.broadcast %cst_22 : f32 to vector<8x448xf32>
    %30 = arith.mulf %29, %26 : vector<8x448xf32>
    %31 = arith.select %28, %26, %30 : vector<8x448xi1>, vector<8x448xf32>
    %c0_23 = arith.constant 0 : index
    %c0_24 = arith.constant 0 : index
    %32 = vector.load %arg9[%c0_23, %c0_24] : memref<448x224xf32, #tpu.memory_space<vmem>>, vector<448x224xf32>
    %cst_25 = arith.constant dense<0.000000e+00> : vector<8x224xf32>
    %33 = tpu.matmul %31, %32, %cst_25 {dimension_numbers = #tpu.dot_dimension_numbers<[1], [0], [0], [1], [0, 0, 1, 1], [], []>} : vector<8x448xf32>, vector<448x224xf32>, vector<8x224xf32> -> vector<8x224xf32>
    %c0_26 = arith.constant 0 : index
    %c0_27 = arith.constant 0 : index
    %34 = vector.load %arg10[%c0_26, %c0_27] : memref<1x224xf32, #tpu.memory_space<vmem>>, vector<1x224xf32>
    %35 = vector.broadcast %34 : vector<1x224xf32> to vector<8x224xf32>
    %36 = arith.addf %33, %35 : vector<8x224xf32>
    %cst_28 = arith.constant 0.000000e+00 : f32
    %37 = vector.broadcast %cst_28 : f32 to vector<8x224xf32>
    %38 = arith.cmpf oge, %36, %37 : vector<8x224xf32>
    %cst_29 = arith.constant 2.000000e-01 : f32
    %39 = vector.broadcast %cst_29 : f32 to vector<8x224xf32>
    %40 = arith.mulf %39, %36 : vector<8x224xf32>
    %41 = arith.select %38, %36, %40 : vector<8x224xi1>, vector<8x224xf32>
    %c0_30 = arith.constant 0 : index
    %c0_31 = arith.constant 0 : index
    %42 = vector.load %arg11[%c0_30, %c0_31] : memref<224x112xf32, #tpu.memory_space<vmem>>, vector<224x112xf32>
    %cst_32 = arith.constant dense<0.000000e+00> : vector<8x112xf32>
    %43 = tpu.matmul %41, %42, %cst_32 {dimension_numbers = #tpu.dot_dimension_numbers<[1], [0], [0], [1], [0, 0, 1, 1], [], []>} : vector<8x224xf32>, vector<224x112xf32>, vector<8x112xf32> -> vector<8x112xf32>
    %c0_33 = arith.constant 0 : index
    %c0_34 = arith.constant 0 : index
    %44 = vector.load %arg12[%c0_33, %c0_34] : memref<1x112xf32, #tpu.memory_space<vmem>>, vector<1x112xf32>
    %45 = vector.broadcast %44 : vector<1x112xf32> to vector<8x112xf32>
    %46 = arith.addf %43, %45 : vector<8x112xf32>
    %cst_35 = arith.constant 0.000000e+00 : f32
    %47 = vector.broadcast %cst_35 : f32 to vector<8x112xf32>
    %48 = arith.cmpf oge, %46, %47 : vector<8x112xf32>
    %cst_36 = arith.constant 2.000000e-01 : f32
    %49 = vector.broadcast %cst_36 : f32 to vector<8x112xf32>
    %50 = arith.mulf %49, %46 : vector<8x112xf32>
    %51 = arith.select %48, %46, %50 : vector<8x112xi1>, vector<8x112xf32>
    %c0_37 = arith.constant 0 : index
    %c0_38 = arith.constant 0 : index
    %52 = vector.load %arg13[%c0_37, %c0_38] : memref<112x9xf32, #tpu.memory_space<vmem>>, vector<112x9xf32>
    %cst_39 = arith.constant dense<0.000000e+00> : vector<8x9xf32>
    %53 = tpu.matmul %51, %52, %cst_39 {dimension_numbers = #tpu.dot_dimension_numbers<[1], [0], [0], [1], [0, 0, 1, 1], [], []>} : vector<8x112xf32>, vector<112x9xf32>, vector<8x9xf32> -> vector<8x9xf32>
    %c0_40 = arith.constant 0 : index
    %c0_41 = arith.constant 0 : index
    %54 = vector.load %arg14[%c0_40, %c0_41] : memref<1x9xf32, #tpu.memory_space<vmem>>, vector<1x9xf32>
    %55 = vector.broadcast %54 : vector<1x9xf32> to vector<8x9xf32>
    %56 = arith.addf %53, %55 : vector<8x9xf32>
    %c0_42 = arith.constant 0 : index
    %c0_43 = arith.constant 0 : index
    %57 = vector.load %arg15[%c0_42, %c0_43] : memref<9x32xf32, #tpu.memory_space<vmem>>, vector<9x32xf32>
    %cst_44 = arith.constant dense<0.000000e+00> : vector<8x32xf32>
    %58 = tpu.matmul %56, %57, %cst_44 {dimension_numbers = #tpu.dot_dimension_numbers<[1], [0], [0], [1], [0, 0, 1, 1], [], []>} : vector<8x9xf32>, vector<9x32xf32>, vector<8x32xf32> -> vector<8x32xf32>
    %c0_45 = arith.constant 0 : index
    %c0_46 = arith.constant 0 : index
    %59 = vector.load %arg16[%c0_45, %c0_46] : memref<1x32xf32, #tpu.memory_space<vmem>>, vector<1x32xf32>
    %60 = vector.broadcast %59 : vector<1x32xf32> to vector<8x32xf32>
    %61 = arith.addf %58, %60 : vector<8x32xf32>
    %cst_47 = arith.constant 0.000000e+00 : f32
    %62 = vector.broadcast %cst_47 : f32 to vector<8x32xf32>
    %63 = arith.maximumf %61, %62 : vector<8x32xf32>
    %c0_48 = arith.constant 0 : index
    %c0_49 = arith.constant 0 : index
    %64 = vector.load %arg17[%c0_48, %c0_49] : memref<32x128xf32, #tpu.memory_space<vmem>>, vector<32x128xf32>
    %cst_50 = arith.constant dense<0.000000e+00> : vector<8x128xf32>
    %65 = tpu.matmul %63, %64, %cst_50 {dimension_numbers = #tpu.dot_dimension_numbers<[1], [0], [0], [1], [0, 0, 1, 1], [], []>} : vector<8x32xf32>, vector<32x128xf32>, vector<8x128xf32> -> vector<8x128xf32>
    %c0_51 = arith.constant 0 : index
    %c0_52 = arith.constant 0 : index
    %66 = vector.load %arg18[%c0_51, %c0_52] : memref<1x128xf32, #tpu.memory_space<vmem>>, vector<1x128xf32>
    %67 = vector.broadcast %66 : vector<1x128xf32> to vector<8x128xf32>
    %68 = arith.addf %65, %67 : vector<8x128xf32>
    %cst_53 = arith.constant dense<0xFF800000> : vector<8xf32>
    %69 = vector.multi_reduction <maximumf>, %68, %cst_53 [1] : vector<8x128xf32> to vector<8xf32>
    %70 = vector.shape_cast %69 : vector<8xf32> to vector<8x1xf32>
    %71 = vector.broadcast %70 : vector<8x1xf32> to vector<8x128xf32>
    %72 = arith.subf %68, %71 : vector<8x128xf32>
    %73 = math.exp %72 : vector<8x128xf32>
    %cst_54 = arith.constant dense<0.000000e+00> : vector<8xf32>
    %74 = vector.multi_reduction <add>, %73, %cst_54 [1] : vector<8x128xf32> to vector<8xf32>
    %75 = vector.shape_cast %74 : vector<8xf32> to vector<8x1xf32>
    %76 = vector.broadcast %75 : vector<8x1xf32> to vector<8x128xf32>
    %77 = arith.divf %73, %76 : vector<8x128xf32>
    %c0_55 = arith.constant 0 : index
    %c0_56 = arith.constant 0 : index
    %78 = vector.load %arg19[%c0_55, %c0_56] : memref<128x9xf32, #tpu.memory_space<vmem>>, vector<128x9xf32>
    %cst_57 = arith.constant dense<0.000000e+00> : vector<8x9xf32>
    %79 = tpu.matmul %77, %78, %cst_57 {dimension_numbers = #tpu.dot_dimension_numbers<[1], [0], [0], [1], [0, 0, 1, 1], [], []>} : vector<8x128xf32>, vector<128x9xf32>, vector<8x9xf32> -> vector<8x9xf32>
    %80 = arith.mulf %56, %79 : vector<8x9xf32>
    %c0_58 = arith.constant 0 : index
    %c0_59 = arith.constant 0 : index
    %81 = vector.load %arg20[%c0_58, %c0_59] : memref<9x128xf32, #tpu.memory_space<vmem>>, vector<9x128xf32>
    %cst_60 = arith.constant dense<0.000000e+00> : vector<8x128xf32>
    %82 = tpu.matmul %80, %81, %cst_60 {dimension_numbers = #tpu.dot_dimension_numbers<[1], [0], [0], [1], [0, 0, 1, 1], [], []>} : vector<8x9xf32>, vector<9x128xf32>, vector<8x128xf32> -> vector<8x128xf32>
    %c0_61 = arith.constant 0 : index
    %c0_62 = arith.constant 0 : index
    %83 = vector.load %arg32[%c0_61, %c0_62] : memref<8x128xf32, #tpu.memory_space<vmem>>, vector<8x128xf32>
    tpu.vector_store %arg32[%c0_61, %c0_62], %82 {strides = array<i32>} : memref<8x128xf32, #tpu.memory_space<vmem>>, vector<8x128xf32>,
    %c0_63 = arith.constant 0 : index
    %c0_64 = arith.constant 0 : index
    %84 = vector.load %arg21[%c0_63, %c0_64] : memref<32x64xf32, #tpu.memory_space<vmem>>, vector<32x64xf32>
    %cst_65 = arith.constant dense<0.000000e+00> : vector<8x64xf32>
    %85 = tpu.matmul %0, %84, %cst_65 {dimension_numbers = #tpu.dot_dimension_numbers<[1], [0], [0], [1], [0, 0, 1, 1], [], []>} : vector<8x32xf32>, vector<32x64xf32>, vector<8x64xf32> -> vector<8x64xf32>
    %c0_66 = arith.constant 0 : index
    %c0_67 = arith.constant 0 : index
    %86 = vector.load %arg22[%c0_66, %c0_67] : memref<1x64xf32, #tpu.memory_space<vmem>>, vector<1x64xf32>
    %87 = vector.broadcast %86 : vector<1x64xf32> to vector<8x64xf32>
    %88 = arith.addf %85, %87 : vector<8x64xf32>
    %cst_68 = arith.constant 0.000000e+00 : f32
    %89 = vector.broadcast %cst_68 : f32 to vector<8x64xf32>
    %90 = arith.maximumf %88, %89 : vector<8x64xf32>
    %c0_69 = arith.constant 0 : index
    %c0_70 = arith.constant 0 : index
    %91 = vector.load %arg23[%c0_69, %c0_70] : memref<64x128xf32, #tpu.memory_space<vmem>>, vector<64x128xf32>
    %cst_71 = arith.constant dense<0.000000e+00> : vector<8x128xf32>
    %92 = tpu.matmul %90, %91, %cst_71 {dimension_numbers = #tpu.dot_dimension_numbers<[1], [0], [0], [1], [0, 0, 1, 1], [], []>} : vector<8x64xf32>, vector<64x128xf32>, vector<8x128xf32> -> vector<8x128xf32>
    %c0_72 = arith.constant 0 : index
    %c0_73 = arith.constant 0 : index
    %93 = vector.load %arg24[%c0_72, %c0_73] : memref<1x128xf32, #tpu.memory_space<vmem>>, vector<1x128xf32>
    %94 = vector.broadcast %93 : vector<1x128xf32> to vector<8x128xf32>
    %95 = arith.addf %92, %94 : vector<8x128xf32>
    %cst_74 = arith.constant dense<0xFF800000> : vector<8xf32>
    %96 = vector.multi_reduction <maximumf>, %95, %cst_74 [1] : vector<8x128xf32> to vector<8xf32>
    %97 = vector.shape_cast %96 : vector<8xf32> to vector<8x1xf32>
    %98 = vector.broadcast %97 : vector<8x1xf32> to vector<8x128xf32>
    %99 = arith.subf %95, %98 : vector<8x128xf32>
    %100 = math.exp %99 : vector<8x128xf32>
    %cst_75 = arith.constant dense<0.000000e+00> : vector<8xf32>
    %101 = vector.multi_reduction <add>, %100, %cst_75 [1] : vector<8x128xf32> to vector<8xf32>
    %102 = vector.shape_cast %101 : vector<8xf32> to vector<8x1xf32>
    %103 = vector.broadcast %102 : vector<8x1xf32> to vector<8x128xf32>
    %104 = arith.divf %100, %103 : vector<8x128xf32>
    %c0_76 = arith.constant 0 : index
    %c0_77 = arith.constant 0 : index
    %105 = vector.load %arg33[%c0_76, %c0_77] : memref<8x128xf32, #tpu.memory_space<vmem>>, vector<8x128xf32>
    tpu.vector_store %arg33[%c0_76, %c0_77], %104 {strides = array<i32>} : memref<8x128xf32, #tpu.memory_space<vmem>>, vector<8x128xf32>,
    %c0_78 = arith.constant 0 : index
    %c0_79 = arith.constant 0 : index
    %106 = vector.load %arg25[%c0_78, %c0_79] : memref<32x64xf32, #tpu.memory_space<vmem>>, vector<32x64xf32>
    %cst_80 = arith.constant dense<0.000000e+00> : vector<8x64xf32>
    %107 = tpu.matmul %0, %106, %cst_80 {dimension_numbers = #tpu.dot_dimension_numbers<[1], [0], [0], [1], [0, 0, 1, 1], [], []>} : vector<8x32xf32>, vector<32x64xf32>, vector<8x64xf32> -> vector<8x64xf32>
    %c0_81 = arith.constant 0 : index
    %c0_82 = arith.constant 0 : index
    %108 = vector.load %arg26[%c0_81, %c0_82] : memref<9x64xf32, #tpu.memory_space<vmem>>, vector<9x64xf32>
    %cst_83 = arith.constant dense<0.000000e+00> : vector<8x64xf32>
    %109 = tpu.matmul %56, %108, %cst_83 {dimension_numbers = #tpu.dot_dimension_numbers<[1], [0], [0], [1], [0, 0, 1, 1], [], []>} : vector<8x9xf32>, vector<9x64xf32>, vector<8x64xf32> -> vector<8x64xf32>
    %110 = arith.addf %107, %109 : vector<8x64xf32>
    %c0_84 = arith.constant 0 : index
    %c0_85 = arith.constant 0 : index
    %111 = vector.load %arg27[%c0_84, %c0_85] : memref<1x64xf32, #tpu.memory_space<vmem>>, vector<1x64xf32>
    %112 = vector.broadcast %111 : vector<1x64xf32> to vector<8x64xf32>
    %113 = arith.addf %110, %112 : vector<8x64xf32>
    %cst_86 = arith.constant 0.000000e+00 : f32
    %114 = vector.broadcast %cst_86 : f32 to vector<8x64xf32>
    %115 = arith.maximumf %113, %114 : vector<8x64xf32>
    %c0_87 = arith.constant 0 : index
    %c0_88 = arith.constant 0 : index
    %116 = vector.load %arg28[%c0_87, %c0_88] : memref<64x32xf32, #tpu.memory_space<vmem>>, vector<64x32xf32>
    %cst_89 = arith.constant dense<0.000000e+00> : vector<8x32xf32>
    %117 = tpu.matmul %115, %116, %cst_89 {dimension_numbers = #tpu.dot_dimension_numbers<[1], [0], [0], [1], [0, 0, 1, 1], [], []>} : vector<8x64xf32>, vector<64x32xf32>, vector<8x32xf32> -> vector<8x32xf32>
    %c0_90 = arith.constant 0 : index
    %c0_91 = arith.constant 0 : index
    %118 = vector.load %arg29[%c0_90, %c0_91] : memref<1x32xf32, #tpu.memory_space<vmem>>, vector<1x32xf32>
    %119 = vector.broadcast %118 : vector<1x32xf32> to vector<8x32xf32>
    %120 = arith.addf %117, %119 : vector<8x32xf32>
    %cst_92 = arith.constant 0.000000e+00 : f32
    %121 = vector.broadcast %cst_92 : f32 to vector<8x32xf32>
    %122 = arith.maximumf %120, %121 : vector<8x32xf32>
    %c0_93 = arith.constant 0 : index
    %c0_94 = arith.constant 0 : index
    %123 = vector.load %arg30[%c0_93, %c0_94] : memref<32x128xf32, #tpu.memory_space<vmem>>, vector<32x128xf32>
    %cst_95 = arith.constant dense<0.000000e+00> : vector<8x128xf32>
    %124 = tpu.matmul %122, %123, %cst_95 {dimension_numbers = #tpu.dot_dimension_numbers<[1], [0], [0], [1], [0, 0, 1, 1], [], []>} : vector<8x32xf32>, vector<32x128xf32>, vector<8x128xf32> -> vector<8x128xf32>
    %c0_96 = arith.constant 0 : index
    %c0_97 = arith.constant 0 : index
    %125 = vector.load %arg31[%c0_96, %c0_97] : memref<1x128xf32, #tpu.memory_space<vmem>>, vector<1x128xf32>
    %126 = vector.broadcast %125 : vector<1x128xf32> to vector<8x128xf32>
    %127 = arith.addf %124, %126 : vector<8x128xf32>
    %cst_98 = arith.constant 0.000000e+00 : f32
    %128 = vector.broadcast %cst_98 : f32 to vector<8x128xf32>
    %129 = arith.subf %128, %127 : vector<8x128xf32>
    %130 = math.exp %129 : vector<8x128xf32>
    %cst_99 = arith.constant 1.000000e+00 : f32
    %131 = vector.broadcast %cst_99 : f32 to vector<8x128xf32>
    %132 = arith.addf %131, %130 : vector<8x128xf32>
    %cst_100 = arith.constant 1.000000e+00 : f32
    %133 = vector.broadcast %cst_100 : f32 to vector<8x128xf32>
    %134 = arith.divf %133, %132 : vector<8x128xf32>
    %c0_101 = arith.constant 0 : index
    %c0_102 = arith.constant 0 : index
    %135 = vector.load %arg34[%c0_101, %c0_102] : memref<8x128xf32, #tpu.memory_space<vmem>>, vector<8x128xf32>
    tpu.vector_store %arg34[%c0_101, %c0_102], %134 {strides = array<i32>} : memref<8x128xf32, #tpu.memory_space<vmem>>, vector<8x128xf32>,
    return
  }
}

</mosaic_0001>

<bundles_post_ra>
// kernel: ensemble_forward.1
= control target key start
LH: loop header
LB: loop body
LE: loop exit
PB: predicated region body
PF: predicated region fallthrough
CT: control target
= control target key end

     0   :  { %s3326_s6 = smov 1   ;;  %s3327_s10 = smov 2   ;;  %s3877_s0 = inlined_call_operand.smem [shape: u32[35], index: -1, kind: input, shape index: {}] }
   0x1   :  { %s3398_s5 = sld [smem:[%s3877_s0]]   ;;  %s3328_s14 = smov 3  }
   0x2   :  { %s3403_s9 = sld [smem:[%s3877_s0 + %s3326_s6]]   ;;  %s3329_s18 = smov 4  }
   0x3   :  { %s3408_s13 = sld [smem:[%s3877_s0 + %s3327_s10]]   ;;  %s3330_s22 = smov 5  }
   0x4   :  { %s3413_s17 = sld [smem:[%s3877_s0 + %s3328_s14]]   ;;  %s3331_s26 = smov 6  }
   0x5   :  { %s3418_s21 = sld [smem:[%s3877_s0 + %s3329_s18]]   ;;  %s3332_s30 = smov 7  }
   0x6   :  { %s3423_s25 = sld [smem:[%s3877_s0 + %s3330_s22]]   ;;  %s3333_s4 = smov 8  }
   0x7   :  { %3895 = sst [smem:[#allocation52_spill]] %s3398_s5  ;;  %s3334_s10 = smov 9  }
   0x8   :  { %s3428_s29 = sld [smem:[%s3877_s0 + %s3331_s26]]   ;;  %s3335_s15 = smov 10  }
   0x9   :  { %s3433_s3 = sld [smem:[%s3877_s0 + %s3332_s30]]   ;;  %s3336_s20 = smov 11  }
   0xa   :  { %s3438_s8 = sld [smem:[%s3877_s0 + %s3333_s4]]   ;;  %s3337_s26 = smov 12  }
   0xb   :  { %s3443_s14 = sld [smem:[%s3877_s0 + %s3334_s10]]   ;;  %s3338_s1 = smov 13  }
   0xc   :  { %s3448_s19 = sld [smem:[%s3877_s0 + %s3335_s15]]   ;;  %s3339_s7 = smov 14  }
   0xd   :  { %s3453_s24 = sld [smem:[%s3877_s0 + %s3336_s20]]   ;;  %s3340_s15 = smov 15  }
   0xe   :  { %s3458_s30 = sld [smem:[%s3877_s0 + %s3337_s26]]   ;;  %s3341_s22 = smov 16  }
   0xf   :  { %3896 = sst [smem:[#allocation53_spill]] %s3433_s3  ;;  %s3342_s28 = smov 17  }
  0x10   :  { %s3463_s6 = sld [smem:[%s3877_s0 + %s3338_s1]]  }
  0x11   :  { %3897 = sst [smem:[#allocation54_spill]] %s3443_s14 }
  0x12   :  { %s3468_s12 = sld [smem:[%s3877_s0 + %s3339_s7]]   ;;  %s3343_s7 = smov 18  }
  0x13   :  { %3898 = sst [smem:[#allocation55_spill]] %s3453_s24 }
  0x14   :  { %3899 = sst [smem:[#allocation56_spill]] %s3458_s30 }
  0x15   :  { %s3473_s20 = sld [smem:[%s3877_s0 + %s3340_s15]]   ;;  %s3344_s15 = smov 19  }
  0x16   :  { %3900 = sst [smem:[#allocation57_spill]] %s3463_s6 }
  0x17   :  { %s3478_s27 = sld [smem:[%s3877_s0 + %s3341_s22]]   ;;  %s3345_s22 = smov 20  }
  0x18   :  { %s3483_s4 = sld [smem:[%s3877_s0 + %s3342_s28]]   ;;  %s3346_s28 = smov 21  }
  0x19   :  { %s3488_s6 = sld [smem:[%s3877_s0 + %s3343_s7]]   ;;  %s3347_s7 = smov 22  }
  0x1a   :  { %s3493_s24 = sld [smem:[%s3877_s0 + %s3344_s15]]   ;;  %s3348_s15 = smov 23  }
  0x1b   :  { %3901 = sst [smem:[#allocation58_spill]] %s3473_s20 }
  0x1c   :  { %s3498_s5 = sld [smem:[%s3877_s0 + %s3345_s22]]   ;;  %s3349_s22 = smov 24  }
  0x1d   :  { %s3518_s20 = sld [smem:[%s3877_s0 + %s3349_s22]]   ;;  %s3353_s22 = smov 28  }
  0x1e   :  { %3902 = sst [smem:[#allocation59_spill]] %s3483_s4 }
  0x1f   :  { %3903 = sst [smem:[#allocation60_spill]] %s3488_s6 }
  0x20   :  { %3904 = sst [smem:[#allocation61_spill]] %s3493_s24 }
  0x21   :  { %s3503_s4 = sld [smem:[%s3877_s0 + %s3346_s28]]   ;;  %s3350_s28 = smov 25  }
  0x22   :  { %s3508_s6 = sld [smem:[%s3877_s0 + %s3347_s7]]   ;;  %s3351_s7 = smov 26  }
  0x23   :  { %s3513_s24 = sld [smem:[%s3877_s0 + %s3348_s15]]   ;;  %s3352_s15 = smov 27  }
  0x24   :  { %s3538_s30 = sld [smem:[%s3877_s0 + %s3353_s22]]   ;;  %s3357_s22 = smov 32  }
  0x27   :  { %3905 = sst [smem:[#allocation62_spill]] %s3503_s4 }
  0x28   :  { %3906 = sst [smem:[#allocation63_spill]] %s3508_s6 }
  0x29   :  { %3907 = sst [smem:[#allocation64_spill]] %s3513_s24 }
  0x2a   :  { %s3523_s4 = sld [smem:[%s3877_s0 + %s3350_s28]]   ;;  %s3354_s28 = smov 29  }
  0x2b   :  { %s3528_s6 = sld [smem:[%s3877_s0 + %s3351_s7]]   ;;  %s3355_s7 = smov 30  }
  0x2c   :  { %s3533_s24 = sld [smem:[%s3877_s0 + %s3352_s15]]   ;;  %s3356_s15 = smov 31  }
  0x2d   :  { %3910 = sst [smem:[#allocation67_spill]] %s3538_s30 }
  0x2e   :  { %s3548_s14 = sld [smem:[%s3877_s0 + %s3355_s7]]   ;;  %s3359_s7 = smov 34  }
  0x2f   :  { %s3558_s30 = sld [smem:[%s3877_s0 + %s3357_s22]]  }
  0x30   :  { %3908 = sst [smem:[#allocation65_spill]] %s3523_s4 }
  0x31   :  { %s3543_s4 = sld [smem:[%s3877_s0 + %s3354_s28]]   ;;  %s3358_s28 = smov 33  }
  0x32   :  { %3909 = sst [smem:[#allocation66_spill]] %s3533_s24 }
  0x33   :  { %s3553_s24 = sld [smem:[%s3877_s0 + %s3356_s15]]  }
  0x34   :  { %3911 = sst [smem:[#allocation68_spill]] %s3548_s14 }
  0x35   :  { %s3563_s3 = sld [smem:[%s3877_s0 + %s3358_s28]]  }
  0x36   :  { %s3568_s14 = sld [smem:[%s3877_s0 + %s3359_s7]]  }
  0x37   :  { %75 = vsyncpa [#allocation3], 0 }
  0x38   :  { %76 = vsyncpa [#allocation5], 0 }
  0x39   :  { %77 = vsyncpa [#allocation8], 0 }
  0x3a   :  { %78 = vsyncpa [#allocation11], 0 }
  0x3b   :  { %79 = vsyncpa [#allocation14], 0 }
  0x3c   :  { %80 = vsyncpa [#allocation17], 0 }
  0x3d   :  { %81 = vsyncpa [#allocation20], 0 }
  0x3e   :  { %82 = vsyncpa [#allocation23], 0 }
  0x3f   :  { %83 = vsyncpa [#allocation26], 0 }
  0x40   :  { %84 = vsyncpa [#allocation29], 0 }
  0x41   :  { %85 = vsyncpa [#allocation32], 0 }
  0x42   :  { %86 = vsyncpa [#allocation35], 0  ;;  %s108_s15 = sshll.u32 %s3408_s13, 4  ;;  %s109_s15 = int_to_ptr.hbm [resolvable:$true] %s108_s15 }
  0x43   :  { %87 = vsyncpa [#allocation38], 0  ;;  %s3360_s0 = smov [#allocation4]   ;;  %s130_s18 = sshll.u32 %s3418_s21, 4  ;;  %s131_s18 = int_to_ptr.hbm [resolvable:$true] %s130_s18 }
  0x44   :  { %s110_s16 = sshll.u32 %s3360_s0, 4  ;;  %s2724_s22 = sshra.s32 %s109_s15, 4  ;;  %s111_s16 = int_to_ptr.vmem [resolvable:$true] %s110_s16  ;;  %s2725_s22 = int_to_ptr.hbm [resolvable:$true] %s2724_s22 }
  0x45   :  { %s2726_s23 = scalar_lea.hbm %s2725_s22, 4  ;;  %s2728_s26 = scalar_lea.hbm %s3408_s13, 4 }
  0x46   :  { %p2727_p0 = scmp.ne.s32.totalorder %s2725_s22, %s2726_s23  ;;  %p2729_p1 = scmp.lt.s32.totalorder %s2725_s22, %s3408_s13 }
  0x47   :  { %p2730_p2 = scmp.lt.s32.totalorder %s2728_s26, %s2726_s23 }
  0x49   :  { %p2731_p3 = por %p2730_p2, %p2729_p1 }
  0x4b   :  { %p2732_p4 = pnand %p2731_p3, %p2727_p0 }
  0x4d   :  { %2735 = shalt.err (!%p2732_p4)
}
  0x4e   :  { %113 = dma.hbm_to_vmem [thread:$0]  %s109_s15, 64, %s111_s16, [#allocation5]  }
  0x4f   :  { %s3361_s28 = smov [#allocation7]   ;;  %s154_s2 = sshll.u32 %s3428_s29, 4  ;;  %s155_s2 = int_to_ptr.hbm [resolvable:$true] %s154_s2 }
  0x50   :  { %s132_s1 = sshll.u32 %s3361_s28, 4  ;;  %s2748_s7 = sshra.s32 %s131_s18, 4  ;;  %s133_s1 = int_to_ptr.vmem [resolvable:$true] %s132_s1  ;;  %s2749_s7 = int_to_ptr.hbm [resolvable:$true] %s2748_s7 }
  0x51   :  { %s2750_s10 = scalar_lea.hbm %s2749_s7, 4  ;;  %s2752_s11 = scalar_lea.hbm %s3418_s21, 4 }
  0x52   :  { %p2751_p5 = scmp.ne.s32.totalorder %s2749_s7, %s2750_s10  ;;  %p2753_p6 = scmp.lt.s32.totalorder %s2749_s7, %s3418_s21 }
  0x53   :  { %p2754_p7 = scmp.lt.s32.totalorder %s2752_s11, %s2750_s10 }
  0x55   :  { %p2755_p8 = por %p2754_p7, %p2753_p6 }
  0x57   :  { %p2756_p9 = pnand %p2755_p8, %p2751_p5 }
  0x59   :  { %2759 = shalt.err (!%p2756_p9)
}
  0x5a   :  { %135 = dma.hbm_to_vmem [thread:$0]  %s131_s18, 64, %s133_s1, [#allocation8]  }
  0x5b   :  { %s178_s13 = sshll.u32 %s3438_s8, 4  ;;  %s3362_s15 = smov [#allocation10]   ;;  %s179_s13 = int_to_ptr.hbm [resolvable:$true] %s178_s13 }
  0x5c   :  { %s156_s0 = sshll.u32 %s3362_s15, 4  ;;  %s2772_s16 = sshra.s32 %s155_s2, 4  ;;  %s157_s0 = int_to_ptr.vmem [resolvable:$true] %s156_s0  ;;  %s2773_s16 = int_to_ptr.hbm [resolvable:$true] %s2772_s16 }
  0x5d   :  { %s2774_s22 = scalar_lea.hbm %s2773_s16, 4  ;;  %s2776_s23 = scalar_lea.hbm %s3428_s29, 4 }
  0x5e   :  { %p2775_p10 = scmp.ne.s32.totalorder %s2773_s16, %s2774_s22  ;;  %p2777_p11 = scmp.lt.s32.totalorder %s2773_s16, %s3428_s29 }
  0x5f   :  { %p2778_p12 = scmp.lt.s32.totalorder %s2776_s23, %s2774_s22 }
  0x61   :  { %p2779_p13 = por %p2778_p12, %p2777_p11 }
  0x63   :  { %p2780_p0 = pnand %p2779_p13, %p2775_p10 }
  0x65   :  { %2783 = shalt.err (!%p2780_p0)
}
  0x66   :  { %159 = dma.hbm_to_vmem [thread:$0]  %s155_s2, 64, %s157_s0, [#allocation11]  }
  0x67   :  { %s3363_s21 = smov [#allocation13]   ;;  %s202_s26 = sshll.u32 %s3448_s19, 4  ;;  %s203_s26 = int_to_ptr.hbm [resolvable:$true] %s202_s26 }
  0x68   :  { %s180_s18 = sshll.u32 %s3363_s21, 4  ;;  %s2796_s28 = sshra.s32 %s179_s13, 4  ;;  %s181_s18 = int_to_ptr.vmem [resolvable:$true] %s180_s18  ;;  %s2797_s28 = int_to_ptr.hbm [resolvable:$true] %s2796_s28 }
  0x69   :  { %s2798_s1 = scalar_lea.hbm %s2797_s28, 4  ;;  %s2800_s7 = scalar_lea.hbm %s3438_s8, 4 }
  0x6a   :  { %p2799_p1 = scmp.ne.s32.totalorder %s2797_s28, %s2798_s1  ;;  %p2801_p2 = scmp.lt.s32.totalorder %s2797_s28, %s3438_s8 }
  0x6b   :  { %p2802_p3 = scmp.lt.s32.totalorder %s2800_s7, %s2798_s1 }
  0x6d   :  { %p2803_p4 = por %p2802_p3, %p2801_p2 }
  0x6f   :  { %p2804_p5 = pnand %p2803_p4, %p2799_p1 }
  0x71   :  { %2807 = shalt.err (!%p2804_p5)
}
  0x72   :  { %183 = dma.hbm_to_vmem [thread:$0]  %s179_s13, 64, %s181_s18, [#allocation14]  }
  0x73   :  { %s228_s29 = sshll.u32 %s3468_s12, 4  ;;  %s3364_s2 = smov [#allocation16]   ;;  %s229_s29 = int_to_ptr.hbm [resolvable:$true] %s228_s29 }
  0x74   :  { %s204_s10 = sshll.u32 %s3364_s2, 4  ;;  %s2820_s11 = sshra.s32 %s203_s26, 4  ;;  %s205_s10 = int_to_ptr.vmem [resolvable:$true] %s204_s10  ;;  %s2821_s11 = int_to_ptr.hbm [resolvable:$true] %s2820_s11 }
  0x75   :  { %s2822_s15 = scalar_lea.hbm %s2821_s11, 2  ;;  %s2824_s0 = scalar_lea.hbm %s3448_s19, 2 }
  0x76   :  { %p2823_p6 = scmp.ne.s32.totalorder %s2821_s11, %s2822_s15  ;;  %p2825_p7 = scmp.lt.s32.totalorder %s2821_s11, %s3448_s19 }
  0x77   :  { %p2826_p8 = scmp.lt.s32.totalorder %s2824_s0, %s2822_s15 }
  0x79   :  { %p2827_p9 = por %p2826_p8, %p2825_p7 }
  0x7b   :  { %p2828_p10 = pnand %p2827_p9, %p2823_p6 }
  0x7d   :  { %2831 = shalt.err (!%p2828_p10)
}
  0x7e   :  { %207 = dma.hbm_to_vmem [thread:$0]  %s203_s26, 32, %s205_s10, [#allocation17]  }
  0x7f   :  { %s3365_s8 = smov [#allocation19]   ;;  %s252_s16 = sshll.u32 %s3478_s27, 4  ;;  %s253_s16 = int_to_ptr.hbm [resolvable:$true] %s252_s16 }
  0x80   :  { %s230_s13 = sshll.u32 %s3365_s8, 4  ;;  %s2844_s22 = sshra.s32 %s229_s29, 4  ;;  %s231_s13 = int_to_ptr.vmem [resolvable:$true] %s230_s13  ;;  %s2845_s22 = int_to_ptr.hbm [resolvable:$true] %s2844_s22 }
  0x81   :  { %s2846_s23 = scalar_lea.hbm %s2845_s22, 1  ;;  %s2848_s21 = scalar_lea.hbm %s3468_s12, 1 }
  0x82   :  { %p2847_p11 = scmp.ne.s32.totalorder %s2845_s22, %s2846_s23  ;;  %p2849_p12 = scmp.lt.s32.totalorder %s2845_s22, %s3468_s12 }
  0x83   :  { %p2850_p13 = scmp.lt.s32.totalorder %s2848_s21, %s2846_s23 }
  0x85   :  { %p2851_p0 = por %p2850_p13, %p2849_p12 }
  0x87   :  { %p2852_p1 = pnand %p2851_p0, %p2847_p11 }
  0x89   :  { %2855 = shalt.err (!%p2852_p1)
}
  0x8a   :  { %233 = dma.hbm_to_vmem [thread:$0]  %s229_s29, 16, %s231_s13, [#allocation20]  }
  0x8b   :  { %s3366_s19 = smov [#allocation22]   ;;  %s277_s26 = sshll.u32 %s3498_s5, 4  ;;  %s278_s26 = int_to_ptr.hbm [resolvable:$true] %s277_s26 }
  0x8c   :  { %s254_s18 = sshll.u32 %s3366_s19, 4  ;;  %s2868_s28 = sshra.s32 %s253_s16, 4  ;;  %s255_s18 = int_to_ptr.vmem [resolvable:$true] %s254_s18  ;;  %s2869_s28 = int_to_ptr.hbm [resolvable:$true] %s2868_s28 }
  0x8d   :  { %s2870_s1 = scalar_lea.hbm %s2869_s28, 1  ;;  %s2872_s7 = scalar_lea.hbm %s3478_s27, 1 }
  0x8e   :  { %p2871_p2 = scmp.ne.s32.totalorder %s2869_s28, %s2870_s1  ;;  %p2873_p3 = scmp.lt.s32.totalorder %s2869_s28, %s3478_s27 }
  0x8f   :  { %p2874_p4 = scmp.lt.s32.totalorder %s2872_s7, %s2870_s1 }
  0x91   :  { %p2875_p5 = por %p2874_p4, %p2873_p3 }
  0x93   :  { %p2876_p6 = pnand %p2875_p5, %p2871_p2 }
  0x95   :  { %2879 = shalt.err (!%p2876_p6)
}
  0x96   :  { %257 = dma.hbm_to_vmem [thread:$0]  %s253_s16, 16, %s255_s18, [#allocation23]  }
  0x97   :  { %s3367_s12 = smov [#allocation25]   ;;  %s306_s2 = sshll.u32 %s3518_s20, 4  ;;  %s3593_s2 = int_to_ptr.hbm [resolvable:$true] %s306_s2 }
  0x98   :  { %s279_s29 = sshll.u32 %s3367_s12, 4  ;;  %s2892_s10 = sshra.s32 %s278_s26, 4  ;;  %s280_s29 = int_to_ptr.vmem [resolvable:$true] %s279_s29  ;;  %s2893_s10 = int_to_ptr.hbm [resolvable:$true] %s2892_s10 }
  0x99   :  { %s2894_s11 = scalar_lea.hbm %s2893_s10, 16  ;;  %s2896_s27 = scalar_lea.hbm %s3498_s5, 16 }
  0x9a   :  { %p2895_p7 = scmp.ne.s32.totalorder %s2893_s10, %s2894_s11  ;;  %p2897_p8 = scmp.lt.s32.totalorder %s2893_s10, %s3498_s5 }
  0x9b   :  { %p2898_p9 = scmp.lt.s32.totalorder %s2896_s27, %s2894_s11 }
  0x9d   :  { %p2899_p10 = por %p2898_p9, %p2897_p8 }
  0x9f   :  { %p2900_p11 = pnand %p2899_p10, %p2895_p7 }
  0xa1   :  { %2903 = shalt.err (!%p2900_p11)
}
  0xa2   :  { %s3368_s15 = smov 128   ;;  %s3369_s0 = smov 8  }
  0xa3   :  { %285 = dma.hbm_to_vmem [thread:$0]  %s278_s26, 256, %s280_s29, [#allocation26], %s3368_s15, %s3368_s15, %s3369_s0  }
  0xa4   :  { %s329_s8 = sshll.u32 %s3528_s6, 4  ;;  %s3370_s13 = smov [#allocation28]   ;;  %s3601_s8 = int_to_ptr.hbm [resolvable:$true] %s329_s8 }
  0xa5   :  { %s308_s16 = sshll.u32 %s3370_s13, 4  ;;  %s2916_s5 = sshra.s32 %s3593_s2, 4  ;;  %s309_s16 = int_to_ptr.vmem [resolvable:$true] %s308_s16  ;;  %s2917_s5 = int_to_ptr.hbm [resolvable:$true] %s2916_s5 }
  0xa6   :  { %s2918_s22 = scalar_lea.hbm %s2917_s5, 1  ;;  %s2920_s23 = scalar_lea.hbm %s3518_s20, 1 }
  0xa7   :  { %p2919_p12 = scmp.ne.s32.totalorder %s2917_s5, %s2918_s22  ;;  %p2921_p13 = scmp.lt.s32.totalorder %s2917_s5, %s3518_s20 }
  0xa8   :  { %p2922_p0 = scmp.lt.s32.totalorder %s2920_s23, %s2918_s22 }
  0xaa   :  { %p2923_p1 = por %p2922_p0, %p2921_p13 }
  0xac   :  { %p2924_p2 = pnand %p2923_p1, %p2919_p12 }
  0xae   :  { %2927 = shalt.err (!%p2924_p2)
}
  0xaf   :  { %311 = dma.hbm_to_vmem [thread:$0]  %s3593_s2, 16, %s309_s16, [#allocation29]  }
  0xb0   :  { %s3371_s21 = smov [#allocation31]   ;;  %s356_s18 = sshll.u32 %s3543_s4, 4  ;;  %s357_s18 = int_to_ptr.hbm [resolvable:$true] %s356_s18 }
  0xb1   :  { %s331_s19 = sshll.u32 %s3371_s21, 4  ;;  %s2940_s26 = sshra.s32 %s3601_s8, 4  ;;  %s332_s19 = int_to_ptr.vmem [resolvable:$true] %s331_s19  ;;  %s2941_s26 = int_to_ptr.hbm [resolvable:$true] %s2940_s26 }
  0xb2   :  { %s2942_s28 = scalar_lea.hbm %s2941_s26, 16  ;;  %s2944_s20 = scalar_lea.hbm %s3528_s6, 16 }
  0xb3   :  { %p2943_p3 = scmp.ne.s32.totalorder %s2941_s26, %s2942_s28  ;;  %p2945_p4 = scmp.lt.s32.totalorder %s2941_s26, %s3528_s6 }
  0xb4   :  { %p2946_p5 = scmp.lt.s32.totalorder %s2944_s20, %s2942_s28 }
  0xb6   :  { %p2947_p6 = por %p2946_p5, %p2945_p4 }
  0xb8   :  { %p2948_p7 = pnand %p2947_p6, %p2943_p3 }
  0xba   :  { %2951 = shalt.err (!%p2948_p7)
}
  0xbb   :  { %337 = dma.hbm_to_vmem [thread:$0]  %s3601_s8, 256, %s332_s19, [#allocation32], %s3368_s15, %s3368_s15, %s3369_s0  }
  0xbc   :  { %s94_s1 = sshll.u32 %s3403_s9, 4  ;;  %s3372_s7 = smov [#allocation34]   ;;  %s3616_s1 = int_to_ptr.hbm [resolvable:$true] %s94_s1 }
  0xbd   :  { %s358_s12 = sshll.u32 %s3372_s7, 4  ;;  %s2964_s29 = sshra.s32 %s357_s18, 4  ;;  %s359_s12 = int_to_ptr.vmem [resolvable:$true] %s358_s12  ;;  %s2965_s29 = int_to_ptr.hbm [resolvable:$true] %s2964_s29 }
  0xbe   :  { %s2966_s6 = scalar_lea.hbm %s2965_s29, 1  ;;  %s2968_s2 = scalar_lea.hbm %s3543_s4, 1 }
  0xbf   :  { %p2967_p8 = scmp.ne.s32.totalorder %s2965_s29, %s2966_s6  ;;  %p2969_p9 = scmp.lt.s32.totalorder %s2965_s29, %s3543_s4 }
  0xc0   :  { %p2970_p10 = scmp.lt.s32.totalorder %s2968_s2, %s2966_s6 }
  0xc2   :  { %p2971_p11 = por %p2970_p10, %p2969_p9 }
  0xc4   :  { %p2972_p12 = pnand %p2971_p11, %p2967_p8 }
  0xc6   :  { %2975 = shalt.err (!%p2972_p12)
}
  0xc7   :  { %361 = dma.hbm_to_vmem [thread:$0]  %s357_s18, 16, %s359_s12, [#allocation35]  }
  0xc8   :  { %s3373_s10 = smov [#allocation2]   ;;  %s2988_s27 = sshra.s32 %s3616_s1, 4  ;;  %s2989_s27 = int_to_ptr.hbm [resolvable:$true] %s2988_s27 }
  0xc9   :  { %s96_s11 = sshll.u32 %s3373_s10, 4  ;;  %s2990_s8 = scalar_lea.hbm %s2989_s27, 128  ;;  %s97_s11 = int_to_ptr.vmem [resolvable:$true] %s96_s11 }
  0xca   :  { %p2991_p13 = scmp.ne.s32.totalorder %s2989_s27, %s2990_s8  ;;  %s2992_s13 = scalar_lea.hbm %s3403_s9, 128 }
  0xcb   :  { %p2993_p0 = scmp.lt.s32.totalorder %s2989_s27, %s3403_s9  ;;  %p2994_p1 = scmp.lt.s32.totalorder %s2992_s13, %s2990_s8 }
  0xcd   :  { %p2995_p2 = por %p2994_p1, %p2993_p0 }
  0xcf   :  { %p2996_p3 = pnand %p2995_p2, %p2991_p13 }
  0xd1   :  { %2999 = shalt.err (!%p2996_p3)
}
  0xd2   :  { %s3374_s4 = smov 512   ;;  %s3375_s16 = smov 32  }
  0xd3   :  { %102 = dma.hbm_to_vmem [thread:$0]  %s3616_s1, 2048, %s97_s11, [#allocation3], %s3374_s4, %s3374_s4, %s3375_s16  }
  0xd4   :  { %s119_s5 = sshll.u32 %s3413_s17, 4  ;;  %s3376_s22 = smov [#allocation6]   ;;  %s120_s5 = int_to_ptr.hbm [resolvable:$true] %s119_s5 }
  0xd5   :  { %s121_s23 = sshll.u32 %s3376_s22, 4  ;;  %s140_s9 = sshll.u32 %s3423_s25, 4  ;;  %s122_s23 = int_to_ptr.vmem [resolvable:$true] %s121_s23  ;;  %s141_s9 = int_to_ptr.hbm [resolvable:$true] %s140_s9 }
  0xd6   :  { %s3012_s21 = sshra.s32 %s120_s5, 4  ;;  %s3016_s18 = scalar_lea.hbm %s3413_s17, 4  ;;  %s3013_s21 = int_to_ptr.hbm [resolvable:$true] %s3012_s21 }
  0xd7   :  { %s3014_s19 = scalar_lea.hbm %s3013_s21, 4  ;;  %p3017_p5 = scmp.lt.s32.totalorder %s3013_s21, %s3413_s17 }
  0xd8   :  { %p3015_p4 = scmp.ne.s32.totalorder %s3013_s21, %s3014_s19  ;;  %p3018_p6 = scmp.lt.s32.totalorder %s3016_s18, %s3014_s19 }
  0xda   :  { %p3019_p7 = por %p3018_p6, %p3017_p5 }
  0xdc   :  { %p3020_p8 = pnand %p3019_p7, %p3015_p4 }
  0xde   :  { %3023 = shalt.err (!%p3020_p8)
}
  0xdf   :  { %124 = dma.hbm_to_vmem [thread:$0]  %s120_s5, 64, %s122_s23, [#allocation5]  }
  0xe0   :  { %s3912_s26 = sld [smem:[#allocation53_spill]]  ;;  %s3377_s28 = smov [#allocation9]  }
  0xe1   :  { %s142_s20 = sshll.u32 %s3377_s28, 4  ;;  %s3036_s7 = sshra.s32 %s141_s9, 4  ;;  %s143_s20 = int_to_ptr.vmem [resolvable:$true] %s142_s20  ;;  %s3037_s7 = int_to_ptr.hbm [resolvable:$true] %s3036_s7 }
  0xe2   :  { %s3038_s12 = scalar_lea.hbm %s3037_s7, 1792  ;;  %s3040_s17 = scalar_lea.hbm %s3423_s25, 1792 }
  0xe3   :  { %p3039_p9 = scmp.ne.s32.totalorder %s3037_s7, %s3038_s12  ;;  %p3041_p10 = scmp.lt.s32.totalorder %s3037_s7, %s3423_s25 }
  0xe4   :  { %p3042_p11 = scmp.lt.s32.totalorder %s3040_s17, %s3038_s12 }
  0xe6   :  { %s164_s1 = sshll.u32 %s3912_s26, 4  ;;  %p3043_p12 = por %p3042_p11, %p3041_p10  ;;  %s3632_s1 = int_to_ptr.hbm [resolvable:$true] %s164_s1 }
  0xe8   :  { %p3044_p13 = pnand %p3043_p12, %p3039_p9 }
  0xea   :  { %3047 = shalt.err (!%p3044_p13)
}
  0xeb   :  { %s3913_s29 = sld [smem:[#allocation54_spill]]  ;;  %s3378_s2 = smov [#allocation12]  }
  0xec   :  { %148 = dma.hbm_to_vmem [thread:$0]  %s141_s9, 28672, %s143_s20, [#allocation8], %s3374_s4, %s3374_s4, %s3375_s16  }
  0xed   :  { %s166_s10 = sshll.u32 %s3378_s2, 4  ;;  %s3060_s11 = sshra.s32 %s3632_s1, 4  ;;  %s167_s10 = int_to_ptr.vmem [resolvable:$true] %s166_s10  ;;  %s3061_s11 = int_to_ptr.hbm [resolvable:$true] %s3060_s11 }
  0xee   :  { %s3062_s25 = scalar_lea.hbm %s3061_s11, 1792  ;;  %s3064_s27 = scalar_lea.hbm %s3912_s26, 1792 }
  0xef   :  { %p3063_p0 = scmp.ne.s32.totalorder %s3061_s11, %s3062_s25  ;;  %p3065_p1 = scmp.lt.s32.totalorder %s3061_s11, %s3912_s26 }
  0xf0   :  { %p3066_p2 = scmp.lt.s32.totalorder %s3064_s27, %s3062_s25 }
  0xf1   :  { %s188_s6 = sshll.u32 %s3913_s29, 4  ;;  %s3640_s6 = int_to_ptr.hbm [resolvable:$true] %s188_s6 }
  0xf2   :  { %p3067_p3 = por %p3066_p2, %p3065_p1 }
  0xf4   :  { %p3068_p4 = pnand %p3067_p3, %p3063_p0 }
  0xf6   :  { %3071 = shalt.err (!%p3068_p4)
}
  0xf7   :  { %172 = dma.hbm_to_vmem [thread:$0]  %s3632_s1, 28672, %s167_s10, [#allocation11], %s3374_s4, %s3374_s4, %s3375_s16  }
  0xf8   :  { %s3379_s8 = smov [#allocation15]   ;;  %s3084_s5 = sshra.s32 %s3640_s6, 4  ;;  %s3085_s5 = int_to_ptr.hbm [resolvable:$true] %s3084_s5 }
  0xf9   :  { %s190_s13 = sshll.u32 %s3379_s8, 4  ;;  %s3086_s22 = scalar_lea.hbm %s3085_s5, 896  ;;  %s191_s13 = int_to_ptr.vmem [resolvable:$true] %s190_s13 }
  0xfa   :  { %p3087_p5 = scmp.ne.s32.totalorder %s3085_s5, %s3086_s22  ;;  %s3088_s23 = scalar_lea.hbm %s3913_s29, 896 }
  0xfb   :  { %p3089_p6 = scmp.lt.s32.totalorder %s3085_s5, %s3913_s29  ;;  %p3090_p7 = scmp.lt.s32.totalorder %s3088_s23, %s3086_s22 }
  0xfd   :  { %p3091_p8 = por %p3090_p7, %p3089_p6 }
  0xff   :  { %p3092_p9 = pnand %p3091_p8, %p3087_p5 }
 0x101   :  { %3095 = shalt.err (!%p3092_p9)
}
 0x102   :  { %s3380_s9 = smov 256   ;;  %s3914_s21 = sld [smem:[#allocation56_spill]] }
 0x103   :  { %s3915_s19 = sld [smem:[#allocation58_spill]]  ;;  %s3381_s4 = smov 16  }
 0x104   :  { %196 = dma.hbm_to_vmem [thread:$0]  %s3640_s6, 14336, %s191_s13, [#allocation14], %s3380_s9, %s3380_s9, %s3381_s4  }
 0x105   :  { %s3382_s18 = smov [#allocation18]  }
 0x106   :  { %s217_s26 = sshll.u32 %s3382_s18, 4  ;;  %s218_s26 = int_to_ptr.vmem [resolvable:$true] %s217_s26 }
 0x108   :  { %s215_s16 = sshll.u32 %s3914_s21, 4  ;;  %s3112_s7 = scalar_lea.hbm %s3914_s21, 1  ;;  %s216_s16 = int_to_ptr.hbm [resolvable:$true] %s215_s16 }
 0x109   :  { %s238_s28 = sshll.u32 %s3915_s19, 4  ;;  %s3108_s20 = sshra.s32 %s216_s16, 4  ;;  %s3109_s20 = int_to_ptr.hbm [resolvable:$true] %s3108_s20  ;;  %s239_s28 = int_to_ptr.hbm [resolvable:$true] %s238_s28 }
 0x10a   :  { %s3110_s1 = scalar_lea.hbm %s3109_s20, 1  ;;  %p3113_p11 = scmp.lt.s32.totalorder %s3109_s20, %s3914_s21 }
 0x10b   :  { %p3111_p10 = scmp.ne.s32.totalorder %s3109_s20, %s3110_s1  ;;  %p3114_p12 = scmp.lt.s32.totalorder %s3112_s7, %s3110_s1 }
 0x10d   :  { %p3115_p13 = por %p3114_p12, %p3113_p11 }
 0x10f   :  { %p3116_p0 = pnand %p3115_p13, %p3111_p10 }
 0x111   :  { %3119 = shalt.err (!%p3116_p0)
}
 0x112   :  { %220 = dma.hbm_to_vmem [thread:$0]  %s216_s16, 16, %s218_s26, [#allocation17]  }
 0x113   :  { %s3916_s12 = sld [smem:[#allocation60_spill]]  ;;  %s3383_s17 = smov [#allocation21]  }
 0x114   :  { %s240_s29 = sshll.u32 %s3383_s17, 4  ;;  %s3132_s2 = sshra.s32 %s239_s28, 4  ;;  %s241_s29 = int_to_ptr.vmem [resolvable:$true] %s240_s29  ;;  %s3133_s2 = int_to_ptr.hbm [resolvable:$true] %s3132_s2 }
 0x115   :  { %s3134_s10 = scalar_lea.hbm %s3133_s2, 16  ;;  %s3136_s11 = scalar_lea.hbm %s3915_s19, 16 }
 0x116   :  { %p3135_p1 = scmp.ne.s32.totalorder %s3133_s2, %s3134_s10  ;;  %p3137_p2 = scmp.lt.s32.totalorder %s3133_s2, %s3915_s19 }
 0x117   :  { %p3138_p3 = scmp.lt.s32.totalorder %s3136_s11, %s3134_s10 }
 0x119   :  { %s265_s6 = sshll.u32 %s3916_s12, 4  ;;  %p3139_p4 = por %p3138_p3, %p3137_p2  ;;  %s266_s6 = int_to_ptr.hbm [resolvable:$true] %s265_s6 }
 0x11b   :  { %p3140_p5 = pnand %p3139_p4, %p3135_p1 }
 0x11d   :  { %3143 = shalt.err (!%p3140_p5)
}
 0x11e   :  { %s3917_s25 = sld [smem:[#allocation63_spill]]  ;;  %s3384_s8 = smov [#allocation24]  }
 0x11f   :  { %246 = dma.hbm_to_vmem [thread:$0]  %s239_s28, 256, %s241_s29, [#allocation20], %s3368_s15, %s3368_s15, %s3369_s0  }
 0x120   :  { %s267_s13 = sshll.u32 %s3384_s8, 4  ;;  %s3156_s5 = sshra.s32 %s266_s6, 4  ;;  %s268_s13 = int_to_ptr.vmem [resolvable:$true] %s267_s13  ;;  %s3157_s5 = int_to_ptr.hbm [resolvable:$true] %s3156_s5 }
 0x121   :  { %s3158_s22 = scalar_lea.hbm %s3157_s5, 1  ;;  %s3160_s23 = scalar_lea.hbm %s3916_s12, 1 }
 0x122   :  { %p3159_p6 = scmp.ne.s32.totalorder %s3157_s5, %s3158_s22  ;;  %p3161_p7 = scmp.lt.s32.totalorder %s3157_s5, %s3916_s12 }
 0x123   :  { %p3162_p8 = scmp.lt.s32.totalorder %s3160_s23, %s3158_s22 }
 0x124   :  { %s293_s27 = sshll.u32 %s3917_s25, 4  ;;  %s294_s27 = int_to_ptr.hbm [resolvable:$true] %s293_s27 }
 0x125   :  { %p3163_p9 = por %p3162_p8, %p3161_p7 }
 0x127   :  { %p3164_p10 = pnand %p3163_p9, %p3159_p6 }
 0x129   :  { %3167 = shalt.err (!%p3164_p10)
}
 0x12a   :  { %270 = dma.hbm_to_vmem [thread:$0]  %s266_s6, 16, %s268_s13, [#allocation23]  }
 0x12b   :  { %s3918_s9 = sld [smem:[#allocation65_spill]]  ;;  %s3385_s21 = smov [#allocation27]  }
 0x12c   :  { %s295_s19 = sshll.u32 %s3385_s21, 4  ;;  %s3180_s16 = sshra.s32 %s294_s27, 4  ;;  %s296_s19 = int_to_ptr.vmem [resolvable:$true] %s295_s19  ;;  %s3181_s16 = int_to_ptr.hbm [resolvable:$true] %s3180_s16 }
 0x12d   :  { %s3182_s18 = scalar_lea.hbm %s3181_s16, 1  ;;  %s3184_s26 = scalar_lea.hbm %s3917_s25, 1 }
 0x12e   :  { %p3183_p11 = scmp.ne.s32.totalorder %s3181_s16, %s3182_s18  ;;  %p3185_p12 = scmp.lt.s32.totalorder %s3181_s16, %s3917_s25 }
 0x12f   :  { %p3186_p13 = scmp.lt.s32.totalorder %s3184_s26, %s3182_s18 }
 0x131   :  { %s316_s4 = sshll.u32 %s3918_s9, 4  ;;  %p3187_p0 = por %p3186_p13, %p3185_p12  ;;  %s3667_s4 = int_to_ptr.hbm [resolvable:$true] %s316_s4 }
 0x133   :  { %p3188_p1 = pnand %p3187_p0, %p3183_p11 }
 0x135   :  { %3191 = shalt.err (!%p3188_p1)
}
 0x136   :  { %298 = dma.hbm_to_vmem [thread:$0]  %s294_s27, 16, %s296_s19, [#allocation26]  }
 0x137   :  { %s3919_s28 = sld [smem:[#allocation66_spill]]  ;;  %s3386_s1 = smov [#allocation30]  }
 0x138   :  { %s318_s7 = sshll.u32 %s3386_s1, 4  ;;  %s3204_s12 = sshra.s32 %s3667_s4, 4  ;;  %s319_s7 = int_to_ptr.vmem [resolvable:$true] %s318_s7  ;;  %s3205_s12 = int_to_ptr.hbm [resolvable:$true] %s3204_s12 }
 0x139   :  { %s3206_s17 = scalar_lea.hbm %s3205_s12, 32  ;;  %s3208_s29 = scalar_lea.hbm %s3918_s9, 32 }
 0x13a   :  { %p3207_p2 = scmp.ne.s32.totalorder %s3205_s12, %s3206_s17  ;;  %p3209_p3 = scmp.lt.s32.totalorder %s3205_s12, %s3918_s9 }
 0x13b   :  { %p3210_p4 = scmp.lt.s32.totalorder %s3208_s29, %s3206_s17 }
 0x13d   :  { %s343_s20 = sshll.u32 %s3919_s28, 4  ;;  %p3211_p5 = por %p3210_p4, %p3209_p3  ;;  %s344_s20 = int_to_ptr.hbm [resolvable:$true] %s343_s20 }
 0x13f   :  { %p3212_p6 = pnand %p3211_p5, %p3207_p2 }
 0x141   :  { %3215 = shalt.err (!%p3212_p6)
}
 0x142   :  { %s3920_s6 = sld [smem:[#allocation68_spill]]  ;;  %s3387_s2 = smov [#allocation33]  }
 0x143   :  { %324 = dma.hbm_to_vmem [thread:$0]  %s3667_s4, 512, %s319_s7, [#allocation29], %s3368_s15, %s3368_s15, %s3369_s0  }
 0x144   :  { %s345_s10 = sshll.u32 %s3387_s2, 4  ;;  %s3228_s25 = sshra.s32 %s344_s20, 4  ;;  %s346_s10 = int_to_ptr.vmem [resolvable:$true] %s345_s10  ;;  %s3229_s25 = int_to_ptr.hbm [resolvable:$true] %s3228_s25 }
 0x145   :  { %s3230_s27 = scalar_lea.hbm %s3229_s25, 1  ;;  %s3232_s8 = scalar_lea.hbm %s3919_s28, 1 }
 0x146   :  { %p3231_p7 = scmp.ne.s32.totalorder %s3229_s25, %s3230_s27  ;;  %p3233_p8 = scmp.lt.s32.totalorder %s3229_s25, %s3919_s28 }
 0x147   :  { %p3234_p9 = scmp.lt.s32.totalorder %s3232_s8, %s3230_s27 }
 0x148   :  { %s366_s11 = sshll.u32 %s3920_s6, 4  ;;  %s3680_s11 = int_to_ptr.hbm [resolvable:$true] %s366_s11 }
 0x149   :  { %p3235_p10 = por %p3234_p9, %p3233_p8 }
 0x14b   :  { %p3236_p11 = pnand %p3235_p10, %p3231_p7 }
 0x14d   :  { %3239 = shalt.err (!%p3236_p11)
}
 0x14e   :  { %348 = dma.hbm_to_vmem [thread:$0]  %s344_s20, 16, %s346_s10, [#allocation32]  }
 0x14f   :  { %s380_s13 = sshll.u32 %s3553_s24, 4  ;;  %s3388_s5 = smov [#allocation36]   ;;  %s381_s13 = int_to_ptr.hbm [resolvable:$true] %s380_s13 }
 0x150   :  { %s368_s22 = sshll.u32 %s3388_s5, 4  ;;  %s3252_s23 = sshra.s32 %s3680_s11, 4  ;;  %s369_s22 = int_to_ptr.vmem [resolvable:$true] %s368_s22  ;;  %s3253_s23 = int_to_ptr.hbm [resolvable:$true] %s3252_s23 }
 0x151   :  { %s3254_s9 = scalar_lea.hbm %s3253_s23, 32  ;;  %s3256_s21 = scalar_lea.hbm %s3920_s6, 32 }
 0x152   :  { %p3255_p12 = scmp.ne.s32.totalorder %s3253_s23, %s3254_s9  ;;  %p3257_p13 = scmp.lt.s32.totalorder %s3253_s23, %s3920_s6 }
 0x153   :  { %p3258_p0 = scmp.lt.s32.totalorder %s3256_s21, %s3254_s9 }
 0x155   :  { %p3259_p1 = por %p3258_p0, %p3257_p13 }
 0x157   :  { %p3260_p2 = pnand %p3259_p1, %p3255_p12 }
 0x159   :  { %3263 = shalt.err (!%p3260_p2)
}
 0x15a   :  { %374 = dma.hbm_to_vmem [thread:$0]  %s3680_s11, 512, %s369_s22, [#allocation35], %s3368_s15, %s3368_s15, %s3369_s0  }
 0x15b   :  { %s3389_s19 = smov [#allocation37]   ;;  %s3276_s16 = sshra.s32 %s381_s13, 4  ;;  %s3277_s16 = int_to_ptr.hbm [resolvable:$true] %s3276_s16 }
 0x15c   :  { %s382_s4 = sshll.u32 %s3389_s19, 4  ;;  %s3278_s18 = scalar_lea.hbm %s3277_s16, 1  ;;  %s383_s4 = int_to_ptr.vmem [resolvable:$true] %s382_s4 }
 0x15d   :  { %p3279_p3 = scmp.ne.s32.totalorder %s3277_s16, %s3278_s18  ;;  %s3280_s26 = scalar_lea.hbm %s3553_s24, 1 }
 0x15e   :  { %p3281_p4 = scmp.lt.s32.totalorder %s3277_s16, %s3553_s24  ;;  %p3282_p5 = scmp.lt.s32.totalorder %s3280_s26, %s3278_s18 }
 0x160   :  { %p3283_p6 = por %p3282_p5, %p3281_p4 }
 0x162   :  { %p3284_p7 = pnand %p3283_p6, %p3279_p3 }
 0x164   :  { %3287 = shalt.err (!%p3284_p7)
}
 0x165   :  { %385 = dma.hbm_to_vmem [thread:$0]  %s381_s13, 16, %s383_s4, [#allocation38]  }
 0x166   :  { %3300 = dma.done.wait [#allocation3], 2048  }
 0x167   :  { %3301 = vsyncadd [#allocation3], 4294965248 }
 0x168   :  { %3302 = dma.done.wait [#allocation5], 128  }
 0x169   :  { %3303 = vsyncadd [#allocation5], 4294967168 }
 0x16a   :  { %3304 = dma.done.wait [#allocation8], 28736  }
 0x16b   :  { %3305 = vsyncadd [#allocation8], 4294938560 }
 0x16c   :  { %3306 = dma.done.wait [#allocation11], 28736  }
 0x16d   :  { %3307 = vsyncadd [#allocation11], 4294938560 }
 0x16e   :  { %3308 = dma.done.wait [#allocation14], 14400  }
 0x16f   :  { %3309 = vsyncadd [#allocation14], 4294952896 }
 0x170   :  { %3310 = dma.done.wait [#allocation17], 48  }
 0x171   :  { %3311 = vsyncadd [#allocation17], 4294967248 }
 0x172   :  { %3312 = dma.done.wait [#allocation20], 272  }
 0x173   :  { %3313 = vsyncadd [#allocation20], 4294967024 }
 0x174   :  { %3314 = dma.done.wait [#allocation23], 32  }
 0x175   :  { %3315 = vsyncadd [#allocation23], 4294967264 }
 0x176   :  { %3316 = dma.done.wait [#allocation26], 272  }
 0x177   :  { %3317 = vsyncadd [#allocation26], 4294967024 }
 0x178   :  { %3318 = dma.done.wait [#allocation29], 528  }
 0x179   :  { %3319 = vsyncadd [#allocation29], 4294966768 }
 0x17a   :  { %3320 = dma.done.wait [#allocation32], 272  }
 0x17b   :  { %3321 = vsyncadd [#allocation32], 4294967024 }
 0x17c   :  { %3322 = dma.done.wait [#allocation35], 528  }
 0x17d   :  { %3323 = vsyncadd [#allocation35], 4294966768 }
 0x17e   :  { %3324 = dma.done.wait [#allocation38], 16  }
 0x17f   :  { %3325 = vsyncadd [#allocation38], 4294967280  ;;  %v495_v0 = vld [vmem:[#allocation2 + $0x60] sm:$0xff]  ;;  %v496_v1 = vld [vmem:[#allocation2 + $0x68] sm:$0xff]  ;;  %s3921_s24 = sld [smem:[#allocation52_spill]]  ;;  %vm509_vm0 = vcmask 261120  }
 0x180   :  { %v497_v2 = vld [vmem:[#allocation2 + $0x70] sm:$0xff]  ;;  %525 = vmatpush.msra.mxu0 %v495_v0  ;;  %545 = vmatpush.msra.mxu1 %v496_v1  ;;  %v498_v3 = vld [vmem:[#allocation2 + $0x78] sm:$0xff]  ;;  %v491_v4 = vld [vmem:[#allocation2 + $0x40] sm:$0xff]  ;;  %vm867_vm5 = vcmask 523264   ;;  %s3922_s15 = sld [smem:[#allocation55_spill]]  ;;  %vm2079_vm12 = vcmask 785408  }
 0x181   :  { %v492_v5 = vld [vmem:[#allocation2 + $0x48] sm:$0xff]  ;;  %565 = vmatpush.msra.mxu2 %v497_v2  ;;  %585 = vmatpush.msra.mxu3 %v498_v3  ;;  %v493_v6 = vld [vmem:[#allocation2 + $0x50] sm:$0xff]  ;;  %v494_v7 = vld [vmem:[#allocation2 + $0x58] sm:$0xff]  ;;  %s3923_s0 = sld [smem:[#allocation57_spill]]  ;;  %vm2178_vm13 = vcmask 1040384   ;;  %vm2144_vm15 = vcmask 916480  }
 0x182   :  { %v487_v8 = vld [vmem:[#allocation2 + $0x20] sm:$0xff]  ;;  %526 = vmatpush.msra.mxu0 %v491_v4  ;;  %546 = vmatpush.msra.mxu1 %v492_v5  ;;  %v488_v9 = vld [vmem:[#allocation2 + $0x28] sm:$0xff]  ;;  %v489_v10 = vld [vmem:[#allocation2 + $0x30] sm:$0xff]  ;;  %s3924_s28 = sld [smem:[#allocation62_spill]] }
 0x183   :  { %v490_v11 = vld [vmem:[#allocation2 + $0x38] sm:$0xff]  ;;  %566 = vmatpush.msra.mxu2 %v493_v6  ;;  %586 = vmatpush.msra.mxu3 %v494_v7  ;;  %v483_v12 = vld [vmem:[#allocation2] sm:$0xff]  ;;  %v484_v13 = vld [vmem:[#allocation2 + $0x8] sm:$0xff]  ;;  %s3925_s20 = sld [smem:[#allocation59_spill]] }
 0x184   :  { %527 = vmatpush.msra.mxu0 %v487_v8  ;;  %547 = vmatpush.msra.mxu1 %v488_v9  ;;  %v485_v14 = vld [vmem:[#allocation2 + $0x10] sm:$0xff]  ;;  %v486_v15 = vld [vmem:[#allocation2 + $0x18] sm:$0xff]  ;;  %s3926_s1 = sld [smem:[#allocation67_spill]] }
 0x185   :  { %567 = vmatpush.msra.mxu2 %v489_v10  ;;  %587 = vmatpush.msra.mxu3 %v490_v11  ;;  %v482_v16 = vld [vmem:[%s3921_s24] sm:$0xff]  ;;  %v693_v17 = vld [vmem:[#allocation9 + $0x1e0] sm:$0xff]  ;;  %v694_v56 = vld [vmem:[#allocation9 + $0x1e8] sm:$0xff]  ;;  %s3927_s7 = sld [smem:[#allocation61_spill]] }
 0x186   :  { %528 = vmatpush.msra.mxu0 %v483_v12  ;;  %548 = vmatpush.msra.mxu1 %v484_v13  ;;  %v757_v18 = vld [vmem:[#allocation9 + $0x3e0] sm:$0xff]  ;;  %v690_v60 = vld [vmem:[#allocation9 + $0x1c8] sm:$0xff]  ;;  %s3928_s12 = sld [smem:[#allocation64_spill]] }
 0x187   :  { %568 = vmatpush.msra.mxu2 %v485_v14  ;;  %588 = vmatpush.msra.mxu3 %v486_v15  ;;  %v689_v19 = vld [vmem:[#allocation9 + $0x1c0] sm:$0xff]  ;;  %v686_v2 = vld [vmem:[#allocation9 + $0x1a8] sm:$0xff] }
 0x188   :  { %2610 = vmatmul.msk.f32.vlgmr.msra.gmra.mxu0 %vm509_vm0, %v482_v16  ;;  %2611 = vmatmul.msk.f32.vlgmr.msra.gmra.mxu1 %vm509_vm0, %v482_v16  ;;  %v753_v20 = vld [vmem:[#allocation9 + $0x3c0] sm:$0xff]  ;;  %v682_v6 = vld [vmem:[#allocation9 + $0x188] sm:$0xff] }
 0x189   :  { %2612 = vmatmul.msk.f32.vlgmr.msra.gmra.mxu2 %vm509_vm0, %v482_v16  ;;  %2613 = vmatmul.msk.f32.vlgmr.msra.gmra.mxu3 %vm509_vm0, %v482_v16  ;;  %v685_v21 = vld [vmem:[#allocation9 + $0x1a0] sm:$0xff]  ;;  %v678_v7 = vld [vmem:[#allocation9 + $0x168] sm:$0xff] }
 0x18a   :  { %871 = vmatpush.msrb.mxu0 %v693_v17  ;;  %891 = vmatpush.msrb.mxu1 %v757_v18  ;;  %v749_v22 = vld [vmem:[#allocation9 + $0x3a0] sm:$0xff]  ;;  %v758_v12 = vld [vmem:[#allocation9 + $0x3e8] sm:$0xff] }
 0x18b   :  { %v821_v23 = vld [vmem:[#allocation9 + $0x5e0] sm:$0xff]  ;;  %v822_v13 = vld [vmem:[#allocation9 + $0x5e8] sm:$0xff] }
 0x18c   :  { %872 = vmatpush.msrb.mxu0 %v689_v19  ;;  %892 = vmatpush.msrb.mxu1 %v753_v20  ;;  %v681_v24 = vld [vmem:[#allocation9 + $0x180] sm:$0xff]  ;;  %v674_v14 = vld [vmem:[#allocation9 + $0x148] sm:$0xff] }
 0x18d   :  { %v745_v25 = vld [vmem:[#allocation9 + $0x380] sm:$0xff]  ;;  %911 = vmatpush.msrb.mxu2 %v821_v23  ;;  %v754_v16 = vld [vmem:[#allocation9 + $0x3c8] sm:$0xff] }
 0x18e   :  { %v853_v26 = vld [vmem:[#allocation9 + $0x6e0] sm:$0xff]  ;;  %873 = vmatpush.msrb.mxu0 %v685_v21  ;;  %893 = vmatpush.msrb.mxu1 %v749_v22  ;;  %v818_v17 = vld [vmem:[#allocation9 + $0x5c8] sm:$0xff] }
 0x18f   :  { %v817_v27 = vld [vmem:[#allocation9 + $0x5c0] sm:$0xff]  ;;  %939 = vmatpush.msrb.mxu3 %v853_v26  ;;  %v670_v18 = vld [vmem:[#allocation9 + $0x128] sm:$0xff] }
 0x190   :  { %v849_v28 = vld [vmem:[#allocation9 + $0x6c0] sm:$0xff]  ;;  %912 = vmatpush.msrb.mxu2 %v817_v27  ;;  %874 = vmatpush.msrb.mxu0 %v681_v24  ;;  %v750_v19 = vld [vmem:[#allocation9 + $0x3a8] sm:$0xff] }
 0x191   :  { %v677_v29 = vld [vmem:[#allocation9 + $0x160] sm:$0xff]  ;;  %894 = vmatpush.msrb.mxu1 %v745_v25  ;;  %940 = vmatpush.msrb.mxu3 %v849_v28  ;;  %v814_v20 = vld [vmem:[#allocation9 + $0x5a8] sm:$0xff] }
 0x192   :  { %v741_v30 = vld [vmem:[#allocation9 + $0x360] sm:$0xff]  ;;  %875 = vmatpush.msrb.mxu0 %v677_v29  ;;  %v666_v21 = vld [vmem:[#allocation9 + $0x108] sm:$0xff] }
 0x193   :  { %v813_v31 = vld [vmem:[#allocation9 + $0x5a0] sm:$0xff]  ;;  %895 = vmatpush.msrb.mxu1 %v741_v30  ;;  %v746_v22 = vld [vmem:[#allocation9 + $0x388] sm:$0xff] }
 0x194   :  { %v845_v32 = vld [vmem:[#allocation9 + $0x6a0] sm:$0xff]  ;;  %913 = vmatpush.msrb.mxu2 %v813_v31  ;;  %v810_v23 = vld [vmem:[#allocation9 + $0x588] sm:$0xff] }
 0x195   :  { %v809_v33 = vld [vmem:[#allocation9 + $0x580] sm:$0xff]  ;;  %941 = vmatpush.msrb.mxu3 %v845_v32  ;;  %v742_v24 = vld [vmem:[#allocation9 + $0x368] sm:$0xff] }
 0x196   :  { %v673_v34 = vld [vmem:[#allocation9 + $0x140] sm:$0xff]  ;;  %914 = vmatpush.msrb.mxu2 %v809_v33  ;;  %v806_v25 = vld [vmem:[#allocation9 + $0x568] sm:$0xff] }
 0x197   :  { %v737_v35 = vld [vmem:[#allocation9 + $0x340] sm:$0xff]  ;;  %876 = vmatpush.msrb.mxu0 %v673_v34  ;;  %v738_v26 = vld [vmem:[#allocation9 + $0x348] sm:$0xff] }
 0x198   :  { %v841_v36 = vld [vmem:[#allocation9 + $0x680] sm:$0xff]  ;;  %896 = vmatpush.msrb.mxu1 %v737_v35  ;;  %v802_v27 = vld [vmem:[#allocation9 + $0x548] sm:$0xff] }
 0x199   :  { %v805_v37 = vld [vmem:[#allocation9 + $0x560] sm:$0xff]  ;;  %942 = vmatpush.msrb.mxu3 %v841_v36  ;;  %v734_v28 = vld [vmem:[#allocation9 + $0x328] sm:$0xff] }
 0x19a   :  { %v669_v38 = vld [vmem:[#allocation9 + $0x120] sm:$0xff]  ;;  %915 = vmatpush.msrb.mxu2 %v805_v37  ;;  %v798_v29 = vld [vmem:[#allocation9 + $0x528] sm:$0xff] }
 0x19b   :  { %v733_v39 = vld [vmem:[#allocation9 + $0x320] sm:$0xff]  ;;  %877 = vmatpush.msrb.mxu0 %v669_v38  ;;  %v730_v30 = vld [vmem:[#allocation9 + $0x308] sm:$0xff] }
 0x19c   :  { %v837_v40 = vld [vmem:[#allocation9 + $0x660] sm:$0xff]  ;;  %897 = vmatpush.msrb.mxu1 %v733_v39  ;;  %v794_v31 = vld [vmem:[#allocation9 + $0x508] sm:$0xff] }
 0x19d   :  { %v801_v41 = vld [vmem:[#allocation9 + $0x540] sm:$0xff]  ;;  %943 = vmatpush.msrb.mxu3 %v837_v40  ;;  %v726_v32 = vld [vmem:[#allocation9 + $0x2e8] sm:$0xff] }
 0x19e   :  { %v665_v42 = vld [vmem:[#allocation9 + $0x100] sm:$0xff]  ;;  %916 = vmatpush.msrb.mxu2 %v801_v41  ;;  %v790_v33 = vld [vmem:[#allocation9 + $0x4e8] sm:$0xff] }
 0x19f   :  { %v729_v43 = vld [vmem:[#allocation9 + $0x300] sm:$0xff]  ;;  %878 = vmatpush.msrb.mxu0 %v665_v42  ;;  %v722_v34 = vld [vmem:[#allocation9 + $0x2c8] sm:$0xff] }
 0x1a0   :  { %v833_v44 = vld [vmem:[#allocation9 + $0x640] sm:$0xff]  ;;  %898 = vmatpush.msrb.mxu1 %v729_v43  ;;  %v786_v35 = vld [vmem:[#allocation9 + $0x4c8] sm:$0xff] }
 0x1a1   :  { %v797_v45 = vld [vmem:[#allocation9 + $0x520] sm:$0xff]  ;;  %944 = vmatpush.msrb.mxu3 %v833_v44  ;;  %v718_v36 = vld [vmem:[#allocation9 + $0x2a8] sm:$0xff] }
 0x1a2   :  { %v661_v46 = vld [vmem:[#allocation9 + $0xe0] sm:$0xff]  ;;  %917 = vmatpush.msrb.mxu2 %v797_v45  ;;  %v782_v37 = vld [vmem:[#allocation9 + $0x4a8] sm:$0xff] }
 0x1a3   :  { %v725_v47 = vld [vmem:[#allocation9 + $0x2e0] sm:$0xff]  ;;  %879 = vmatpush.msrb.mxu0 %v661_v46  ;;  %v662_v39 = vld [vmem:[#allocation9 + $0xe8] sm:$0xff] }
 0x1a4   :  { %v829_v48 = vld [vmem:[#allocation9 + $0x620] sm:$0xff]  ;;  %899 = vmatpush.msrb.mxu1 %v725_v47  ;;  %v714_v40 = vld [vmem:[#allocation9 + $0x288] sm:$0xff] }
 0x1a5   :  { %v793_v49 = vld [vmem:[#allocation9 + $0x500] sm:$0xff]  ;;  %945 = vmatpush.msrb.mxu3 %v829_v48  ;;  %v778_v41 = vld [vmem:[#allocation9 + $0x488] sm:$0xff] }
 0x1a6   :  { %v657_v50 = vld [vmem:[#allocation9 + $0xc0] sm:$0xff]  ;;  %918 = vmatpush.msrb.mxu2 %v793_v49  ;;  %v854_v42 = vld [vmem:[#allocation9 + $0x6e8] sm:$0xff] }
 0x1a7   :  { %v721_v51 = vld [vmem:[#allocation9 + $0x2c0] sm:$0xff]  ;;  %880 = vmatpush.msrb.mxu0 %v657_v50  ;;  %v658_v43 = vld [vmem:[#allocation9 + $0xc8] sm:$0xff] }
 0x1a8   :  { %v825_v52 = vld [vmem:[#allocation9 + $0x600] sm:$0xff]  ;;  %900 = vmatpush.msrb.mxu1 %v721_v51  ;;  %v710_v44 = vld [vmem:[#allocation9 + $0x268] sm:$0xff] }
 0x1a9   :  { %v789_v53 = vld [vmem:[#allocation9 + $0x4e0] sm:$0xff]  ;;  %946 = vmatpush.msrb.mxu3 %v825_v52  ;;  %v774_v45 = vld [vmem:[#allocation9 + $0x468] sm:$0xff] }
 0x1aa   :  { %v653_v54 = vld [vmem:[#allocation9 + $0xa0] sm:$0xff]  ;;  %919 = vmatpush.msrb.mxu2 %v789_v53  ;;  %v850_v46 = vld [vmem:[#allocation9 + $0x6c8] sm:$0xff] }
 0x1ab   :  { %v717_v55 = vld [vmem:[#allocation9 + $0x2a0] sm:$0xff]  ;;  %881 = vmatpush.msrb.mxu0 %v653_v54  ;;  %951 = vmatpush.msra.mxu3 %v694_v56  ;;  %v654_v47 = vld [vmem:[#allocation9 + $0xa8] sm:$0xff] }
 0x1ac   :  { %v785_v57 = vld [vmem:[#allocation9 + $0x4c0] sm:$0xff]  ;;  %901 = vmatpush.msrb.mxu1 %v717_v55  ;;  %v706_v48 = vld [vmem:[#allocation9 + $0x248] sm:$0xff] }
 0x1ad   :  { %v649_v58 = vld [vmem:[#allocation9 + $0x80] sm:$0xff]  ;;  %920 = vmatpush.msrb.mxu2 %v785_v57  ;;  %952 = vmatpush.msra.mxu3 %v690_v60  ;;  %v770_v49 = vld [vmem:[#allocation9 + $0x448] sm:$0xff] }
 0x1ae   :  { %v713_v59 = vld [vmem:[#allocation9 + $0x280] sm:$0xff]  ;;  %882 = vmatpush.msrb.mxu0 %v649_v58  ;;  %v846_v50 = vld [vmem:[#allocation9 + $0x6a8] sm:$0xff] }
 0x1af   :  { %v781_v61 = vld [vmem:[#allocation9 + $0x4a0] sm:$0xff]  ;;  %902 = vmatpush.msrb.mxu1 %v713_v59  ;;  %953 = vmatpush.msra.mxu3 %v686_v2  ;;  %v650_v51 = vld [vmem:[#allocation9 + $0x88] sm:$0xff] }
 0x1b0   :  { %v645_v62 = vld [vmem:[#allocation9 + $0x60] sm:$0xff]  ;;  %921 = vmatpush.msrb.mxu2 %v781_v61  ;;  %v702_v52 = vld [vmem:[#allocation9 + $0x228] sm:$0xff] }
 0x1b1   :  { %v709_v63 = vld [vmem:[#allocation9 + $0x260] sm:$0xff]  ;;  %883 = vmatpush.msrb.mxu0 %v645_v62  ;;  %954 = vmatpush.msra.mxu3 %v682_v6  ;;  %v766_v53 = vld [vmem:[#allocation9 + $0x428] sm:$0xff] }
 0x1b2   :  { %v641_v0 = vld [vmem:[#allocation9 + $0x40] sm:$0xff]  ;;  %903 = vmatpush.msrb.mxu1 %v709_v63  ;;  %v842_v54 = vld [vmem:[#allocation9 + $0x688] sm:$0xff] }
 0x1b3   :  { %v705_v1 = vld [vmem:[#allocation9 + $0x240] sm:$0xff]  ;;  %884 = vmatpush.msrb.mxu0 %v641_v0  ;;  %955 = vmatpush.msra.mxu3 %v678_v7  ;;  %v646_v55 = vld [vmem:[#allocation9 + $0x68] sm:$0xff] }
 0x1b4   :  { %v777_v3 = vld [vmem:[#allocation9 + $0x480] sm:$0xff]  ;;  %904 = vmatpush.msrb.mxu1 %v705_v1  ;;  %v698_v56 = vld [vmem:[#allocation9 + $0x208] sm:$0xff]  ;;  %v499_v1 = vld [vmem:[#allocation4] sm:$0xf] }
 0x1b5   :  { %v637_v4 = vld [vmem:[#allocation9 + $0x20] sm:$0xff]  ;;  %922 = vmatpush.msrb.mxu2 %v777_v3  ;;  %956 = vmatpush.msra.mxu3 %v674_v14  ;;  %v762_v57 = vld [vmem:[#allocation9 + $0x408] sm:$0xff]  ;;  %v501_v2 = vperm.slane %v499_v1, 0  ;;  %v502_v3 = vperm.slane %v499_v1, 1  ;;  %v503_v14 = vperm.slane %v499_v1, 2 }
 0x1b6   :  { %v701_v5 = vld [vmem:[#allocation9 + $0x220] sm:$0xff]  ;;  %885 = vmatpush.msrb.mxu0 %v637_v4  ;;  %v838_v58 = vld [vmem:[#allocation9 + $0x668] sm:$0xff]  ;;  %v605_v4 = vld [vmem:[#allocation6] sm:$0xf] }
 0x1b7   :  { %v773_v8 = vld [vmem:[#allocation9 + $0x460] sm:$0xff]  ;;  %905 = vmatpush.msrb.mxu1 %v701_v5  ;;  %957 = vmatpush.msra.mxu3 %v670_v18  ;;  %v642_v59 = vld [vmem:[#allocation9 + $0x48] sm:$0xff] }
 0x1b8   :  { %v769_v9 = vld [vmem:[#allocation9 + $0x440] sm:$0xff]  ;;  %923 = vmatpush.msrb.mxu2 %v773_v8  ;;  %v834_v60 = vld [vmem:[#allocation9 + $0x648] sm:$0xff] }
 0x1b9   :  { %v633_v10 = vld [vmem:[#allocation9] sm:$0xff]  ;;  %958 = vmatpush.msra.mxu3 %v666_v21  ;;  %v638_v61 = vld [vmem:[#allocation9 + $0x28] sm:$0xff] }
 0x1ba   :  { %v697_v11 = vld [vmem:[#allocation9 + $0x200] sm:$0xff]  ;;  %924 = vmatpush.msrb.mxu2 %v769_v9  ;;  %886 = vmatpush.msrb.mxu0 %v633_v10  ;;  %v830_v62 = vld [vmem:[#allocation9 + $0x628] sm:$0xff]  ;;  %v619_v9 = vld [vmem:[#allocation7] sm:$0xf]  ;;  %v607_v10 = vperm.slane %v605_v4, 0 }
 0x1bb   :  { %v765_v15 = vld [vmem:[#allocation9 + $0x420] sm:$0xff]  ;;  %906 = vmatpush.msrb.mxu1 %v697_v11  ;;  %959 = vmatpush.msra.mxu3 %v662_v39  ;;  %v634_v63 = vld [vmem:[#allocation9 + $0x8] sm:$0xff]  ;;  %v608_v11 = vperm.slane %v605_v4, 1 }
 0x1bc   :  { %971 = vmatpush.msra.mxu0 %v758_v12  ;;  %925 = vmatpush.msrb.mxu2 %v765_v15  ;;  %v761_v38 = vld [vmem:[#allocation9 + $0x400] sm:$0xff]  ;;  %v826_v0 = vld [vmem:[#allocation9 + $0x608] sm:$0xff]  ;;  %v504_v15 = vperm.slane %v499_v1, 3  ;;  %v827_v1 = vld [vmem:[#allocation9 + $0x610] sm:$0xff] }
 0x1bd   :  { %991 = vmatpush.msra.mxu1 %v822_v13  ;;  %960 = vmatpush.msra.mxu3 %v658_v43 }
 0x1be   :  { %972 = vmatpush.msra.mxu0 %v754_v16  ;;  %926 = vmatpush.msrb.mxu2 %v761_v38  ;;  %v621_v16 = vperm.slane %v619_v9, 0 }
 0x1bf   :  { %992 = vmatpush.msra.mxu1 %v818_v17  ;;  %961 = vmatpush.msra.mxu3 %v654_v47  ;;  %v622_v17 = vperm.slane %v619_v9, 1  ;;  %v759_v47 = vld [vmem:[#allocation9 + $0x3f0] sm:$0xff] }
 0x1c0   :  { %973 = vmatpush.msra.mxu0 %v750_v19  ;;  %1019 = vmatpush.msra.mxu2 %v854_v42 }
 0x1c1   :  { %993 = vmatpush.msra.mxu1 %v814_v20  ;;  %962 = vmatpush.msra.mxu3 %v650_v51  ;;  %v755_v51 = vld [vmem:[#allocation9 + $0x3d0] sm:$0xff] }
 0x1c2   :  { %974 = vmatpush.msra.mxu0 %v746_v22  ;;  %1020 = vmatpush.msra.mxu2 %v850_v46  ;;  %v695_v46 = vld [vmem:[#allocation9 + $0x1f0] sm:$0xff] }
 0x1c3   :  { %994 = vmatpush.msra.mxu1 %v810_v23  ;;  %963 = vmatpush.msra.mxu3 %v646_v55  ;;  %v751_v55 = vld [vmem:[#allocation9 + $0x3b0] sm:$0xff] }
 0x1c4   :  { %975 = vmatpush.msra.mxu0 %v742_v24  ;;  %1021 = vmatpush.msra.mxu2 %v846_v50  ;;  %v691_v50 = vld [vmem:[#allocation9 + $0x1d0] sm:$0xff] }
 0x1c5   :  { %995 = vmatpush.msra.mxu1 %v806_v25  ;;  %964 = vmatpush.msra.mxu3 %v642_v59  ;;  %v747_v59 = vld [vmem:[#allocation9 + $0x390] sm:$0xff] }
 0x1c6   :  { %976 = vmatpush.msra.mxu0 %v738_v26  ;;  %1022 = vmatpush.msra.mxu2 %v842_v54  ;;  %v687_v54 = vld [vmem:[#allocation9 + $0x1b0] sm:$0xff] }
 0x1c7   :  { %996 = vmatpush.msra.mxu1 %v802_v27  ;;  %965 = vmatpush.msra.mxu3 %v638_v61  ;;  %v831_v61 = vld [vmem:[#allocation9 + $0x630] sm:$0xff] }
 0x1c8   :  { %977 = vmatpush.msra.mxu0 %v734_v28  ;;  %1023 = vmatpush.msra.mxu2 %v838_v58  ;;  %v823_v28 = vld [vmem:[#allocation9 + $0x5f0] sm:$0xff] }
 0x1c9   :  { %997 = vmatpush.msra.mxu1 %v798_v29  ;;  %966 = vmatpush.msra.mxu3 %v634_v63  ;;  %v855_v29 = vld [vmem:[#allocation9 + $0x6f0] sm:$0xff] }
 0x1ca   :  { %978 = vmatpush.msra.mxu0 %v730_v30  ;;  %1024 = vmatpush.msra.mxu2 %v834_v60  ;;  %v609_v30 = vperm.slane %v605_v4, 2  ;;  %v683_v58 = vld [vmem:[#allocation9 + $0x190] sm:$0xff] }
 0x1cb   :  { %998 = vmatpush.msra.mxu1 %v794_v31  ;;  %v610_v31 = vperm.slane %v605_v4, 3  ;;  %v799_v60 = vld [vmem:[#allocation9 + $0x530] sm:$0xff] }
 0x1cc   :  { %979 = vmatpush.msra.mxu0 %v726_v32  ;;  %1025 = vmatpush.msra.mxu2 %v830_v62  ;;  %v819_v32 = vld [vmem:[#allocation9 + $0x5d0] sm:$0xff] }
 0x1cd   :  { %999 = vmatpush.msra.mxu1 %v790_v33  ;;  %v851_v33 = vld [vmem:[#allocation9 + $0x6d0] sm:$0xff] }
 0x1ce   :  { %980 = vmatpush.msra.mxu0 %v722_v34  ;;  %1026 = vmatpush.msra.mxu2 %v826_v0  ;;  %v743_v62 = vld [vmem:[#allocation9 + $0x370] sm:$0xff] }
 0x1cf   :  { %1000 = vmatpush.msra.mxu1 %v786_v35  ;;  %v679_v63 = vld [vmem:[#allocation9 + $0x170] sm:$0xff] }
 0x1d0   :  { %981 = vmatpush.msra.mxu0 %v718_v36  ;;  %v623_v36 = vperm.slane %v619_v9, 2  ;;  %v795_v0 = vld [vmem:[#allocation9 + $0x510] sm:$0xff] }
 0x1d1   :  { %1001 = vmatpush.msra.mxu1 %v782_v37  ;;  %v624_v37 = vperm.slane %v619_v9, 3  ;;  %v675_v4 = vld [vmem:[#allocation9 + $0x150] sm:$0xff] }
 0x1d2   :  { %982 = vmatpush.msra.mxu0 %v714_v40  ;;  %v815_v40 = vld [vmem:[#allocation9 + $0x5b0] sm:$0xff] }
 0x1d3   :  { %1002 = vmatpush.msra.mxu1 %v778_v41  ;;  %v847_v41 = vld [vmem:[#allocation9 + $0x6b0] sm:$0xff] }
 0x1d4   :  { %983 = vmatpush.msra.mxu0 %v710_v44  ;;  %v787_v9 = vld [vmem:[#allocation9 + $0x4d0] sm:$0xff] }
 0x1d5   :  { %1003 = vmatpush.msra.mxu1 %v774_v45 }
 0x1d6   :  { %984 = vmatpush.msra.mxu0 %v706_v48  ;;  %v811_v48 = vld [vmem:[#allocation9 + $0x590] sm:$0xff] }
 0x1d7   :  { %1004 = vmatpush.msra.mxu1 %v770_v49  ;;  %v843_v49 = vld [vmem:[#allocation9 + $0x690] sm:$0xff] }
 0x1d8   :  { %985 = vmatpush.msra.mxu0 %v702_v52  ;;  %v807_v52 = vld [vmem:[#allocation9 + $0x570] sm:$0xff] }
 0x1d9   :  { %1005 = vmatpush.msra.mxu1 %v766_v53  ;;  %v839_v53 = vld [vmem:[#allocation9 + $0x670] sm:$0xff] }
 0x1da   :  { %986 = vmatpush.msra.mxu0 %v698_v56  ;;  %v803_v56 = vld [vmem:[#allocation9 + $0x550] sm:$0xff] }
 0x1db   :  { %1006 = vmatpush.msra.mxu1 %v762_v57  ;;  %v835_v57 = vld [vmem:[#allocation9 + $0x650] sm:$0xff] }
 0x205   :  { %v530_v5 = vpop.f32.mrf.mxu0  ;;  %v550_v6 = vpop.f32.mrf.mxu1 }
 0x206   :  { %v531_v7 = vadd.f32 %v530_v5, %v501_v2  ;;  %v551_v8 = vadd.f32 %v550_v6, %v502_v3  ;;  %v739_v2 = vld [vmem:[#allocation9 + $0x350] sm:$0xff]  ;;  %v696_v3 = vld [vmem:[#allocation9 + $0x1f8] sm:$0xff] }
 0x207   :  { %v791_v5 = vld [vmem:[#allocation9 + $0x4f0] sm:$0xff]  ;;  %v692_v6 = vld [vmem:[#allocation9 + $0x1d8] sm:$0xff] }
 0x208   :  { %vm593_vm1 = vcmp.ge.f32.partialorder %v531_v7, 0.0  ;;  %v597_v12 = vmul.f32 0.2, %v531_v7  ;;  %vm594_vm2 = vcmp.ge.f32.partialorder %v551_v8, 0.0  ;;  %v598_v13 = vmul.f32 0.2, %v551_v8 }
 0x20a   :  { %v601_v18 = vsel %vm593_vm1, %v531_v7, %v597_v12  ;;  %v602_v19 = vsel %vm594_vm2, %v551_v8, %v598_v13  ;;  %v671_v7 = vld [vmem:[#allocation9 + $0x130] sm:$0xff]  ;;  %vm2174_vm1 = vcmask 72704  }
 0x20b   :  { %v615_v20 = vmul.f32 %v607_v10, %v601_v18  ;;  %v616_v21 = vmul.f32 %v608_v11, %v602_v19  ;;  %v735_v8 = vld [vmem:[#allocation9 + $0x330] sm:$0xff]  ;;  %v688_v10 = vld [vmem:[#allocation9 + $0x1b8] sm:$0xff] }
 0x20c   :  { %v570_v22 = vpop.f32.mrf.mxu2  ;;  %v590_v23 = vpop.f32.mrf.mxu3  ;;  %v667_v11 = vld [vmem:[#allocation9 + $0x110] sm:$0xff]  ;;  %v680_v18 = vld [vmem:[#allocation9 + $0x178] sm:$0xff] }
 0x20d   :  { %v571_v24 = vadd.f32 %v570_v22, %v503_v14  ;;  %v591_v25 = vadd.f32 %v590_v23, %v504_v15  ;;  %v3699_v26 = vadd.f32 %v621_v16, %v615_v20  ;;  %v3701_v27 = vadd.f32 %v622_v17, %v616_v21  ;;  %v731_v12 = vld [vmem:[#allocation9 + $0x310] sm:$0xff]  ;;  %v684_v14 = vld [vmem:[#allocation9 + $0x198] sm:$0xff] }
 0x20e   :  { %v783_v13 = vld [vmem:[#allocation9 + $0x4b0] sm:$0xff]  ;;  %v676_v22 = vld [vmem:[#allocation9 + $0x158] sm:$0xff] }
 0x20f   :  { %vm595_vm3 = vcmp.ge.f32.partialorder %v571_v24, 0.0  ;;  %v599_v34 = vmul.f32 0.2, %v571_v24  ;;  %vm596_vm4 = vcmp.ge.f32.partialorder %v591_v25, 0.0  ;;  %v600_v35 = vmul.f32 0.2, %v591_v25  ;;  %887 = vmatmul.f32.vlgmr.msrb.gmra.mxu0 %v3699_v26  ;;  %907 = vmatmul.f32.vlgmr.msrb.gmra.mxu1 %v3701_v27 }
 0x210   :  { %1071 = vmatpush.msrb.mxu0 %v823_v28  ;;  %1099 = vmatpush.msrb.mxu1 %v855_v29  ;;  %v663_v15 = vld [vmem:[#allocation9 + $0xf0] sm:$0xff]  ;;  %v672_v28 = vld [vmem:[#allocation9 + $0x138] sm:$0xff] }
 0x211   :  { %v603_v38 = vsel %vm595_vm3, %v571_v24, %v599_v34  ;;  %v604_v39 = vsel %vm596_vm4, %v591_v25, %v600_v35  ;;  %v727_v16 = vld [vmem:[#allocation9 + $0x2f0] sm:$0xff] }
 0x212   :  { %v617_v42 = vmul.f32 %v609_v30, %v603_v38  ;;  %v618_v43 = vmul.f32 %v610_v31, %v604_v39  ;;  %1072 = vmatpush.msrb.mxu0 %v819_v32  ;;  %1100 = vmatpush.msrb.mxu1 %v851_v33  ;;  %v779_v17 = vld [vmem:[#allocation9 + $0x490] sm:$0xff]  ;;  %v668_v32 = vld [vmem:[#allocation9 + $0x118] sm:$0xff] }
 0x213   :  { %v659_v19 = vld [vmem:[#allocation9 + $0xd0] sm:$0xff]  ;;  %v856_v38 = vld [vmem:[#allocation9 + $0x6f8] sm:$0xff] }
 0x214   :  { %1073 = vmatpush.msrb.mxu0 %v815_v40  ;;  %1101 = vmatpush.msrb.mxu1 %v847_v41  ;;  %v3705_v44 = vadd.f32 %v623_v36, %v617_v42  ;;  %v3707_v45 = vadd.f32 %v624_v37, %v618_v43  ;;  %v723_v20 = vld [vmem:[#allocation9 + $0x2d0] sm:$0xff]  ;;  %v664_v36 = vld [vmem:[#allocation9 + $0xf8] sm:$0xff] }
 0x215   :  { %v775_v21 = vld [vmem:[#allocation9 + $0x470] sm:$0xff]  ;;  %v660_v40 = vld [vmem:[#allocation9 + $0xd8] sm:$0xff] }
 0x216   :  { %927 = vmatmul.f32.vlgmr.msrb.gmra.mxu2 %v3705_v44  ;;  %2614 = vmatmul.msk.f32.vlgmr.msrb.gmra.mxu3 %vm867_vm5, %v3707_v45  ;;  %v655_v23 = vld [vmem:[#allocation9 + $0xb0] sm:$0xff]  ;;  %v852_v42 = vld [vmem:[#allocation9 + $0x6d8] sm:$0xff] }
 0x217   :  { %1031 = vmatpush.msrb.mxu2 %v695_v46  ;;  %1051 = vmatpush.msrb.mxu3 %v759_v47  ;;  %v719_v24 = vld [vmem:[#allocation9 + $0x2b0] sm:$0xff]  ;;  %v656_v46 = vld [vmem:[#allocation9 + $0xb8] sm:$0xff] }
 0x218   :  { %1074 = vmatpush.msrb.mxu0 %v811_v48  ;;  %1102 = vmatpush.msrb.mxu1 %v843_v49  ;;  %v771_v25 = vld [vmem:[#allocation9 + $0x450] sm:$0xff]  ;;  %v848_v48 = vld [vmem:[#allocation9 + $0x6b8] sm:$0xff] }
 0x219   :  { %1007 = vmatmul.f32.vlgmr.msra.gmra.mxu1 %v3705_v44  ;;  %1032 = vmatpush.msrb.mxu2 %v691_v50  ;;  %v651_v29 = vld [vmem:[#allocation9 + $0x90] sm:$0xff]  ;;  %v652_v50 = vld [vmem:[#allocation9 + $0x98] sm:$0xff] }
 0x21a   :  { %1052 = vmatpush.msrb.mxu3 %v755_v51  ;;  %1075 = vmatpush.msrb.mxu0 %v807_v52  ;;  %v715_v30 = vld [vmem:[#allocation9 + $0x290] sm:$0xff]  ;;  %v760_v51 = vld [vmem:[#allocation9 + $0x3f8] sm:$0xff] }
 0x21b   :  { %1103 = vmatpush.msrb.mxu1 %v839_v53  ;;  %1033 = vmatpush.msrb.mxu2 %v687_v54  ;;  %v767_v31 = vld [vmem:[#allocation9 + $0x430] sm:$0xff]  ;;  %v824_v52 = vld [vmem:[#allocation9 + $0x5f8] sm:$0xff] }
 0x21c   :  { %1053 = vmatpush.msrb.mxu3 %v751_v55  ;;  %1076 = vmatpush.msrb.mxu0 %v803_v56  ;;  %v647_v33 = vld [vmem:[#allocation9 + $0x70] sm:$0xff]  ;;  %v844_v53 = vld [vmem:[#allocation9 + $0x698] sm:$0xff] }
 0x21d   :  { %1104 = vmatpush.msrb.mxu1 %v835_v57  ;;  %1034 = vmatpush.msrb.mxu2 %v683_v58  ;;  %v711_v34 = vld [vmem:[#allocation9 + $0x270] sm:$0xff]  ;;  %v648_v54 = vld [vmem:[#allocation9 + $0x78] sm:$0xff] }
 0x21e   :  { %1054 = vmatpush.msrb.mxu3 %v747_v59  ;;  %1077 = vmatpush.msrb.mxu0 %v799_v60  ;;  %v763_v35 = vld [vmem:[#allocation9 + $0x410] sm:$0xff]  ;;  %v756_v55 = vld [vmem:[#allocation9 + $0x3d8] sm:$0xff] }
 0x21f   :  { %1105 = vmatpush.msrb.mxu1 %v831_v61  ;;  %967 = vmatmul.f32.vlgmr.msra.gmra.mxu3 %v3699_v26  ;;  %v643_v37 = vld [vmem:[#allocation9 + $0x50] sm:$0xff]  ;;  %v820_v56 = vld [vmem:[#allocation9 + $0x5d8] sm:$0xff] }
 0x220   :  { %2615 = vmatmul.msk.f32.vlgmr.msra.gmra.mxu2 %vm867_vm5, %v3707_v45  ;;  %1055 = vmatpush.msrb.mxu3 %v743_v62  ;;  %v707_v39 = vld [vmem:[#allocation9 + $0x250] sm:$0xff]  ;;  %v840_v57 = vld [vmem:[#allocation9 + $0x678] sm:$0xff] }
 0x221   :  { %1035 = vmatpush.msrb.mxu2 %v679_v63  ;;  %1078 = vmatpush.msrb.mxu0 %v795_v0  ;;  %v639_v41 = vld [vmem:[#allocation9 + $0x30] sm:$0xff]  ;;  %v644_v58 = vld [vmem:[#allocation9 + $0x58] sm:$0xff] }
 0x222   :  { %1106 = vmatpush.msrb.mxu1 %v827_v1  ;;  %1056 = vmatpush.msrb.mxu3 %v739_v2  ;;  %v703_v43 = vld [vmem:[#allocation9 + $0x230] sm:$0xff]  ;;  %v752_v59 = vld [vmem:[#allocation9 + $0x3b8] sm:$0xff] }
 0x223   :  { %1036 = vmatpush.msrb.mxu2 %v675_v4  ;;  %1079 = vmatpush.msrb.mxu0 %v791_v5  ;;  %v635_v47 = vld [vmem:[#allocation9 + $0x10] sm:$0xff]  ;;  %v816_v60 = vld [vmem:[#allocation9 + $0x5b8] sm:$0xff] }
 0x224   :  { %1111 = vmatpush.msra.mxu1 %v696_v3  ;;  %1057 = vmatpush.msrb.mxu3 %v735_v8  ;;  %v699_v49 = vld [vmem:[#allocation9 + $0x210] sm:$0xff]  ;;  %v836_v61 = vld [vmem:[#allocation9 + $0x658] sm:$0xff]  ;;  %v1251_v8 = vld [vmem:[#allocation12 + $0x1e0] sm:$0xff] }
 0x225   :  { %2616 = vmatmul.msk.f32.vlgmr.msrb.gmra.mxu1 %vm867_vm5, %v3707_v45  ;;  %1037 = vmatpush.msrb.mxu2 %v671_v7  ;;  %v640_v62 = vld [vmem:[#allocation9 + $0x38] sm:$0xff] }
 0x226   :  { %1112 = vmatpush.msra.mxu1 %v692_v6  ;;  %1080 = vmatpush.msrb.mxu0 %v787_v9  ;;  %v748_v63 = vld [vmem:[#allocation9 + $0x398] sm:$0xff]  ;;  %v1315_v9 = vld [vmem:[#allocation12 + $0x3e0] sm:$0xff] }
 0x227   :  { %1038 = vmatpush.msrb.mxu2 %v667_v11  ;;  %1058 = vmatpush.msrb.mxu3 %v731_v12  ;;  %v812_v0 = vld [vmem:[#allocation9 + $0x598] sm:$0xff]  ;;  %v1247_v12 = vld [vmem:[#allocation12 + $0x1c0] sm:$0xff] }
 0x228   :  { %1113 = vmatpush.msra.mxu1 %v688_v10  ;;  %1081 = vmatpush.msrb.mxu0 %v783_v13  ;;  %v832_v1 = vld [vmem:[#allocation9 + $0x638] sm:$0xff]  ;;  %v1311_v13 = vld [vmem:[#allocation12 + $0x3c0] sm:$0xff] }
 0x229   :  { %987 = vmatmul.f32.vlgmr.msra.gmra.mxu0 %v3701_v27  ;;  %1039 = vmatpush.msrb.mxu2 %v663_v15  ;;  %v636_v2 = vld [vmem:[#allocation9 + $0x18] sm:$0xff] }
 0x22a   :  { %1114 = vmatpush.msra.mxu1 %v684_v14  ;;  %1059 = vmatpush.msrb.mxu3 %v727_v16  ;;  %v744_v3 = vld [vmem:[#allocation9 + $0x378] sm:$0xff]  ;;  %v1243_v16 = vld [vmem:[#allocation12 + $0x1a0] sm:$0xff] }
 0x22b   :  { %1082 = vmatpush.msrb.mxu0 %v779_v17  ;;  %1040 = vmatpush.msrb.mxu2 %v659_v19  ;;  %v808_v4 = vld [vmem:[#allocation9 + $0x578] sm:$0xff]  ;;  %v1307_v17 = vld [vmem:[#allocation12 + $0x3a0] sm:$0xff] }
 0x22c   :  { %1115 = vmatpush.msra.mxu1 %v680_v18  ;;  %1060 = vmatpush.msrb.mxu3 %v723_v20  ;;  %v828_v5 = vld [vmem:[#allocation9 + $0x618] sm:$0xff] }
 0x22d   :  { %1083 = vmatpush.msrb.mxu0 %v775_v21  ;;  %1041 = vmatpush.msrb.mxu2 %v655_v23  ;;  %v740_v6 = vld [vmem:[#allocation9 + $0x358] sm:$0xff]  ;;  %v1299_v23 = vld [vmem:[#allocation12 + $0x360] sm:$0xff] }
 0x22e   :  { %1116 = vmatpush.msra.mxu1 %v676_v22  ;;  %1061 = vmatpush.msrb.mxu3 %v719_v24  ;;  %v804_v7 = vld [vmem:[#allocation9 + $0x558] sm:$0xff]  ;;  %v1235_v22 = vld [vmem:[#allocation12 + $0x160] sm:$0xff] }
 0x22f   :  { %1084 = vmatpush.msrb.mxu0 %v771_v25  ;;  %1042 = vmatpush.msrb.mxu2 %v651_v29  ;;  %v736_v10 = vld [vmem:[#allocation9 + $0x338] sm:$0xff]  ;;  %v1295_v29 = vld [vmem:[#allocation12 + $0x340] sm:$0xff] }
 0x230   :  { %1117 = vmatpush.msra.mxu1 %v672_v28  ;;  %1062 = vmatpush.msrb.mxu3 %v715_v30  ;;  %v800_v11 = vld [vmem:[#allocation9 + $0x538] sm:$0xff]  ;;  %v1231_v28 = vld [vmem:[#allocation12 + $0x140] sm:$0xff] }
 0x231   :  { %1085 = vmatpush.msrb.mxu0 %v767_v31  ;;  %1043 = vmatpush.msrb.mxu2 %v647_v33  ;;  %v732_v14 = vld [vmem:[#allocation9 + $0x318] sm:$0xff]  ;;  %v1291_v33 = vld [vmem:[#allocation12 + $0x320] sm:$0xff] }
 0x232   :  { %1118 = vmatpush.msra.mxu1 %v668_v32  ;;  %1063 = vmatpush.msrb.mxu3 %v711_v34  ;;  %v796_v15 = vld [vmem:[#allocation9 + $0x518] sm:$0xff]  ;;  %v1227_v32 = vld [vmem:[#allocation12 + $0x120] sm:$0xff] }
 0x233   :  { %1086 = vmatpush.msrb.mxu0 %v763_v35  ;;  %1044 = vmatpush.msrb.mxu2 %v643_v37  ;;  %v728_v18 = vld [vmem:[#allocation9 + $0x2f8] sm:$0xff]  ;;  %v1287_v37 = vld [vmem:[#allocation12 + $0x300] sm:$0xff] }
 0x234   :  { %1119 = vmatpush.msra.mxu1 %v664_v36  ;;  %1087 = vmatmul.f32.vlgmr.msrb.gmra.mxu0 %v3705_v44  ;;  %v792_v19 = vld [vmem:[#allocation9 + $0x4f8] sm:$0xff]  ;;  %v1223_v36 = vld [vmem:[#allocation12 + $0x100] sm:$0xff] }
 0x235   :  { %1179 = vmatpush.msra.mxu0 %v856_v38  ;;  %1064 = vmatpush.msrb.mxu3 %v707_v39  ;;  %v724_v20 = vld [vmem:[#allocation9 + $0x2d8] sm:$0xff] }
 0x236   :  { %1120 = vmatpush.msra.mxu1 %v660_v40  ;;  %1045 = vmatpush.msrb.mxu2 %v639_v41  ;;  %v788_v21 = vld [vmem:[#allocation9 + $0x4d8] sm:$0xff]  ;;  %v1219_v40 = vld [vmem:[#allocation12 + $0xe0] sm:$0xff] }
 0x237   :  { %1180 = vmatpush.msra.mxu0 %v852_v42  ;;  %1065 = vmatpush.msrb.mxu3 %v703_v43  ;;  %v720_v24 = vld [vmem:[#allocation9 + $0x2b8] sm:$0xff]  ;;  %v1283_v41 = vld [vmem:[#allocation12 + $0x2e0] sm:$0xff] }
 0x238   :  { %1121 = vmatpush.msra.mxu1 %v656_v46  ;;  %1046 = vmatpush.msrb.mxu2 %v635_v47  ;;  %v784_v25 = vld [vmem:[#allocation9 + $0x4b8] sm:$0xff]  ;;  %v1215_v46 = vld [vmem:[#allocation12 + $0xc0] sm:$0xff] }
 0x239   :  { %1181 = vmatpush.msra.mxu0 %v848_v48  ;;  %1066 = vmatpush.msrb.mxu3 %v699_v49  ;;  %v716_v30 = vld [vmem:[#allocation9 + $0x298] sm:$0xff]  ;;  %v1279_v47 = vld [vmem:[#allocation12 + $0x2c0] sm:$0xff] }
 0x23a   :  { %1047 = vmatmul.f32.vlgmr.msrb.gmra.mxu2 %v3699_v26  ;;  %1067 = vmatmul.f32.vlgmr.msrb.gmra.mxu3 %v3701_v27  ;;  %v780_v31 = vld [vmem:[#allocation9 + $0x498] sm:$0xff] }
 0x23b   :  { %1122 = vmatpush.msra.mxu1 %v652_v50  ;;  %1131 = vmatpush.msra.mxu2 %v760_v51  ;;  %v712_v34 = vld [vmem:[#allocation9 + $0x278] sm:$0xff]  ;;  %v1211_v50 = vld [vmem:[#allocation12 + $0xa0] sm:$0xff] }
 0x23c   :  { %1151 = vmatpush.msra.mxu3 %v824_v52  ;;  %1182 = vmatpush.msra.mxu0 %v844_v53  ;;  %v776_v35 = vld [vmem:[#allocation9 + $0x478] sm:$0xff]  ;;  %v1207_v51 = vld [vmem:[#allocation12 + $0x80] sm:$0xff] }
 0x23d   :  { %1123 = vmatpush.msra.mxu1 %v648_v54  ;;  %1132 = vmatpush.msra.mxu2 %v756_v55  ;;  %v708_v38 = vld [vmem:[#allocation9 + $0x258] sm:$0xff]  ;;  %v1203_v52 = vld [vmem:[#allocation12 + $0x60] sm:$0xff] }
 0x23e   :  { %1152 = vmatpush.msra.mxu3 %v820_v56  ;;  %1183 = vmatpush.msra.mxu0 %v840_v57  ;;  %v772_v39 = vld [vmem:[#allocation9 + $0x458] sm:$0xff]  ;;  %v1199_v53 = vld [vmem:[#allocation12 + $0x40] sm:$0xff]  ;;  %v1316_v56 = vld [vmem:[#allocation12 + $0x3e8] sm:$0xff] }
 0x23f   :  { %1124 = vmatpush.msra.mxu1 %v644_v58  ;;  %1133 = vmatpush.msra.mxu2 %v752_v59  ;;  %v704_v42 = vld [vmem:[#allocation9 + $0x238] sm:$0xff]  ;;  %v1195_v54 = vld [vmem:[#allocation12 + $0x20] sm:$0xff]  ;;  %v1312_v57 = vld [vmem:[#allocation12 + $0x3c8] sm:$0xff] }
 0x240   :  { %1153 = vmatpush.msra.mxu3 %v816_v60  ;;  %1184 = vmatpush.msra.mxu0 %v836_v61  ;;  %v768_v43 = vld [vmem:[#allocation9 + $0x438] sm:$0xff]  ;;  %v1191_v55 = vld [vmem:[#allocation12] sm:$0xff]  ;;  %v1308_v58 = vld [vmem:[#allocation12 + $0x3a8] sm:$0xff] }
 0x241   :  { %1125 = vmatpush.msra.mxu1 %v640_v62  ;;  %1134 = vmatpush.msra.mxu2 %v748_v63  ;;  %v700_v48 = vld [vmem:[#allocation9 + $0x218] sm:$0xff]  ;;  %v1304_v59 = vld [vmem:[#allocation12 + $0x388] sm:$0xff]  ;;  %v1271_v60 = vld [vmem:[#allocation12 + $0x280] sm:$0xff] }
 0x242   :  { %1154 = vmatpush.msra.mxu3 %v812_v0  ;;  %1185 = vmatpush.msra.mxu0 %v832_v1  ;;  %v764_v49 = vld [vmem:[#allocation9 + $0x418] sm:$0xff]  ;;  %v1296_v61 = vld [vmem:[#allocation12 + $0x348] sm:$0xff]  ;;  %v1267_v62 = vld [vmem:[#allocation12 + $0x260] sm:$0xff] }
 0x243   :  { %1126 = vmatpush.msra.mxu1 %v636_v2  ;;  %1135 = vmatpush.msra.mxu2 %v744_v3  ;;  %v1379_v63 = vld [vmem:[#allocation12 + $0x5e0] sm:$0xff]  ;;  %v1292_v0 = vld [vmem:[#allocation12 + $0x328] sm:$0xff] }
 0x244   :  { %1155 = vmatpush.msra.mxu3 %v808_v4  ;;  %1186 = vmatpush.msra.mxu0 %v828_v5  ;;  %v1263_v1 = vld [vmem:[#allocation12 + $0x240] sm:$0xff]  ;;  %v1288_v2 = vld [vmem:[#allocation12 + $0x308] sm:$0xff] }
 0x245   :  { %1127 = vmatmul.f32.vlgmr.msra.gmra.mxu1 %v3699_v26  ;;  %2617 = vmatmul.msk.f32.vlgmr.msra.gmra.mxu0 %vm867_vm5, %v3707_v45  ;;  %v1239_v26 = vld [vmem:[#allocation12 + $0x180] sm:$0xff]  ;;  %v1284_v3 = vld [vmem:[#allocation12 + $0x2e8] sm:$0xff] }
 0x246   :  { %1136 = vmatpush.msra.mxu2 %v740_v6  ;;  %1156 = vmatpush.msra.mxu3 %v804_v7  ;;  %v1303_v45 = vld [vmem:[#allocation12 + $0x380] sm:$0xff]  ;;  %v1280_v5 = vld [vmem:[#allocation12 + $0x2c8] sm:$0xff] }
 0x247   :  { %1428 = vmatpush.msrb.mxu0 %v1251_v8  ;;  %1448 = vmatpush.msrb.mxu1 %v1315_v9  ;;  %v1375_v4 = vld [vmem:[#allocation12 + $0x5c0] sm:$0xff]  ;;  %v1276_v9 = vld [vmem:[#allocation12 + $0x2a8] sm:$0xff] }
 0x248   :  { %1137 = vmatpush.msra.mxu2 %v736_v10  ;;  %1157 = vmatpush.msra.mxu3 %v800_v11  ;;  %v1259_v6 = vld [vmem:[#allocation12 + $0x220] sm:$0xff]  ;;  %v1272_v11 = vld [vmem:[#allocation12 + $0x288] sm:$0xff] }
 0x249   :  { %1429 = vmatpush.msrb.mxu0 %v1247_v12  ;;  %1449 = vmatpush.msrb.mxu1 %v1311_v13  ;;  %v1371_v7 = vld [vmem:[#allocation12 + $0x5a0] sm:$0xff]  ;;  %v1380_v12 = vld [vmem:[#allocation12 + $0x5e8] sm:$0xff] }
 0x24a   :  { %1138 = vmatpush.msra.mxu2 %v732_v14  ;;  %1158 = vmatpush.msra.mxu3 %v796_v15  ;;  %v1255_v8 = vld [vmem:[#allocation12 + $0x200] sm:$0xff]  ;;  %v1268_v14 = vld [vmem:[#allocation12 + $0x268] sm:$0xff] }
 0x24b   :  { %1430 = vmatpush.msrb.mxu0 %v1243_v16  ;;  %1450 = vmatpush.msrb.mxu1 %v1307_v17  ;;  %v1367_v10 = vld [vmem:[#allocation12 + $0x580] sm:$0xff]  ;;  %v1376_v15 = vld [vmem:[#allocation12 + $0x5c8] sm:$0xff] }
 0x24c   :  { %1139 = vmatpush.msra.mxu2 %v728_v18  ;;  %1159 = vmatpush.msra.mxu3 %v792_v19  ;;  %v1363_v13 = vld [vmem:[#allocation12 + $0x560] sm:$0xff]  ;;  %v1264_v17 = vld [vmem:[#allocation12 + $0x248] sm:$0xff] }
 0x24d   :  { %1431 = vmatpush.msrb.mxu0 %v1239_v26  ;;  %1451 = vmatpush.msrb.mxu1 %v1303_v45  ;;  %v1359_v16 = vld [vmem:[#allocation12 + $0x540] sm:$0xff]  ;;  %v1372_v18 = vld [vmem:[#allocation12 + $0x5a8] sm:$0xff] }
 0x24e   :  { %1140 = vmatpush.msra.mxu2 %v724_v20  ;;  %1160 = vmatpush.msra.mxu3 %v788_v21  ;;  %v1355_v19 = vld [vmem:[#allocation12 + $0x520] sm:$0xff]  ;;  %v1260_v26 = vld [vmem:[#allocation12 + $0x228] sm:$0xff] }
 0x24f   :  { %1432 = vmatpush.msrb.mxu0 %v1235_v22  ;;  %1452 = vmatpush.msrb.mxu1 %v1299_v23  ;;  %v1368_v45 = vld [vmem:[#allocation12 + $0x588] sm:$0xff]  ;;  %v1351_v20 = vld [vmem:[#allocation12 + $0x500] sm:$0xff] }
 0x250   :  { %1141 = vmatpush.msra.mxu2 %v720_v24  ;;  %1161 = vmatpush.msra.mxu3 %v784_v25  ;;  %v1256_v21 = vld [vmem:[#allocation12 + $0x208] sm:$0xff]  ;;  %v1347_v23 = vld [vmem:[#allocation12 + $0x4e0] sm:$0xff]  ;;  %v3727_v25 = vld [vmem:[#allocation10] sm:$0xf] }
 0x251   :  { %1433 = vmatpush.msrb.mxu0 %v1231_v28  ;;  %1453 = vmatpush.msrb.mxu1 %v1295_v29  ;;  %v1364_v22 = vld [vmem:[#allocation12 + $0x568] sm:$0xff]  ;;  %v1343_v28 = vld [vmem:[#allocation12 + $0x4c0] sm:$0xff] }
 0x252   :  { %1142 = vmatpush.msra.mxu2 %v716_v30  ;;  %1162 = vmatpush.msra.mxu3 %v780_v31  ;;  %v1360_v24 = vld [vmem:[#allocation12 + $0x548] sm:$0xff]  ;;  %v1339_v30 = vld [vmem:[#allocation12 + $0x4a0] sm:$0xff] }
 0x253   :  { %1434 = vmatpush.msrb.mxu0 %v1227_v32  ;;  %1454 = vmatpush.msrb.mxu1 %v1291_v33  ;;  %v1356_v29 = vld [vmem:[#allocation12 + $0x528] sm:$0xff]  ;;  %v1335_v32 = vld [vmem:[#allocation12 + $0x480] sm:$0xff] }
 0x254   :  { %1143 = vmatpush.msra.mxu2 %v712_v34  ;;  %1163 = vmatpush.msra.mxu3 %v776_v35  ;;  %v1352_v31 = vld [vmem:[#allocation12 + $0x508] sm:$0xff]  ;;  %v859_v34 = vperm.slane %v3727_v25, 0 }
 0x255   :  { %1435 = vmatpush.msrb.mxu0 %v1223_v36  ;;  %1455 = vmatpush.msrb.mxu1 %v1287_v37  ;;  %v1348_v33 = vld [vmem:[#allocation12 + $0x4e8] sm:$0xff]  ;;  %v1331_v36 = vld [vmem:[#allocation12 + $0x460] sm:$0xff] }
 0x256   :  { %1144 = vmatpush.msra.mxu2 %v708_v38  ;;  %1164 = vmatpush.msra.mxu3 %v772_v39  ;;  %v1344_v37 = vld [vmem:[#allocation12 + $0x4c8] sm:$0xff]  ;;  %v1327_v38 = vld [vmem:[#allocation12 + $0x440] sm:$0xff] }
 0x257   :  { %1436 = vmatpush.msrb.mxu0 %v1219_v40  ;;  %1456 = vmatpush.msrb.mxu1 %v1283_v41  ;;  %v1340_v39 = vld [vmem:[#allocation12 + $0x4a8] sm:$0xff]  ;;  %v1323_v41 = vld [vmem:[#allocation12 + $0x420] sm:$0xff] }
 0x258   :  { %1145 = vmatpush.msra.mxu2 %v704_v42  ;;  %1165 = vmatpush.msra.mxu3 %v768_v43  ;;  %v1336_v42 = vld [vmem:[#allocation12 + $0x488] sm:$0xff]  ;;  %v1411_v43 = vld [vmem:[#allocation12 + $0x6e0] sm:$0xff] }
 0x259   :  { %1437 = vmatpush.msrb.mxu0 %v1215_v46  ;;  %1457 = vmatpush.msrb.mxu1 %v1279_v47  ;;  %v1407_v46 = vld [vmem:[#allocation12 + $0x6c0] sm:$0xff] }
 0x25a   :  { %1146 = vmatpush.msra.mxu2 %v700_v48  ;;  %1166 = vmatpush.msra.mxu3 %v764_v49  ;;  %v1319_v48 = vld [vmem:[#allocation12 + $0x400] sm:$0xff]  ;;  %v1332_v49 = vld [vmem:[#allocation12 + $0x468] sm:$0xff] }
 0x25b   :  { %1147 = vmatmul.f32.vlgmr.msra.gmra.mxu2 %v3701_v27  ;;  %1167 = vmatmul.f32.vlgmr.msra.gmra.mxu3 %v3705_v44  ;;  %v1300_v27 = vld [vmem:[#allocation12 + $0x368] sm:$0xff]  ;;  %v1275_v44 = vld [vmem:[#allocation12 + $0x2a0] sm:$0xff] }
 0x25c   :  { %1438 = vmatpush.msrb.mxu0 %v1211_v50  ;;  %1458 = vmatpush.msrb.mxu1 %v1275_v44  ;;  %v1320_v44 = vld [vmem:[#allocation12 + $0x408] sm:$0xff] }
 0x25d   :  { %1468 = vmatpush.msrb.mxu2 %v1379_v63  ;;  %1496 = vmatpush.msrb.mxu3 %v1411_v43  ;;  %v1395_v63 = vld [vmem:[#allocation12 + $0x660] sm:$0xff]  ;;  %v1393_v43 = vld [vmem:[#allocation12 + $0x650] sm:$0xff] }
 0x25e   :  { %1439 = vmatpush.msrb.mxu0 %v1207_v51  ;;  %1459 = vmatpush.msrb.mxu1 %v1271_v60  ;;  %v1412_v51 = vld [vmem:[#allocation12 + $0x6e8] sm:$0xff] }
 0x25f   :  { %1469 = vmatpush.msrb.mxu2 %v1375_v4  ;;  %1497 = vmatpush.msrb.mxu3 %v1407_v46  ;;  %v1396_v4 = vld [vmem:[#allocation12 + $0x668] sm:$0xff] }
 0x260   :  { %1440 = vmatpush.msrb.mxu0 %v1203_v52  ;;  %1460 = vmatpush.msrb.mxu1 %v1267_v62  ;;  %v1403_v52 = vld [vmem:[#allocation12 + $0x6a0] sm:$0xff]  ;;  %v1377_v62 = vld [vmem:[#allocation12 + $0x5d0] sm:$0xff]  ;;  %v1216_v46 = vld [vmem:[#allocation12 + $0xc8] sm:$0xff] }
 0x261   :  { %1470 = vmatpush.msrb.mxu2 %v1371_v7  ;;  %1498 = vmatpush.msrb.mxu3 %v1403_v52  ;;  %v1387_v7 = vld [vmem:[#allocation12 + $0x620] sm:$0xff]  ;;  %v861_v52 = vperm.slane %v3727_v25, 2 }
 0x262   :  { %1441 = vmatpush.msrb.mxu0 %v1199_v53  ;;  %1461 = vmatpush.msrb.mxu1 %v1263_v1  ;;  %v1328_v53 = vld [vmem:[#allocation12 + $0x448] sm:$0xff]  ;;  %v860_v1 = vperm.slane %v3727_v25, 1 }
 0x263   :  { %1471 = vmatpush.msrb.mxu2 %v1367_v10  ;;  %v1365_v10 = vld [vmem:[#allocation12 + $0x570] sm:$0xff] }
 0x264   :  { %1442 = vmatpush.msrb.mxu0 %v1195_v54  ;;  %1462 = vmatpush.msrb.mxu1 %v1259_v6  ;;  %v1408_v54 = vld [vmem:[#allocation12 + $0x6c8] sm:$0xff]  ;;  %v1369_v6 = vld [vmem:[#allocation12 + $0x590] sm:$0xff] }
 0x265   :  { %1472 = vmatpush.msrb.mxu2 %v1363_v13  ;;  %v1252_v13 = vld [vmem:[#allocation12 + $0x1e8] sm:$0xff] }
 0x266   :  { %1443 = vmatpush.msrb.mxu0 %v1191_v55  ;;  %1463 = vmatpush.msrb.mxu1 %v1255_v8  ;;  %v1399_v55 = vld [vmem:[#allocation12 + $0x680] sm:$0xff]  ;;  %v1392_v8 = vld [vmem:[#allocation12 + $0x648] sm:$0xff] }
 0x267   :  { %1473 = vmatpush.msrb.mxu2 %v1359_v16  ;;  %1499 = vmatpush.msrb.mxu3 %v1399_v55  ;;  %v1361_v16 = vld [vmem:[#allocation12 + $0x550] sm:$0xff]  ;;  %v1414_v55 = vld [vmem:[#allocation12 + $0x6f8] sm:$0xff] }
 0x268   :  { %1528 = vmatpush.msra.mxu0 %v1316_v56  ;;  %1548 = vmatpush.msra.mxu1 %v1380_v12  ;;  %v1388_v12 = vld [vmem:[#allocation12 + $0x628] sm:$0xff] }
 0x269   :  { %1474 = vmatpush.msrb.mxu2 %v1355_v19  ;;  %1500 = vmatpush.msrb.mxu3 %v1395_v63  ;;  %v1244_v19 = vld [vmem:[#allocation12 + $0x1a8] sm:$0xff] }
 0x26a   :  { %1529 = vmatpush.msra.mxu0 %v1312_v57  ;;  %1549 = vmatpush.msra.mxu1 %v1376_v15 }
 0x26b   :  { %1475 = vmatpush.msrb.mxu2 %v1351_v20 }
 0x26c   :  { %1530 = vmatpush.msra.mxu0 %v1308_v58  ;;  %1550 = vmatpush.msra.mxu1 %v1372_v18  ;;  %v1324_v58 = vld [vmem:[#allocation12 + $0x428] sm:$0xff] }
 0x26d   :  { %1476 = vmatpush.msrb.mxu2 %v1347_v23 }
 0x26e   :  { %1531 = vmatpush.msra.mxu0 %v1304_v59  ;;  %1551 = vmatpush.msra.mxu1 %v1368_v45  ;;  %v1357_v45 = vld [vmem:[#allocation12 + $0x530] sm:$0xff] }
 0x26f   :  { %1477 = vmatpush.msrb.mxu2 %v1343_v28  ;;  %v1413_v28 = vld [vmem:[#allocation12 + $0x6f0] sm:$0xff] }
 0x270   :  { %1532 = vmatpush.msra.mxu0 %v1300_v27  ;;  %1552 = vmatpush.msra.mxu1 %v1364_v22  ;;  %v1404_v27 = vld [vmem:[#allocation12 + $0x6a8] sm:$0xff] }
 0x271   :  { %1478 = vmatpush.msrb.mxu2 %v1339_v30  ;;  %v1349_v30 = vld [vmem:[#allocation12 + $0x4f0] sm:$0xff] }
 0x272   :  { %1533 = vmatpush.msra.mxu0 %v1296_v61  ;;  %1553 = vmatpush.msra.mxu1 %v1360_v24  ;;  %v1381_v61 = vld [vmem:[#allocation12 + $0x5f0] sm:$0xff] }
 0x273   :  { %1479 = vmatpush.msrb.mxu2 %v1335_v32  ;;  %v1353_v24 = vld [vmem:[#allocation12 + $0x510] sm:$0xff]  ;;  %v1232_v32 = vld [vmem:[#allocation12 + $0x148] sm:$0xff] }
 0x274   :  { %1534 = vmatpush.msra.mxu0 %v1292_v0  ;;  %1554 = vmatpush.msra.mxu1 %v1356_v29  ;;  %v1400_v0 = vld [vmem:[#allocation12 + $0x688] sm:$0xff] }
 0x275   :  { %1480 = vmatpush.msrb.mxu2 %v1331_v36  ;;  %v1236_v29 = vld [vmem:[#allocation12 + $0x168] sm:$0xff]  ;;  %v1341_v36 = vld [vmem:[#allocation12 + $0x4b0] sm:$0xff] }
 0x276   :  { %1535 = vmatpush.msra.mxu0 %v1288_v2  ;;  %1555 = vmatpush.msra.mxu1 %v1352_v31  ;;  %v1373_v2 = vld [vmem:[#allocation12 + $0x5b0] sm:$0xff] }
 0x277   :  { %1481 = vmatpush.msrb.mxu2 %v1327_v38  ;;  %v1409_v31 = vld [vmem:[#allocation12 + $0x6d0] sm:$0xff]  ;;  %v1224_v38 = vld [vmem:[#allocation12 + $0x108] sm:$0xff] }
 0x278   :  { %1536 = vmatpush.msra.mxu0 %v1284_v3  ;;  %1556 = vmatpush.msra.mxu1 %v1348_v33  ;;  %v1391_v3 = vld [vmem:[#allocation12 + $0x640] sm:$0xff]  ;;  %v1345_v33 = vld [vmem:[#allocation12 + $0x4d0] sm:$0xff] }
 0x279   :  { %1482 = vmatpush.msrb.mxu2 %v1323_v41  ;;  %1501 = vmatpush.msrb.mxu3 %v1391_v3  ;;  %v1220_v41 = vld [vmem:[#allocation12 + $0xe8] sm:$0xff] }
 0x27a   :  { %1537 = vmatpush.msra.mxu0 %v1280_v5  ;;  %1557 = vmatpush.msra.mxu1 %v1344_v37  ;;  %v1401_v37 = vld [vmem:[#allocation12 + $0x690] sm:$0xff] }
 0x27b   :  { %1483 = vmatpush.msrb.mxu2 %v1319_v48  ;;  %1502 = vmatpush.msrb.mxu3 %v1387_v7  ;;  %v1389_v48 = vld [vmem:[#allocation12 + $0x630] sm:$0xff]  ;;  %v1254_v7 = vld [vmem:[#allocation12 + $0x1f8] sm:$0xff] }
 0x27c   :  { %1538 = vmatpush.msra.mxu0 %v1276_v9  ;;  %1558 = vmatpush.msra.mxu1 %v1340_v39  ;;  %v1337_v39 = vld [vmem:[#allocation12 + $0x490] sm:$0xff] }
 0x27d   :  { %1576 = vmatpush.msra.mxu2 %v1412_v51  ;;  %v1385_v51 = vld [vmem:[#allocation12 + $0x610] sm:$0xff] }
 0x27e   :  { %1539 = vmatpush.msra.mxu0 %v1272_v11  ;;  %1559 = vmatpush.msra.mxu1 %v1336_v42  ;;  %v1383_v11 = vld [vmem:[#allocation12 + $0x600] sm:$0xff]  ;;  %v1333_v42 = vld [vmem:[#allocation12 + $0x470] sm:$0xff] }
 0x27f   :  { %1577 = vmatpush.msra.mxu2 %v1408_v54  ;;  %1503 = vmatpush.msrb.mxu3 %v1383_v11  ;;  %v1321_v54 = vld [vmem:[#allocation12 + $0x410] sm:$0xff]  ;;  %v1394_v11 = vld [vmem:[#allocation12 + $0x658] sm:$0xff] }
 0x280   :  { %1540 = vmatpush.msra.mxu0 %v1268_v14  ;;  %1560 = vmatpush.msra.mxu1 %v1332_v49  ;;  %v1384_v14 = vld [vmem:[#allocation12 + $0x608] sm:$0xff] }
 0x281   :  { %1578 = vmatpush.msra.mxu2 %v1404_v27  ;;  %1508 = vmatpush.msra.mxu3 %v1252_v13  ;;  %v1212_v49 = vld [vmem:[#allocation12 + $0xa8] sm:$0xff]  ;;  %v1246_v13 = vld [vmem:[#allocation12 + $0x1b8] sm:$0xff] }
 0x282   :  { %1541 = vmatpush.msra.mxu0 %v1264_v17  ;;  %1561 = vmatpush.msra.mxu1 %v1328_v53  ;;  %v1248_v17 = vld [vmem:[#allocation12 + $0x1c8] sm:$0xff] }
 0x283   :  { %1579 = vmatpush.msra.mxu2 %v1400_v0  ;;  %1509 = vmatpush.msra.mxu3 %v1248_v17  ;;  %v1208_v53 = vld [vmem:[#allocation12 + $0x88] sm:$0xff]  ;;  %v1386_v17 = vld [vmem:[#allocation12 + $0x618] sm:$0xff] }
 0x284   :  { %1542 = vmatpush.msra.mxu0 %v1260_v26  ;;  %1562 = vmatpush.msra.mxu1 %v1324_v58  ;;  %v1196_v0 = vld [vmem:[#allocation12 + $0x28] sm:$0xff] }
 0x285   :  { %1580 = vmatpush.msra.mxu2 %v1396_v4  ;;  %1510 = vmatpush.msra.mxu3 %v1244_v19  ;;  %v1192_v4 = vld [vmem:[#allocation12 + $0x8] sm:$0xff]  ;;  %v1238_v19 = vld [vmem:[#allocation12 + $0x178] sm:$0xff] }
 0x286   :  { %1543 = vmatpush.msra.mxu0 %v1256_v21  ;;  %1563 = vmatpush.msra.mxu1 %v1320_v44  ;;  %v1240_v21 = vld [vmem:[#allocation12 + $0x188] sm:$0xff] }
 0x287   :  { %1581 = vmatpush.msra.mxu2 %v1392_v8  ;;  %1511 = vmatpush.msra.mxu3 %v1240_v21  ;;  %v1200_v44 = vld [vmem:[#allocation12 + $0x48] sm:$0xff]  ;;  %v1398_v8 = vld [vmem:[#allocation12 + $0x678] sm:$0xff] }
 0x288   :  { %v1230_v21 = vld [vmem:[#allocation12 + $0x138] sm:$0xff] }
 0x289   :  { %1582 = vmatpush.msra.mxu2 %v1388_v12  ;;  %1512 = vmatpush.msra.mxu3 %v1236_v29  ;;  %v1245_v12 = vld [vmem:[#allocation12 + $0x1b0] sm:$0xff]  ;;  %v1222_v29 = vld [vmem:[#allocation12 + $0xf8] sm:$0xff] }
 0x28b   :  { %1583 = vmatpush.msra.mxu2 %v1384_v14  ;;  %1513 = vmatpush.msra.mxu3 %v1232_v32  ;;  %v1390_v14 = vld [vmem:[#allocation12 + $0x638] sm:$0xff]  ;;  %v1213_v32 = vld [vmem:[#allocation12 + $0xb0] sm:$0xff] }
 0x28c   :  { %v888_v35 = vpop.f32.mrf.mxu0  ;;  %v908_v47 = vpop.f32.mrf.mxu1 }
 0x28d   :  { %v889_v40 = vadd.f32 %v888_v35, %v859_v34  ;;  %v1405_v34 = vld [vmem:[#allocation12 + $0x6b0] sm:$0xff]  ;;  %v1228_v35 = vld [vmem:[#allocation12 + $0x128] sm:$0xff] }
 0x28e   :  { %1514 = vmatpush.msra.mxu3 %v1228_v35 }
 0x28f   :  { %v909_v50 = vadd.f32 %v908_v47, %v889_v40  ;;  %v1397_v40 = vld [vmem:[#allocation12 + $0x670] sm:$0xff] }
 0x290   :  { %1515 = vmatpush.msra.mxu3 %v1224_v38  ;;  %v1329_v47 = vld [vmem:[#allocation12 + $0x450] sm:$0xff] }
 0x291   :  { %v1205_v38 = vld [vmem:[#allocation12 + $0x70] sm:$0xff] }
 0x292   :  { %1516 = vmatpush.msra.mxu3 %v1220_v41 }
 0x294   :  { %1517 = vmatpush.msra.mxu3 %v1216_v46  ;;  %v1202_v46 = vld [vmem:[#allocation12 + $0x58] sm:$0xff] }
 0x296   :  { %v1008_v26 = vpop.f32.mrf.mxu1  ;;  %1518 = vmatpush.msra.mxu3 %v1212_v49  ;;  %v1198_v49 = vld [vmem:[#allocation12 + $0x38] sm:$0xff] }
 0x298   :  { %1519 = vmatpush.msra.mxu3 %v1208_v53  ;;  %v1193_v53 = vld [vmem:[#allocation12 + $0x10] sm:$0xff] }
 0x299   :  { %v928_v56 = vpop.f32.mrf.mxu2  ;;  %v948_v57 = vpop.f32.mrf.mxu3 }
 0x29a   :  { %v929_v59 = vadd.f32 %v928_v56, %v909_v50  ;;  %v1325_v50 = vld [vmem:[#allocation12 + $0x430] sm:$0xff] }
 0x29c   :  { %v3730_v60 = vadd.f32 %v948_v57, %v929_v59  ;;  %v1204_v57 = vld [vmem:[#allocation12 + $0x68] sm:$0xff]  ;;  %v1410_v59 = vld [vmem:[#allocation12 + $0x6d8] sm:$0xff] }
 0x29d   :  { %1520 = vmatpush.msra.mxu3 %v1204_v57  ;;  %v1309_v57 = vld [vmem:[#allocation12 + $0x3b0] sm:$0xff] }
 0x29e   :  { %1444 = vmatmul.f32.vlgmr.msrb.gmra.mxu0 %v3730_v60 }
 0x29f   :  { %1628 = vmatpush.msrb.mxu0 %v1381_v61  ;;  %1521 = vmatpush.msra.mxu3 %v1200_v44  ;;  %v1301_v44 = vld [vmem:[#allocation12 + $0x370] sm:$0xff] }
 0x2a1   :  { %1629 = vmatpush.msrb.mxu0 %v1377_v62  ;;  %v1406_v62 = vld [vmem:[#allocation12 + $0x6b8] sm:$0xff]  ;;  %1522 = vmatpush.msra.mxu3 %v1196_v0  ;;  %v1293_v0 = vld [vmem:[#allocation12 + $0x330] sm:$0xff] }
 0x2a2   :  { %v968_v5 = vpop.f32.mrf.mxu3  ;;  %v1108_v3 = vpop.f32.mrf.mxu1 }
 0x2a3   :  { %v969_v9 = vadd.f32 %v968_v5, %v860_v1  ;;  %1630 = vmatpush.msrb.mxu0 %v1373_v2  ;;  %v1028_v22 = vpop.f32.mrf.mxu2  ;;  %v1402_v2 = vld [vmem:[#allocation12 + $0x698] sm:$0xff]  ;;  %1523 = vmatpush.msra.mxu3 %v1192_v4  ;;  %v1285_v4 = vld [vmem:[#allocation12 + $0x2f0] sm:$0xff] }
 0x2a5   :  { %1631 = vmatpush.msrb.mxu0 %v1369_v6  ;;  %v1253_v6 = vld [vmem:[#allocation12 + $0x1f0] sm:$0xff] }
 0x2a6   :  { %v988_v15 = vpop.f32.mrf.mxu0 }
 0x2a7   :  { %v989_v18 = vadd.f32 %v988_v15, %v969_v9  ;;  %1632 = vmatpush.msrb.mxu0 %v1365_v10  ;;  %v1249_v9 = vld [vmem:[#allocation12 + $0x1d0] sm:$0xff]  ;;  %v1250_v10 = vld [vmem:[#allocation12 + $0x1d8] sm:$0xff] }
 0x2a8   :  { %v1241_v15 = vld [vmem:[#allocation12 + $0x190] sm:$0xff] }
 0x2a9   :  { %v1009_v20 = vadd.f32 %v1008_v26, %v989_v18  ;;  %1633 = vmatpush.msrb.mxu0 %v1361_v16  ;;  %v1242_v16 = vld [vmem:[#allocation12 + $0x198] sm:$0xff]  ;;  %v1237_v18 = vld [vmem:[#allocation12 + $0x170] sm:$0xff] }
 0x2aa   :  { %v1233_v26 = vld [vmem:[#allocation12 + $0x150] sm:$0xff] }
 0x2ab   :  { %v3734_v23 = vadd.f32 %v1028_v22, %v1009_v20  ;;  %1634 = vmatpush.msrb.mxu0 %v1357_v45  ;;  %v1234_v45 = vld [vmem:[#allocation12 + $0x158] sm:$0xff]  ;;  %v1229_v20 = vld [vmem:[#allocation12 + $0x130] sm:$0xff] }
 0x2ac   :  { %v1225_v22 = vld [vmem:[#allocation12 + $0x110] sm:$0xff] }
 0x2ad   :  { %1464 = vmatmul.f32.vlgmr.msrb.gmra.mxu1 %v3734_v23  ;;  %1544 = vmatmul.f32.vlgmr.msra.gmra.mxu0 %v3734_v23 }
 0x2ae   :  { %1635 = vmatpush.msrb.mxu0 %v1353_v24  ;;  %1656 = vmatpush.msrb.mxu1 %v1413_v28  ;;  %v1226_v24 = vld [vmem:[#allocation12 + $0x118] sm:$0xff]  ;;  %v1221_v28 = vld [vmem:[#allocation12 + $0xf0] sm:$0xff] }
 0x2b0   :  { %1636 = vmatpush.msrb.mxu0 %v1349_v30  ;;  %1657 = vmatpush.msrb.mxu1 %v1409_v31  ;;  %v1217_v30 = vld [vmem:[#allocation12 + $0xd0] sm:$0xff]  ;;  %v1218_v31 = vld [vmem:[#allocation12 + $0xd8] sm:$0xff] }
 0x2b1   :  { %v1088_v63 = vpop.f32.mrf.mxu0 }
 0x2b2   :  { %1637 = vmatpush.msrb.mxu0 %v1345_v33  ;;  %1658 = vmatpush.msrb.mxu1 %v1405_v34  ;;  %v862_v33 = vperm.slane %v3727_v25, 3  ;;  %v1214_v34 = vld [vmem:[#allocation12 + $0xb8] sm:$0xff]  ;;  %v1197_v25 = vld [vmem:[#allocation12 + $0x30] sm:$0xff] }
 0x2b4   :  { %1638 = vmatpush.msrb.mxu0 %v1341_v36  ;;  %1659 = vmatpush.msrb.mxu1 %v1401_v37  ;;  %v1209_v36 = vld [vmem:[#allocation12 + $0x90] sm:$0xff]  ;;  %v1210_v37 = vld [vmem:[#allocation12 + $0x98] sm:$0xff] }
 0x2b6   :  { %1639 = vmatpush.msrb.mxu0 %v1337_v39  ;;  %1660 = vmatpush.msrb.mxu1 %v1397_v40  ;;  %v1206_v40 = vld [vmem:[#allocation12 + $0x78] sm:$0xff] }
 0x2b8   :  { %1640 = vmatpush.msrb.mxu0 %v1333_v42  ;;  %1661 = vmatpush.msrb.mxu1 %v1393_v43  ;;  %v1201_v42 = vld [vmem:[#allocation12 + $0x50] sm:$0xff] }
 0x2ba   :  { %1641 = vmatpush.msrb.mxu0 %v1329_v47  ;;  %1662 = vmatpush.msrb.mxu1 %v1389_v48 }
 0x2bc   :  { %1642 = vmatpush.msrb.mxu0 %v1325_v50  ;;  %1663 = vmatpush.msrb.mxu1 %v1385_v51 }
 0x2bd   :  { %v1048_v56 = vpop.f32.mrf.mxu2  ;;  %v1068_v27 = vpop.f32.mrf.mxu3 }
 0x2be   :  { %v1049_v58 = vadd.f32 %v1048_v56, %v861_v52  ;;  %1643 = vmatpush.msrb.mxu0 %v1321_v54  ;;  %v1317_v52 = vld [vmem:[#allocation12 + $0x3f0] sm:$0xff]  ;;  %v1194_v56 = vld [vmem:[#allocation12 + $0x18] sm:$0xff] }
 0x2bf   :  { %v1313_v54 = vld [vmem:[#allocation12 + $0x3d0] sm:$0xff] }
 0x2c0   :  { %1736 = vmatpush.msra.mxu0 %v1414_v55  ;;  %v1069_v61 = vadd.f32 %v1068_v27, %v1049_v58  ;;  %v1318_v55 = vld [vmem:[#allocation12 + $0x3f8] sm:$0xff] }
 0x2c1   :  { %v1314_v58 = vld [vmem:[#allocation12 + $0x3d8] sm:$0xff] }
 0x2c2   :  { %1737 = vmatpush.msra.mxu0 %v1410_v59  ;;  %v1089_v1 = vadd.f32 %v1088_v63, %v1069_v61  ;;  %v1128_v35 = vpop.f32.mrf.mxu1  ;;  %v1188_v50 = vpop.f32.mrf.mxu0  ;;  %v1305_v59 = vld [vmem:[#allocation12 + $0x390] sm:$0xff]  ;;  %v1310_v27 = vld [vmem:[#allocation12 + $0x3b8] sm:$0xff] }
 0x2c3   :  { %v1129_v39 = vadd.f32 %v1128_v35, %v862_v33  ;;  %v1306_v61 = vld [vmem:[#allocation12 + $0x398] sm:$0xff]  ;;  %v1784_v33 = vld [vmem:[#allocation15 + $0xc0] sm:$0xff] }
 0x2c4   :  { %1738 = vmatpush.msra.mxu0 %v1406_v62  ;;  %v3739_v5 = vadd.f32 %v1108_v3, %v1089_v1  ;;  %v1297_v62 = vld [vmem:[#allocation12 + $0x350] sm:$0xff]  ;;  %v1302_v63 = vld [vmem:[#allocation12 + $0x378] sm:$0xff] }
 0x2c5   :  { %v1298_v1 = vld [vmem:[#allocation12 + $0x358] sm:$0xff] }
 0x2c6   :  { %1739 = vmatpush.msra.mxu0 %v1402_v2  ;;  %1484 = vmatmul.f32.vlgmr.msrb.gmra.mxu2 %v3739_v5  ;;  %v1289_v2 = vld [vmem:[#allocation12 + $0x310] sm:$0xff]  ;;  %v1294_v3 = vld [vmem:[#allocation12 + $0x338] sm:$0xff] }
 0x2c7   :  { %1564 = vmatmul.f32.vlgmr.msra.gmra.mxu1 %v3739_v5  ;;  %1588 = vmatpush.msrb.mxu2 %v1253_v6  ;;  %v1290_v6 = vld [vmem:[#allocation12 + $0x318] sm:$0xff] }
 0x2c8   :  { %1644 = vmatmul.f32.vlgmr.msrb.gmra.mxu0 %v3739_v5  ;;  %1668 = vmatpush.msra.mxu1 %v1254_v7  ;;  %v1281_v7 = vld [vmem:[#allocation12 + $0x2d0] sm:$0xff]  ;;  %v1346_v35 = vld [vmem:[#allocation12 + $0x4d8] sm:$0xff] }
 0x2c9   :  { %1740 = vmatpush.msra.mxu0 %v1398_v8  ;;  %1589 = vmatpush.msrb.mxu2 %v1249_v9  ;;  %v1286_v8 = vld [vmem:[#allocation12 + $0x2f8] sm:$0xff]  ;;  %v1277_v9 = vld [vmem:[#allocation12 + $0x2b0] sm:$0xff] }
 0x2ca   :  { %1669 = vmatpush.msra.mxu1 %v1250_v10  ;;  %v1273_v10 = vld [vmem:[#allocation12 + $0x290] sm:$0xff] }
 0x2cb   :  { %1741 = vmatpush.msra.mxu0 %v1394_v11  ;;  %1590 = vmatpush.msrb.mxu2 %v1245_v12  ;;  %v1278_v11 = vld [vmem:[#allocation12 + $0x2b8] sm:$0xff]  ;;  %v1269_v12 = vld [vmem:[#allocation12 + $0x270] sm:$0xff] }
 0x2cc   :  { %1670 = vmatpush.msra.mxu1 %v1246_v13  ;;  %v1274_v13 = vld [vmem:[#allocation12 + $0x298] sm:$0xff] }
 0x2cd   :  { %1742 = vmatpush.msra.mxu0 %v1390_v14  ;;  %1591 = vmatpush.msrb.mxu2 %v1241_v15  ;;  %v1265_v14 = vld [vmem:[#allocation12 + $0x250] sm:$0xff]  ;;  %v1270_v15 = vld [vmem:[#allocation12 + $0x278] sm:$0xff] }
 0x2ce   :  { %1671 = vmatpush.msra.mxu1 %v1242_v16  ;;  %v1261_v16 = vld [vmem:[#allocation12 + $0x230] sm:$0xff] }
 0x2cf   :  { %1743 = vmatpush.msra.mxu0 %v1386_v17  ;;  %1592 = vmatpush.msrb.mxu2 %v1237_v18  ;;  %v1266_v17 = vld [vmem:[#allocation12 + $0x258] sm:$0xff]  ;;  %v1257_v18 = vld [vmem:[#allocation12 + $0x210] sm:$0xff] }
 0x2d0   :  { %1672 = vmatpush.msra.mxu1 %v1238_v19  ;;  %v1262_v19 = vld [vmem:[#allocation12 + $0x238] sm:$0xff] }
 0x2d1   :  { %1593 = vmatpush.msrb.mxu2 %v1233_v26  ;;  %v1382_v26 = vld [vmem:[#allocation12 + $0x5f8] sm:$0xff] }
 0x2d2   :  { %1673 = vmatpush.msra.mxu1 %v1234_v45  ;;  %v1258_v45 = vld [vmem:[#allocation12 + $0x218] sm:$0xff] }
 0x2d3   :  { %1594 = vmatpush.msrb.mxu2 %v1229_v20  ;;  %v1378_v20 = vld [vmem:[#allocation12 + $0x5d8] sm:$0xff] }
 0x2d4   :  { %1674 = vmatpush.msra.mxu1 %v1230_v21  ;;  %v1374_v21 = vld [vmem:[#allocation12 + $0x5b8] sm:$0xff] }
 0x2d5   :  { %1595 = vmatpush.msrb.mxu2 %v1225_v22  ;;  %v1370_v22 = vld [vmem:[#allocation12 + $0x598] sm:$0xff] }
 0x2d6   :  { %1675 = vmatpush.msra.mxu1 %v1226_v24  ;;  %v1366_v24 = vld [vmem:[#allocation12 + $0x578] sm:$0xff] }
 0x2d7   :  { %1596 = vmatpush.msrb.mxu2 %v1221_v28  ;;  %v1790_v28 = vld [vmem:[#allocation15 + $0xf0] sm:$0xff] }
 0x2d8   :  { %1676 = vmatpush.msra.mxu1 %v1222_v29  ;;  %v1788_v29 = vld [vmem:[#allocation15 + $0xe0] sm:$0xff]  ;;  %1881 = vmatpush.msrb.mxu0 %v1790_v28  ;;  %v1849_v28 = vld [vmem:[#allocation15 + $0x2c8] sm:$0xff] }
 0x2d9   :  { %1597 = vmatpush.msrb.mxu2 %v1217_v30  ;;  %v1362_v30 = vld [vmem:[#allocation12 + $0x558] sm:$0xff] }
 0x2da   :  { %1677 = vmatpush.msra.mxu1 %v1218_v31  ;;  %v1786_v31 = vld [vmem:[#allocation15 + $0xd0] sm:$0xff]  ;;  %1882 = vmatpush.msrb.mxu0 %v1788_v29  ;;  %v1795_v29 = vld [vmem:[#allocation15 + $0x118] sm:$0xff] }
 0x2db   :  { %1598 = vmatpush.msrb.mxu2 %v1213_v32  ;;  %v1358_v32 = vld [vmem:[#allocation12 + $0x538] sm:$0xff] }
 0x2dc   :  { %1678 = vmatpush.msra.mxu1 %v1214_v34  ;;  %1883 = vmatpush.msrb.mxu0 %v1786_v31  ;;  %v1354_v34 = vld [vmem:[#allocation12 + $0x518] sm:$0xff] }
 0x2dd   :  { %1599 = vmatpush.msrb.mxu2 %v1209_v36  ;;  %v1342_v36 = vld [vmem:[#allocation12 + $0x4b8] sm:$0xff] }
 0x2de   :  { %v1148_v41 = vpop.f32.mrf.mxu2  ;;  %1679 = vmatpush.msra.mxu1 %v1210_v37  ;;  %v1168_v47 = vpop.f32.mrf.mxu3  ;;  %1884 = vmatpush.msrb.mxu0 %v1784_v33  ;;  %v1338_v37 = vld [vmem:[#allocation12 + $0x498] sm:$0xff]  ;;  %v3755_v33 = vld [vmem:[#allocation13] sm:$0xf] }
 0x2df   :  { %v1149_v43 = vadd.f32 %v1148_v41, %v1129_v39  ;;  %1600 = vmatpush.msrb.mxu2 %v1205_v38  ;;  %v1334_v38 = vld [vmem:[#allocation12 + $0x478] sm:$0xff] }
 0x2e0   :  { %1680 = vmatpush.msra.mxu1 %v1206_v40  ;;  %v1330_v39 = vld [vmem:[#allocation12 + $0x458] sm:$0xff] }
 0x2e1   :  { %v1169_v48 = vadd.f32 %v1168_v47, %v1149_v43  ;;  %1601 = vmatpush.msrb.mxu2 %v1201_v42  ;;  %v1326_v40 = vld [vmem:[#allocation12 + $0x438] sm:$0xff]  ;;  %v1780_v43 = vld [vmem:[#allocation15 + $0xa0] sm:$0xff] }
 0x2e2   :  { %1681 = vmatpush.msra.mxu1 %v1202_v46  ;;  %v1322_v41 = vld [vmem:[#allocation12 + $0x418] sm:$0xff]  ;;  %v1776_v47 = vld [vmem:[#allocation15 + $0x80] sm:$0xff] }
 0x2e3   :  { %v1189_v51 = vadd.f32 %v1188_v50, %v1169_v48  ;;  %1602 = vmatpush.msrb.mxu2 %v1197_v25  ;;  %v1782_v42 = vld [vmem:[#allocation15 + $0xb0] sm:$0xff]  ;;  %v1820_v50 = vld [vmem:[#allocation15 + $0x1e0] sm:$0xff]  ;;  %v1847_v31 = vld [vmem:[#allocation15 + $0x2b8] sm:$0xff] }
 0x2e4   :  { %1682 = vmatpush.msra.mxu1 %v1198_v49  ;;  %1885 = vmatpush.msrb.mxu0 %v1782_v42  ;;  %v1778_v46 = vld [vmem:[#allocation15 + $0x90] sm:$0xff]  ;;  %v1772_v49 = vld [vmem:[#allocation15 + $0x60] sm:$0xff]  ;;  %v1839_v42 = vld [vmem:[#allocation15 + $0x278] sm:$0xff] }
 0x2e5   :  { %2618 = vmatmul.msk.f32.vlgmr.msrb.gmra.mxu3 %vm867_vm5, %v1189_v51  ;;  %2619 = vmatmul.msk.f32.vlgmr.msra.gmra.mxu2 %vm867_vm5, %v1189_v51  ;;  %v1774_v25 = vld [vmem:[#allocation15 + $0x70] sm:$0xff] }
 0x2e6   :  { %1608 = vmatpush.msrb.mxu3 %v1317_v52  ;;  %2620 = vmatmul.msk.f32.vlgmr.msrb.gmra.mxu1 %vm867_vm5, %v1189_v51  ;;  %v1822_v48 = vld [vmem:[#allocation15 + $0x1f0] sm:$0xff] }
 0x2e7   :  { %2621 = vmatmul.msk.f32.vlgmr.msra.gmra.mxu0 %vm867_vm5, %v1189_v51  ;;  %1603 = vmatpush.msrb.mxu2 %v1193_v53  ;;  %v1818_v51 = vld [vmem:[#allocation15 + $0x1d0] sm:$0xff]  ;;  %v1816_v53 = vld [vmem:[#allocation15 + $0x1c0] sm:$0xff] }
 0x2e8   :  { %1609 = vmatpush.msrb.mxu3 %v1313_v54  ;;  %1683 = vmatpush.msra.mxu1 %v1194_v56  ;;  %v1770_v52 = vld [vmem:[#allocation15 + $0x50] sm:$0xff]  ;;  %v1768_v54 = vld [vmem:[#allocation15 + $0x40] sm:$0xff] }
 0x2e9   :  { %1688 = vmatpush.msra.mxu2 %v1318_v55  ;;  %1886 = vmatpush.msrb.mxu0 %v1780_v43  ;;  %v1766_v55 = vld [vmem:[#allocation15 + $0x30] sm:$0xff]  ;;  %v1812_v56 = vld [vmem:[#allocation15 + $0x1a0] sm:$0xff] }
 0x2ea   :  { %1610 = vmatpush.msrb.mxu3 %v1309_v57  ;;  %1901 = vmatpush.msrb.mxu1 %v1822_v48  ;;  %v1764_v57 = vld [vmem:[#allocation15 + $0x20] sm:$0xff] }
 0x2eb   :  { %1689 = vmatpush.msra.mxu2 %v1314_v58  ;;  %1887 = vmatpush.msrb.mxu0 %v1778_v46  ;;  %v1810_v58 = vld [vmem:[#allocation15 + $0x190] sm:$0xff] }
 0x2ec   :  { %1611 = vmatpush.msrb.mxu3 %v1305_v59  ;;  %1902 = vmatpush.msrb.mxu1 %v1820_v50  ;;  %v1762_v59 = vld [vmem:[#allocation15 + $0x10] sm:$0xff] }
 0x2ed   :  { %1690 = vmatpush.msra.mxu2 %v1310_v27  ;;  %1524 = vmatmul.f32.vlgmr.msra.gmra.mxu3 %v3730_v60  ;;  %v1808_v27 = vld [vmem:[#allocation15 + $0x180] sm:$0xff]  ;;  %v1834_v50 = vld [vmem:[#allocation15 + $0x250] sm:$0xff] }
 0x2ee   :  { %1604 = vmatmul.f32.vlgmr.msrb.gmra.mxu2 %v3730_v60  ;;  %1612 = vmatpush.msrb.mxu3 %v1301_v44  ;;  %v1760_v44 = vld [vmem:[#allocation15] sm:$0xff] }
 0x2ef   :  { %1684 = vmatmul.f32.vlgmr.msra.gmra.mxu1 %v3730_v60  ;;  %1691 = vmatpush.msra.mxu2 %v1306_v61  ;;  %v1282_v60 = vld [vmem:[#allocation12 + $0x2d8] sm:$0xff] }
 0x2f0   :  { %1613 = vmatpush.msrb.mxu3 %v1297_v62  ;;  %1888 = vmatpush.msrb.mxu0 %v1776_v47  ;;  %v1823_v61 = vld [vmem:[#allocation15 + $0x1f8] sm:$0xff]  ;;  %v1821_v62 = vld [vmem:[#allocation15 + $0x1e8] sm:$0xff]  ;;  %v1836_v47 = vld [vmem:[#allocation15 + $0x260] sm:$0xff] }
 0x2f1   :  { %1692 = vmatpush.msra.mxu2 %v1302_v63  ;;  %1903 = vmatpush.msrb.mxu1 %v1818_v51  ;;  %v1819_v63 = vld [vmem:[#allocation15 + $0x1d8] sm:$0xff] }
 0x2f2   :  { %1614 = vmatpush.msrb.mxu3 %v1293_v0  ;;  %1889 = vmatpush.msrb.mxu0 %v1774_v25  ;;  %v1806_v0 = vld [vmem:[#allocation15 + $0x170] sm:$0xff]  ;;  %v1837_v25 = vld [vmem:[#allocation15 + $0x268] sm:$0xff]  ;;  %v1835_v51 = vld [vmem:[#allocation15 + $0x258] sm:$0xff] }
 0x2f3   :  { %1693 = vmatpush.msra.mxu2 %v1298_v1  ;;  %1904 = vmatpush.msrb.mxu1 %v1816_v53  ;;  %v1817_v1 = vld [vmem:[#allocation15 + $0x1c8] sm:$0xff] }
 0x2f4   :  { %1615 = vmatpush.msrb.mxu3 %v1289_v2  ;;  %1890 = vmatpush.msrb.mxu0 %v1772_v49  ;;  %v1804_v2 = vld [vmem:[#allocation15 + $0x160] sm:$0xff] }
 0x2f5   :  { %1694 = vmatpush.msra.mxu2 %v1294_v3  ;;  %v1815_v3 = vld [vmem:[#allocation15 + $0x1b8] sm:$0xff] }
 0x2f6   :  { %1616 = vmatpush.msrb.mxu3 %v1285_v4  ;;  %1891 = vmatpush.msrb.mxu0 %v1770_v52  ;;  %v1802_v4 = vld [vmem:[#allocation15 + $0x150] sm:$0xff] }
 0x2f7   :  { %1695 = vmatpush.msra.mxu2 %v1290_v6  ;;  %v1813_v6 = vld [vmem:[#allocation15 + $0x1a8] sm:$0xff] }
 0x2f8   :  { %1617 = vmatpush.msrb.mxu3 %v1281_v7  ;;  %1892 = vmatpush.msrb.mxu0 %v1768_v54  ;;  %v1800_v7 = vld [vmem:[#allocation15 + $0x140] sm:$0xff] }
 0x2f9   :  { %1696 = vmatpush.msra.mxu2 %v1286_v8  ;;  %v1811_v8 = vld [vmem:[#allocation15 + $0x198] sm:$0xff] }
 0x2fa   :  { %1618 = vmatpush.msrb.mxu3 %v1277_v9  ;;  %1893 = vmatpush.msrb.mxu0 %v1766_v55  ;;  %v1798_v9 = vld [vmem:[#allocation15 + $0x130] sm:$0xff] }
 0x2fb   :  { %1697 = vmatpush.msra.mxu2 %v1282_v60  ;;  %v1809_v60 = vld [vmem:[#allocation15 + $0x188] sm:$0xff]  ;;  %v1870_v55 = vld [vmem:[#allocation15 + $0x370] sm:$0xff] }
 0x2fc   :  { %1619 = vmatpush.msrb.mxu3 %v1273_v10  ;;  %1894 = vmatpush.msrb.mxu0 %v1764_v57  ;;  %v1796_v10 = vld [vmem:[#allocation15 + $0x120] sm:$0xff] }
 0x2fd   :  { %1698 = vmatpush.msra.mxu2 %v1278_v11  ;;  %v1807_v11 = vld [vmem:[#allocation15 + $0x178] sm:$0xff] }
 0x2fe   :  { %1620 = vmatpush.msrb.mxu3 %v1269_v12  ;;  %1895 = vmatpush.msrb.mxu0 %v1762_v59  ;;  %v1794_v12 = vld [vmem:[#allocation15 + $0x110] sm:$0xff]  ;;  %v1868_v59 = vld [vmem:[#allocation15 + $0x360] sm:$0xff] }
 0x2ff   :  { %1699 = vmatpush.msra.mxu2 %v1274_v13  ;;  %v1805_v13 = vld [vmem:[#allocation15 + $0x168] sm:$0xff] }
 0x300   :  { %1621 = vmatpush.msrb.mxu3 %v1265_v14  ;;  %1896 = vmatpush.msrb.mxu0 %v1760_v44  ;;  %v1792_v14 = vld [vmem:[#allocation15 + $0x100] sm:$0xff] }
 0x301   :  { %1700 = vmatpush.msra.mxu2 %v1270_v15  ;;  %v1803_v15 = vld [vmem:[#allocation15 + $0x158] sm:$0xff] }
 0x302   :  { %1622 = vmatpush.msrb.mxu3 %v1261_v16  ;;  %1981 = vmatpush.msra.mxu0 %v1823_v61  ;;  %v1854_v16 = vld [vmem:[#allocation15 + $0x2f0] sm:$0xff]  ;;  %v1418_v61 = vperm.slane %v3755_v33, 1 }
 0x303   :  { %1701 = vmatpush.msra.mxu2 %v1266_v17  ;;  %v1855_v17 = vld [vmem:[#allocation15 + $0x2f8] sm:$0xff] }
 0x304   :  { %1623 = vmatpush.msrb.mxu3 %v1257_v18  ;;  %1982 = vmatpush.msra.mxu0 %v1821_v62  ;;  %v1801_v18 = vld [vmem:[#allocation15 + $0x148] sm:$0xff]  ;;  %v1828_v62 = vld [vmem:[#allocation15 + $0x220] sm:$0xff] }
 0x305   :  { %1702 = vmatpush.msra.mxu2 %v1262_v19  ;;  %1624 = vmatmul.f32.vlgmr.msrb.gmra.mxu3 %v3734_v23  ;;  %v1852_v19 = vld [vmem:[#allocation15 + $0x2e0] sm:$0xff] }
 0x306   :  { %1708 = vmatpush.msra.mxu3 %v1382_v26  ;;  %1983 = vmatpush.msra.mxu0 %v1819_v63  ;;  %v1853_v26 = vld [vmem:[#allocation15 + $0x2e8] sm:$0xff]  ;;  %v1866_v63 = vld [vmem:[#allocation15 + $0x350] sm:$0xff] }
 0x307   :  { %1703 = vmatpush.msra.mxu2 %v1258_v45  ;;  %v1799_v45 = vld [vmem:[#allocation15 + $0x138] sm:$0xff] }
 0x308   :  { %1704 = vmatmul.f32.vlgmr.msra.gmra.mxu2 %v3734_v23  ;;  %1709 = vmatpush.msra.mxu3 %v1378_v20  ;;  %v1350_v23 = vld [vmem:[#allocation12 + $0x4f8] sm:$0xff] }
 0x309   :  { %1984 = vmatpush.msra.mxu0 %v1817_v1  ;;  %1921 = vmatpush.msrb.mxu2 %v1854_v16  ;;  %v1850_v20 = vld [vmem:[#allocation15 + $0x2d0] sm:$0xff]  ;;  %v1869_v16 = vld [vmem:[#allocation15 + $0x368] sm:$0xff] }
 0x30a   :  { %1710 = vmatpush.msra.mxu3 %v1374_v21  ;;  %v1851_v21 = vld [vmem:[#allocation15 + $0x2d8] sm:$0xff]  ;;  %v1826_v1 = vld [vmem:[#allocation15 + $0x210] sm:$0xff] }
 0x30b   :  { %1985 = vmatpush.msra.mxu0 %v1815_v3  ;;  %1922 = vmatpush.msrb.mxu2 %v1852_v19  ;;  %v1827_v3 = vld [vmem:[#allocation15 + $0x218] sm:$0xff] }
 0x30c   :  { %1711 = vmatpush.msra.mxu3 %v1370_v22  ;;  %v1797_v22 = vld [vmem:[#allocation15 + $0x128] sm:$0xff]  ;;  %v1867_v19 = vld [vmem:[#allocation15 + $0x358] sm:$0xff] }
 0x30d   :  { %1986 = vmatpush.msra.mxu0 %v1813_v6  ;;  %1923 = vmatpush.msrb.mxu2 %v1850_v20  ;;  %v1865_v20 = vld [vmem:[#allocation15 + $0x348] sm:$0xff] }
 0x30e   :  { %1712 = vmatpush.msra.mxu3 %v1366_v24  ;;  %v1848_v24 = vld [vmem:[#allocation15 + $0x2c0] sm:$0xff] }
 0x30f   :  { %1987 = vmatpush.msra.mxu0 %v1811_v8  ;;  %1924 = vmatpush.msrb.mxu2 %v1848_v24  ;;  %v1825_v8 = vld [vmem:[#allocation15 + $0x208] sm:$0xff] }
 0x310   :  { %1713 = vmatpush.msra.mxu3 %v1362_v30  ;;  %v1846_v30 = vld [vmem:[#allocation15 + $0x2b0] sm:$0xff] }
 0x311   :  { %1988 = vmatpush.msra.mxu0 %v1809_v60  ;;  %1925 = vmatpush.msrb.mxu2 %v1846_v30  ;;  %v1783_v30 = vld [vmem:[#allocation15 + $0xb8] sm:$0xff] }
 0x312   :  { %1714 = vmatpush.msra.mxu3 %v1358_v32  ;;  %v1793_v32 = vld [vmem:[#allocation15 + $0x108] sm:$0xff] }
 0x313   :  { %1989 = vmatpush.msra.mxu0 %v1807_v11 }
 0x314   :  { %1715 = vmatpush.msra.mxu3 %v1354_v34  ;;  %v1844_v34 = vld [vmem:[#allocation15 + $0x2a0] sm:$0xff] }
 0x315   :  { %1990 = vmatpush.msra.mxu0 %v1805_v13  ;;  %1926 = vmatpush.msrb.mxu2 %v1844_v34  ;;  %v1858_v13 = vld [vmem:[#allocation15 + $0x310] sm:$0xff] }
 0x316   :  { %1716 = vmatpush.msra.mxu3 %v1350_v23  ;;  %v1845_v23 = vld [vmem:[#allocation15 + $0x2a8] sm:$0xff] }
 0x317   :  { %1991 = vmatpush.msra.mxu0 %v1803_v15 }
 0x318   :  { %1717 = vmatpush.msra.mxu3 %v1346_v35  ;;  %v1842_v35 = vld [vmem:[#allocation15 + $0x290] sm:$0xff] }
 0x319   :  { %1992 = vmatpush.msra.mxu0 %v1801_v18  ;;  %1927 = vmatpush.msrb.mxu2 %v1842_v35  ;;  %v1856_v18 = vld [vmem:[#allocation15 + $0x300] sm:$0xff]  ;;  %v1777_v35 = vld [vmem:[#allocation15 + $0x88] sm:$0xff] }
 0x31a   :  { %1718 = vmatpush.msra.mxu3 %v1342_v36  ;;  %v1843_v36 = vld [vmem:[#allocation15 + $0x298] sm:$0xff] }
 0x31b   :  { %1993 = vmatpush.msra.mxu0 %v1799_v45  ;;  %v1791_v45 = vld [vmem:[#allocation15 + $0xf8] sm:$0xff] }
 0x31c   :  { %1719 = vmatpush.msra.mxu3 %v1338_v37  ;;  %v1417_v37 = vperm.slane %v3755_v33, 0 }
 0x31d   :  { %1994 = vmatpush.msra.mxu0 %v1797_v22  ;;  %v1789_v22 = vld [vmem:[#allocation15 + $0xe8] sm:$0xff] }
 0x31e   :  { %1720 = vmatpush.msra.mxu3 %v1334_v38  ;;  %v1840_v38 = vld [vmem:[#allocation15 + $0x280] sm:$0xff] }
 0x31f   :  { %1995 = vmatpush.msra.mxu0 %v1795_v29  ;;  %1928 = vmatpush.msrb.mxu2 %v1840_v38  ;;  %v1785_v29 = vld [vmem:[#allocation15 + $0xc8] sm:$0xff]  ;;  %v1775_v38 = vld [vmem:[#allocation15 + $0x78] sm:$0xff] }
 0x320   :  { %1721 = vmatpush.msra.mxu3 %v1330_v39  ;;  %v1841_v39 = vld [vmem:[#allocation15 + $0x288] sm:$0xff] }
 0x321   :  { %1996 = vmatpush.msra.mxu0 %v1793_v32  ;;  %v1419_v32 = vperm.slane %v3755_v33, 2 }
 0x322   :  { %1722 = vmatpush.msra.mxu3 %v1326_v40  ;;  %v1445_v40 = vpop.f32.mrf.mxu0 }
 0x323   :  { %v1446_v46 = vadd.f32 %v1445_v40, %v1417_v37 }
 0x324   :  { %1723 = vmatpush.msra.mxu3 %v1322_v41  ;;  %v1838_v41 = vld [vmem:[#allocation15 + $0x270] sm:$0xff] }
 0x325   :  { %1724 = vmatmul.f32.vlgmr.msra.gmra.mxu3 %v3739_v5  ;;  %v1814_v5 = vld [vmem:[#allocation15 + $0x1b0] sm:$0xff]  ;;  %1929 = vmatpush.msrb.mxu2 %v1838_v41 }
 0x326   :  { %1905 = vmatpush.msrb.mxu1 %v1814_v5  ;;  %v1832_v5 = vld [vmem:[#allocation15 + $0x240] sm:$0xff]  ;;  %1949 = vmatpush.msrb.mxu3 %v1870_v55  ;;  %v1763_v55 = vld [vmem:[#allocation15 + $0x18] sm:$0xff] }
 0x327   :  { %1930 = vmatpush.msrb.mxu2 %v1836_v47 }
 0x328   :  { %1906 = vmatpush.msrb.mxu1 %v1812_v56  ;;  %v1833_v56 = vld [vmem:[#allocation15 + $0x248] sm:$0xff]  ;;  %1950 = vmatpush.msrb.mxu3 %v1868_v59 }
 0x329   :  { %1931 = vmatpush.msrb.mxu2 %v1834_v50  ;;  %v1857_v50 = vld [vmem:[#allocation15 + $0x308] sm:$0xff] }
 0x32a   :  { %1907 = vmatpush.msrb.mxu1 %v1810_v58  ;;  %v1465_v43 = vpop.f32.mrf.mxu1  ;;  %v1830_v58 = vld [vmem:[#allocation15 + $0x230] sm:$0xff]  ;;  %1951 = vmatpush.msrb.mxu3 %v1866_v63  ;;  %v1545_v60 = vpop.f32.mrf.mxu0 }
 0x32b   :  { %v1466_v49 = vadd.f32 %v1465_v43, %v1446_v46  ;;  %1932 = vmatpush.msrb.mxu2 %v1832_v5  ;;  %v1861_v43 = vld [vmem:[#allocation15 + $0x328] sm:$0xff] }
 0x32c   :  { %1908 = vmatpush.msrb.mxu1 %v1808_v27  ;;  %v1831_v27 = vld [vmem:[#allocation15 + $0x238] sm:$0xff]  ;;  %v1765_v5 = vld [vmem:[#allocation15 + $0x28] sm:$0xff] }
 0x32d   :  { %1933 = vmatpush.msrb.mxu2 %v1830_v58 }
 0x32e   :  { %1909 = vmatpush.msrb.mxu1 %v1806_v0  ;;  %v1829_v0 = vld [vmem:[#allocation15 + $0x228] sm:$0xff] }
 0x32f   :  { %1934 = vmatpush.msrb.mxu2 %v1828_v62 }
 0x330   :  { %1910 = vmatpush.msrb.mxu1 %v1804_v2  ;;  %v1864_v2 = vld [vmem:[#allocation15 + $0x340] sm:$0xff] }
 0x331   :  { %1935 = vmatpush.msrb.mxu2 %v1826_v1  ;;  %1952 = vmatpush.msrb.mxu3 %v1864_v2 }
 0x332   :  { %1911 = vmatpush.msrb.mxu1 %v1802_v4  ;;  %v1824_v4 = vld [vmem:[#allocation15 + $0x200] sm:$0xff] }
 0x333   :  { %1936 = vmatpush.msrb.mxu2 %v1824_v4  ;;  %v2061_v4 = vld [vmem:[%s3922_s15 + $0x70] sm:$0xff] }
 0x334   :  { %1912 = vmatpush.msrb.mxu1 %v1800_v7  ;;  %v1862_v7 = vld [vmem:[#allocation15 + $0x330] sm:$0xff] }
 0x335   :  { %1953 = vmatpush.msrb.mxu3 %v1862_v7  ;;  %v2059_v7 = vld [vmem:[%s3922_s15 + $0x60] sm:$0xff] }
 0x336   :  { %1913 = vmatpush.msrb.mxu1 %v1798_v9 }
 0x338   :  { %1914 = vmatpush.msrb.mxu1 %v1796_v10  ;;  %v1860_v10 = vld [vmem:[#allocation15 + $0x320] sm:$0xff] }
 0x339   :  { %1954 = vmatpush.msrb.mxu3 %v1860_v10  ;;  %v2056_v10 = vld [vmem:[%s3922_s15 + $0x48] sm:$0xff] }
 0x33a   :  { %1915 = vmatpush.msrb.mxu1 %v1794_v12 }
 0x33b   :  { %1955 = vmatpush.msrb.mxu3 %v1858_v13  ;;  %v2053_v13 = vld [vmem:[%s3922_s15 + $0x30] sm:$0xff] }
 0x33c   :  { %1916 = vmatpush.msrb.mxu1 %v1792_v14  ;;  %v1871_v14 = vld [vmem:[#allocation15 + $0x378] sm:$0xff] }
 0x33d   :  { %2029 = vmatpush.msra.mxu2 %v1871_v14  ;;  %1956 = vmatpush.msrb.mxu3 %v1856_v18  ;;  %v2052_v14 = vld [vmem:[%s3922_s15 + $0x28] sm:$0xff] }
 0x33e   :  { %2001 = vmatpush.msra.mxu1 %v1855_v17  ;;  %v2072_v18 = vld [vmem:[%s3922_s15 + $0xc8] sm:$0xff] }
 0x33f   :  { %2030 = vmatpush.msra.mxu2 %v1869_v16  ;;  %1961 = vmatpush.msra.mxu3 %v1791_v45  ;;  %v2050_v16 = vld [vmem:[%s3922_s15 + $0x18] sm:$0xff]  ;;  %v2047_v45 = vld [vmem:[%s3922_s15] sm:$0xff] }
 0x340   :  { %2002 = vmatpush.msra.mxu1 %v1853_v26 }
 0x341   :  { %2031 = vmatpush.msra.mxu2 %v1867_v19  ;;  %1962 = vmatpush.msra.mxu3 %v1789_v22  ;;  %v2048_v19 = vld [vmem:[%s3922_s15 + $0x8] sm:$0xff] }
 0x342   :  { %2003 = vmatpush.msra.mxu1 %v1851_v21  ;;  %v2068_v22 = vld [vmem:[%s3922_s15 + $0xa8] sm:$0xff] }
 0x343   :  { %2032 = vmatpush.msra.mxu2 %v1865_v20  ;;  %v2070_v20 = vld [vmem:[%s3922_s15 + $0xb8] sm:$0xff] }
 0x344   :  { %2004 = vmatpush.msra.mxu1 %v1849_v28  ;;  %v1565_v12 = vpop.f32.mrf.mxu1  ;;  %v1787_v28 = vld [vmem:[#allocation15 + $0xd8] sm:$0xff] }
 0x345   :  { %1963 = vmatpush.msra.mxu3 %v1787_v28  ;;  %v1645_v41 = vpop.f32.mrf.mxu0  ;;  %v2066_v28 = vld [vmem:[%s3922_s15 + $0x98] sm:$0xff] }
 0x346   :  { %2005 = vmatpush.msra.mxu1 %v1847_v31  ;;  %v1781_v31 = vld [vmem:[#allocation15 + $0xa8] sm:$0xff] }
 0x347   :  { %1964 = vmatpush.msra.mxu3 %v1785_v29  ;;  %v2065_v29 = vld [vmem:[%s3922_s15 + $0x90] sm:$0xff] }
 0x348   :  { %2006 = vmatpush.msra.mxu1 %v1845_v23  ;;  %v1779_v23 = vld [vmem:[#allocation15 + $0x98] sm:$0xff] }
 0x349   :  { %v1485_v48 = vpop.f32.mrf.mxu2  ;;  %1965 = vmatpush.msra.mxu3 %v1783_v30  ;;  %v2064_v30 = vld [vmem:[%s3922_s15 + $0x88] sm:$0xff] }
 0x34a   :  { %2007 = vmatpush.msra.mxu1 %v1843_v36  ;;  %v1486_v52 = vadd.f32 %v1485_v48, %v1466_v49  ;;  %v1859_v48 = vld [vmem:[#allocation15 + $0x318] sm:$0xff] }
 0x34b   :  { %1966 = vmatpush.msra.mxu3 %v1781_v31  ;;  %v2063_v31 = vld [vmem:[%s3922_s15 + $0x80] sm:$0xff] }
 0x34c   :  { %2008 = vmatpush.msra.mxu1 %v1841_v39  ;;  %v1863_v39 = vld [vmem:[#allocation15 + $0x338] sm:$0xff] }
 0x34d   :  { %1967 = vmatpush.msra.mxu3 %v1779_v23  ;;  %2033 = vmatpush.msra.mxu2 %v1863_v39  ;;  %v2138_v23 = vld [vmem:[%s3923_s0 + $0x60] sm:$0xff] }
 0x34e   :  { %2009 = vmatpush.msra.mxu1 %v1839_v42  ;;  %v1773_v42 = vld [vmem:[#allocation15 + $0x68] sm:$0xff] }
 0x34f   :  { %1968 = vmatpush.msra.mxu3 %v1777_v35  ;;  %2034 = vmatpush.msra.mxu2 %v1861_v43  ;;  %v2137_v35 = vld [vmem:[%s3923_s0 + $0x58] sm:$0xff] }
 0x350   :  { %2010 = vmatpush.msra.mxu1 %v1837_v25  ;;  %v1771_v25 = vld [vmem:[#allocation15 + $0x58] sm:$0xff] }
 0x351   :  { %1969 = vmatpush.msra.mxu3 %v1775_v38  ;;  %2035 = vmatpush.msra.mxu2 %v1859_v48  ;;  %v2136_v38 = vld [vmem:[%s3923_s0 + $0x50] sm:$0xff] }
 0x352   :  { %2011 = vmatpush.msra.mxu1 %v1835_v51  ;;  %v1769_v51 = vld [vmem:[#allocation15 + $0x48] sm:$0xff] }
 0x353   :  { %1970 = vmatpush.msra.mxu3 %v1773_v42  ;;  %2036 = vmatpush.msra.mxu2 %v1857_v50 }
 0x354   :  { %2012 = vmatpush.msra.mxu1 %v1833_v56  ;;  %v1761_v56 = vld [vmem:[#allocation15 + $0x8] sm:$0xff] }
 0x355   :  { %1971 = vmatpush.msra.mxu3 %v1771_v25 }
 0x356   :  { %2013 = vmatpush.msra.mxu1 %v1831_v27 }
 0x357   :  { %1972 = vmatpush.msra.mxu3 %v1769_v51 }
 0x358   :  { %2014 = vmatpush.msra.mxu1 %v1829_v0 }
 0x35a   :  { %2015 = vmatpush.msra.mxu1 %v1827_v3 }
 0x35c   :  { %2016 = vmatpush.msra.mxu1 %v1825_v8  ;;  %v2074_v8 = vld [vmem:[%s3922_s15 + $0xd8] sm:$0xff] }
 0x363   :  { %v1665_v47 = vpop.f32.mrf.mxu1 }
 0x364   :  { %v1745_v0 = vpop.f32.mrf.mxu0 }
 0x368   :  { %v1505_v53 = vpop.f32.mrf.mxu3  ;;  %v1585_v17 = vpop.f32.mrf.mxu2 }
 0x369   :  { %v1506_v54 = vadd.f32 %v1505_v53, %v1486_v52  ;;  %v1767_v53 = vld [vmem:[#allocation15 + $0x38] sm:$0xff] }
 0x36a   :  { %1973 = vmatpush.msra.mxu3 %v1767_v53 }
 0x36b   :  { %vm1748_vm6 = vcmp.ge.f32.partialorder %v1506_v54, 0.0  ;;  %v1752_v57 = vmul.f32 0.2, %v1506_v54 }
 0x36c   :  { %1974 = vmatpush.msra.mxu3 %v1765_v5  ;;  %v1685_v58 = vpop.f32.mrf.mxu1 }
 0x36d   :  { %v3758_v44 = vsel %vm1748_vm6, %v1506_v54, %v1752_v57  ;;  %v1420_v57 = vperm.slane %v3755_v33, 3  ;;  %v2062_v33 = vld [vmem:[%s3922_s15 + $0x78] sm:$0xff] }
 0x36e   :  { %1897 = vmatmul.f32.vlgmr.msrb.gmra.mxu0 %v3758_v44  ;;  %1975 = vmatpush.msra.mxu3 %v1763_v55 }
 0x36f   :  { %v1686_v27 = vadd.f32 %v1685_v58, %v1420_v57 }
 0x370   :  { %v1525_v6 = vpop.f32.mrf.mxu3  ;;  %1976 = vmatpush.msra.mxu3 %v1761_v56 }
 0x371   :  { %v1526_v9 = vadd.f32 %v1525_v6, %v1418_v61  ;;  %v1605_v34 = vpop.f32.mrf.mxu2  ;;  %v2060_v6 = vld [vmem:[%s3922_s15 + $0x68] sm:$0xff] }
 0x372   :  { %v1606_v36 = vadd.f32 %v1605_v34, %v1419_v32  ;;  %v1872_v32 = vld [vmem:[#allocation16] sm:$0x3]  ;;  %v2139_v34 = vld [vmem:[%s3923_s0 + $0x68] sm:$0xff] }
 0x373   :  { %v1546_v11 = vadd.f32 %v1545_v60, %v1526_v9  ;;  %v2073_v9 = vld [vmem:[%s3922_s15 + $0xd0] sm:$0xff]  ;;  %v2058_v60 = vld [vmem:[%s3922_s15 + $0x58] sm:$0xff]  ;;  %2150 = vmatpush.msrb.mxu0 %v2139_v34  ;;  %v2469_v34 = vld [vmem:[%s3926_s1 + $0x28] sm:$0xff] }
 0x375   :  { %v1566_v15 = vadd.f32 %v1565_v12, %v1546_v11  ;;  %v2055_v11 = vld [vmem:[%s3922_s15 + $0x40] sm:$0xff]  ;;  %v2054_v12 = vld [vmem:[%s3922_s15 + $0x38] sm:$0xff]  ;;  %2151 = vmatpush.msrb.mxu0 %v2138_v23 }
 0x376   :  { %v2203_v23 = vld [vmem:[%s3925_s20] sm:$0xff] }
 0x377   :  { %v1586_v26 = vadd.f32 %v1585_v17, %v1566_v15  ;;  %v2051_v15 = vld [vmem:[%s3922_s15 + $0x20] sm:$0xff]  ;;  %v2049_v17 = vld [vmem:[%s3922_s15 + $0x10] sm:$0xff]  ;;  %2152 = vmatpush.msrb.mxu0 %v2137_v35 }
 0x378   :  { %v2468_v35 = vld [vmem:[%s3926_s1 + $0x20] sm:$0xff] }
 0x379   :  { %vm1749_vm7 = vcmp.ge.f32.partialorder %v1586_v26, 0.0  ;;  %v1753_v21 = vmul.f32 0.2, %v1586_v26  ;;  %2153 = vmatpush.msrb.mxu0 %v2136_v38  ;;  %v2465_v38 = vld [vmem:[%s3926_s1 + $0x8] sm:$0xff] }
 0x37b   :  { %v1757_v24 = vsel %vm1749_vm7, %v1586_v26, %v1753_v21  ;;  %v2071_v26 = vld [vmem:[%s3922_s15 + $0xc0] sm:$0xff]  ;;  %v2069_v21 = vld [vmem:[%s3922_s15 + $0xb0] sm:$0xff] }
 0x37c   :  { %1917 = vmatmul.f32.vlgmr.msrb.gmra.mxu1 %v1757_v24  ;;  %1997 = vmatmul.f32.vlgmr.msra.gmra.mxu0 %v1757_v24  ;;  %v2067_v24 = vld [vmem:[%s3922_s15 + $0xa0] sm:$0xff] }
 0x388   :  { %v1625_v37 = vpop.f32.mrf.mxu3 }
 0x389   :  { %v1626_v40 = vadd.f32 %v1625_v37, %v1606_v36  ;;  %v1874_v36 = vperm.slane %v1872_v32, 0 }
 0x38b   :  { %v1646_v46 = vadd.f32 %v1645_v41, %v1626_v40  ;;  %v1705_v59 = vpop.f32.mrf.mxu2 }
 0x38c   :  { %v1706_v61 = vadd.f32 %v1705_v59, %v1686_v27  ;;  %v2135_v59 = vld [vmem:[%s3923_s0 + $0x48] sm:$0xff]  ;;  %v2134_v27 = vld [vmem:[%s3923_s0 + $0x40] sm:$0xff] }
 0x38d   :  { %v1666_v49 = vadd.f32 %v1665_v47, %v1646_v46  ;;  %2154 = vmatpush.msrb.mxu0 %v2135_v59 }
 0x38f   :  { %vm1750_vm8 = vcmp.ge.f32.partialorder %v1666_v49, 0.0  ;;  %v1754_v52 = vmul.f32 0.2, %v1666_v49  ;;  %2155 = vmatpush.msrb.mxu0 %v2134_v27 }
 0x391   :  { %v1758_v54 = vsel %vm1750_vm8, %v1666_v49, %v1754_v52  ;;  %v1875_v49 = vperm.slane %v1872_v32, 1  ;;  %v2204_v32 = vld [vmem:[%s3925_s20 + $0x8] sm:$0xff] }
 0x392   :  { %1937 = vmatmul.f32.vlgmr.msrb.gmra.mxu2 %v1758_v54  ;;  %2017 = vmatmul.f32.vlgmr.msra.gmra.mxu1 %v1758_v54 }
 0x393   :  { %2083 = vmatpush.msrb.mxu2 %v2062_v33  ;;  %v2126_v33 = vld [vmem:[%s3923_s0] sm:$0xff] }
 0x395   :  { %2084 = vmatpush.msrb.mxu2 %v2061_v4  ;;  %v2325_v4 = vld [vmem:[%s3924_s28 + $0x18] sm:$0xff] }
 0x397   :  { %2085 = vmatpush.msrb.mxu2 %v2060_v6  ;;  %v2324_v6 = vld [vmem:[%s3924_s28 + $0x10] sm:$0xff] }
 0x399   :  { %2086 = vmatpush.msrb.mxu2 %v2059_v7  ;;  %v2169_v7 = vld [vmem:[#allocation21 + $0x8] sm:$0x1] }
 0x39a   :  { %2626 = vmatpush.msk.msrb.mxu1 %vm2178_vm13, %v2169_v7 }
 0x39b   :  { %2087 = vmatpush.msrb.mxu2 %v2058_v60  ;;  %v2322_v60 = vld [vmem:[%s3924_s28] sm:$0xff] }
 0x3a8   :  { %v1725_v62 = vpop.f32.mrf.mxu3 }
 0x3a9   :  { %v1726_v63 = vadd.f32 %v1725_v62, %v1706_v61  ;;  %v2133_v61 = vld [vmem:[%s3923_s0 + $0x38] sm:$0xff]  ;;  %v2132_v62 = vld [vmem:[%s3923_s0 + $0x30] sm:$0xff] }
 0x3aa   :  { %2156 = vmatpush.msrb.mxu0 %v2133_v61 }
 0x3ab   :  { %v1746_v1 = vadd.f32 %v1745_v0, %v1726_v63  ;;  %v2131_v63 = vld [vmem:[%s3923_s0 + $0x28] sm:$0xff]  ;;  %v2130_v0 = vld [vmem:[%s3923_s0 + $0x20] sm:$0xff] }
 0x3ac   :  { %2157 = vmatpush.msrb.mxu0 %v2132_v62 }
 0x3ad   :  { %vm1751_vm9 = vcmp.ge.f32.partialorder %v1746_v1, 0.0  ;;  %v1755_v2 = vmul.f32 0.2, %v1746_v1 }
 0x3ae   :  { %2158 = vmatpush.msrb.mxu0 %v2131_v63 }
 0x3af   :  { %v1759_v3 = vsel %vm1751_vm9, %v1746_v1, %v1755_v2  ;;  %v2129_v1 = vld [vmem:[%s3923_s0 + $0x18] sm:$0xff]  ;;  %v2128_v2 = vld [vmem:[%s3923_s0 + $0x10] sm:$0xff] }
 0x3b0   :  { %2622 = vmatmul.msk.f32.vlgmr.msrb.gmra.mxu3 %vm867_vm5, %v1759_v3  ;;  %2623 = vmatmul.msk.f32.vlgmr.msra.gmra.mxu2 %vm867_vm5, %v1759_v3  ;;  %v2127_v3 = vld [vmem:[%s3923_s0 + $0x8] sm:$0xff] }
 0x3b1   :  { %2107 = vmatpush.msrb.mxu3 %v2074_v8  ;;  %2159 = vmatpush.msrb.mxu0 %v2130_v0  ;;  %v2168_v8 = vld [vmem:[#allocation21] sm:$0xff] }
 0x3b2   :  { %2197 = vmatpush.msrb.mxu1 %v2168_v8  ;;  %v2269_v8 = vld [vmem:[%s3927_s7 + $0x68] sm:$0xff] }
 0x3b3   :  { %2108 = vmatpush.msrb.mxu3 %v2073_v9  ;;  %2160 = vmatpush.msrb.mxu0 %v2129_v1  ;;  %v2323_v9 = vld [vmem:[%s3924_s28 + $0x8] sm:$0xff] }
 0x3b5   :  { %2109 = vmatpush.msrb.mxu3 %v2072_v18  ;;  %2161 = vmatpush.msrb.mxu0 %v2128_v2  ;;  %v2413_v18 = vld [vmem:[#allocation31] sm:$0xff]  ;;  %v2709_v2 = vld [vmem:[#allocation37] ss:$0 sm:$0xff] }
 0x3b7   :  { %2110 = vmatpush.msrb.mxu3 %v2071_v26  ;;  %2162 = vmatpush.msrb.mxu0 %v2127_v3  ;;  %v2411_v26 = vld [vmem:[#allocation30 + $0x10] sm:$0xff] }
 0x3b8   :  { %1977 = vmatmul.f32.vlgmr.msra.gmra.mxu3 %v3758_v44  ;;  %v2057_v44 = vld [vmem:[%s3922_s15 + $0x50] sm:$0xff] }
 0x3b9   :  { %2088 = vmatpush.msrb.mxu2 %v2057_v44  ;;  %2111 = vmatpush.msrb.mxu3 %v2070_v20  ;;  %v2723_v44 = vld [vmem:[%s3921_s24] sm:$0xff]  ;;  %v2206_v20 = vld [vmem:[%s3925_s20 + $0x18] sm:$0xff] }
 0x3ba   :  { %2163 = vmatpush.msrb.mxu0 %v2126_v33  ;;  %2226 = vmatpush.msra.mxu1 %v2206_v20 }
 0x3bb   :  { %2089 = vmatpush.msrb.mxu2 %v2056_v10  ;;  %2112 = vmatpush.msrb.mxu3 %v2069_v21  ;;  %v2702_v10 = vld [vmem:[#allocation18] ss:$0 sm:$0xff]  ;;  %v2471_v21 = vld [vmem:[%s3926_s1 + $0x38] sm:$0xff] }
 0x3bd   :  { %2090 = vmatpush.msrb.mxu2 %v2055_v11  ;;  %2113 = vmatpush.msrb.mxu3 %v2068_v22  ;;  %v2409_v22 = vld [vmem:[#allocation30] sm:$0xff] }
 0x3bf   :  { %2091 = vmatpush.msrb.mxu2 %v2054_v12  ;;  %2114 = vmatpush.msrb.mxu3 %v2067_v24  ;;  %v2205_v24 = vld [vmem:[%s3925_s20 + $0x10] sm:$0xff] }
 0x3c0   :  { %2227 = vmatpush.msra.mxu1 %v2205_v24  ;;  %v2263_v24 = vld [vmem:[%s3927_s7 + $0x38] sm:$0xff] }
 0x3c1   :  { %2092 = vmatpush.msrb.mxu2 %v2053_v13  ;;  %2115 = vmatpush.msrb.mxu3 %v2066_v28  ;;  %v2703_v28 = vld [vmem:[#allocation19] ss:$0 sm:$0xff] }
 0x3c2   :  { %2228 = vmatpush.msra.mxu1 %v2204_v32  ;;  %v2259_v32 = vld [vmem:[%s3927_s7 + $0x18] sm:$0xff] }
 0x3c3   :  { %2093 = vmatpush.msrb.mxu2 %v2052_v14  ;;  %2116 = vmatpush.msrb.mxu3 %v2065_v29 }
 0x3c4   :  { %2229 = vmatpush.msra.mxu1 %v2203_v23  ;;  %v2257_v23 = vld [vmem:[%s3927_s7 + $0x8] sm:$0xff] }
 0x3c5   :  { %2094 = vmatpush.msrb.mxu2 %v2051_v15  ;;  %2117 = vmatpush.msrb.mxu3 %v2064_v30 }
 0x3c7   :  { %2095 = vmatpush.msrb.mxu2 %v2050_v16  ;;  %2118 = vmatpush.msrb.mxu3 %v2063_v31  ;;  %v2470_v31 = vld [vmem:[%s3926_s1 + $0x30] sm:$0xff] }
 0x3c9   :  { %2096 = vmatpush.msrb.mxu2 %v2049_v17  ;;  %v2414_v17 = vld [vmem:[#allocation31 + $0x8] sm:$0x1] }
 0x3cb   :  { %2097 = vmatpush.msrb.mxu2 %v2048_v19  ;;  %v2412_v19 = vld [vmem:[#allocation30 + $0x18] sm:$0xff] }
 0x3cc   :  { %2450 = vmatpush.msra.mxu0 %v2412_v19 }
 0x3cd   :  { %2098 = vmatpush.msrb.mxu2 %v2047_v45  ;;  %v2410_v45 = vld [vmem:[#allocation30 + $0x8] sm:$0xff] }
 0x3ce   :  { %2451 = vmatpush.msra.mxu0 %v2411_v26 }
 0x3cf   :  { %2342 = vmatpush.msra.mxu2 %v2325_v4  ;;  %v2271_v4 = vld [vmem:[%s3927_s7 + $0x78] sm:$0xff] }
 0x3d0   :  { %2452 = vmatpush.msra.mxu0 %v2410_v45  ;;  %2272 = vmatpush.msra.mxu3 %v2271_v4 }
 0x3d1   :  { %2343 = vmatpush.msra.mxu2 %v2324_v6  ;;  %v2270_v6 = vld [vmem:[%s3927_s7 + $0x70] sm:$0xff] }
 0x3d2   :  { %2453 = vmatpush.msra.mxu0 %v2409_v22  ;;  %2273 = vmatpush.msra.mxu3 %v2270_v6  ;;  %v2264_v22 = vld [vmem:[%s3927_s7 + $0x40] sm:$0xff] }
 0x3d3   :  { %2344 = vmatpush.msra.mxu2 %v2323_v9 }
 0x3d4   :  { %2274 = vmatpush.msra.mxu3 %v2269_v8 }
 0x3d5   :  { %2345 = vmatpush.msra.mxu2 %v2322_v60  ;;  %v2268_v60 = vld [vmem:[%s3927_s7 + $0x60] sm:$0xff] }
 0x3d6   :  { %2275 = vmatpush.msra.mxu3 %v2268_v60 }
 0x3eb   :  { %v1898_v37 = vpop.f32.mrf.mxu0 }
 0x3ec   :  { %v1899_v40 = vadd.f32 %v1898_v37, %v1874_v36  ;;  %v2467_v36 = vld [vmem:[%s3926_s1 + $0x18] sm:$0xff]  ;;  %v2466_v37 = vld [vmem:[%s3926_s1 + $0x10] sm:$0xff] }
 0x3f9   :  { %v1918_v39 = vpop.f32.mrf.mxu1  ;;  %v1998_v52 = vpop.f32.mrf.mxu0 }
 0x3fa   :  { %v1919_v42 = vadd.f32 %v1918_v39, %v1899_v40  ;;  %v2464_v39 = vld [vmem:[%s3926_s1] sm:$0xff] }
 0x40f   :  { %v2018_v54 = vpop.f32.mrf.mxu1 }
 0x415   :  { %v1938_v41 = vpop.f32.mrf.mxu2 }
 0x416   :  { %v1939_v43 = vadd.f32 %v1938_v41, %v1919_v42  ;;  %v2705_v41 = vld [vmem:[#allocation22] ss:$0 sm:$0xff] }
 0x433   :  { %v1958_v46 = vpop.f32.mrf.mxu3  ;;  %v2038_v55 = vpop.f32.mrf.mxu2 }
 0x434   :  { %v1959_v47 = vadd.f32 %v1958_v46, %v1939_v43 }
 0x436   :  { %vm2041_vm10 = vcmp.ge.f32.partialorder %v1959_v47, 0.0  ;;  %v2043_v25 = vmul.f32 0.2, %v1959_v47 }
 0x438   :  { %v2045_v48 = vsel %vm2041_vm10, %v1959_v47, %v2043_v25  ;;  %v2706_v25 = vld [vmem:[#allocation33] ss:$0 sm:$0xff] }
 0x439   :  { %2099 = vmatmul.f32.vlgmr.msrb.gmra.mxu2 %v2045_v48 }
 0x43a   :  { %2633 = vmatpush.msk.msrb.mxu2 %vm2178_vm13, %v2414_v17 }
 0x43b   :  { %v1978_v50 = vpop.f32.mrf.mxu3 }
 0x43c   :  { %v1979_v51 = vadd.f32 %v1978_v50, %v1875_v49  ;;  %2433 = vmatpush.msrb.mxu2 %v2413_v18 }
 0x43e   :  { %v1999_v53 = vadd.f32 %v1998_v52, %v1979_v51  ;;  %v2503_v52 = vld [vmem:[#allocation36 + $0x18] sm:$0xff] }
 0x440   :  { %v2019_v5 = vadd.f32 %v2018_v54, %v1999_v53  ;;  %v2502_v53 = vld [vmem:[#allocation36 + $0x10] sm:$0xff]  ;;  %v2501_v54 = vld [vmem:[#allocation36 + $0x8] sm:$0xff] }
 0x441   :  { %2631 = vmatmul.msk.f32.vlgmr.msra.gmra.mxu2 %vm509_vm0, %v2723_v44 }
 0x442   :  { %v2039_v56 = vadd.f32 %v2038_v55, %v2019_v5  ;;  %2487 = vmatpush.msra.mxu2 %v2471_v21  ;;  %v2500_v5 = vld [vmem:[#allocation36] sm:$0xff]  ;;  %v2707_v55 = vld [vmem:[#allocation24] ss:$0 sm:$0xff] }
 0x443   :  { %v2265_v21 = vld [vmem:[%s3927_s7 + $0x48] sm:$0xff] }
 0x444   :  { %vm2042_vm11 = vcmp.ge.f32.partialorder %v2039_v56, 0.0  ;;  %v2044_v57 = vmul.f32 0.2, %v2039_v56  ;;  %2488 = vmatpush.msra.mxu2 %v2470_v31  ;;  %v2260_v31 = vld [vmem:[%s3927_s7 + $0x20] sm:$0xff] }
 0x446   :  { %v2046_v58 = vsel %vm2042_vm11, %v2039_v56, %v2044_v57  ;;  %2489 = vmatpush.msra.mxu2 %v2469_v34  ;;  %v2258_v34 = vld [vmem:[%s3927_s7 + $0x10] sm:$0xff] }
 0x447   :  { %2624 = vmatmul.msk.f32.vlgmr.msrb.gmra.mxu3 %vm2079_vm12, %v2046_v58  ;;  %v2708_v58 = vld [vmem:[#allocation34] ss:$0 sm:$0xff] }
 0x448   :  { %2490 = vmatpush.msra.mxu2 %v2468_v35  ;;  %v2256_v35 = vld [vmem:[%s3927_s7] sm:$0xff] }
 0x44a   :  { %2491 = vmatpush.msra.mxu2 %v2467_v36  ;;  %v2294_v36 = vld [vmem:[#allocation25 + $0x8] sm:$0x1] }
 0x44c   :  { %2492 = vmatpush.msra.mxu2 %v2466_v37  ;;  %v2293_v37 = vld [vmem:[#allocation25] sm:$0xff] }
 0x44e   :  { %2493 = vmatpush.msra.mxu2 %v2465_v38  ;;  %v2358_v38 = vld [vmem:[%s3928_s12 + $0x38] sm:$0xff] }
 0x450   :  { %2494 = vmatpush.msra.mxu2 %v2464_v39  ;;  %v2357_v39 = vld [vmem:[%s3928_s12 + $0x30] sm:$0xff] }
 0x4bc   :  { %v2100_v11 = vpop.f32.mrf.mxu2 }
 0x4bd   :  { %v2101_v12 = vadd.f32 %v2702_v10, %v2100_v11  ;;  %v2266_v10 = vld [vmem:[%s3927_s7 + $0x50] sm:$0xff] }
 0x4c4   :  { %v3836_v40 = vpop.f32.mrf.mxu2 }
 0x4ca   :  { %v2120_v13 = vpop.f32.mrf.mxu3 }
 0x4cb   :  { %v2121_v14 = vadd.f32 %v2120_v13, %v2101_v12 }
 0x4cd   :  { %vm2123_vm14 = vcmp.ge.f32.partialorder %v2121_v14, 0.0  ;;  %v2124_v15 = vmul.f32 0.2, %v2121_v14 }
 0x4cf   :  { %v2125_v16 = vsel %vm2123_vm14, %v2121_v14, %v2124_v15 }
 0x4d0   :  { %2625 = vmatmul.msk.f32.vlgmr.msrb.gmra.mxu0 %vm2144_vm15, %v2125_v16 }
 0x4d1   :  { %2523 = vmatpush.msrb.mxu0 %v2503_v52 }
 0x4d3   :  { %2524 = vmatpush.msrb.mxu0 %v2502_v53 }
 0x4d5   :  { %2525 = vmatpush.msrb.mxu0 %v2501_v54  ;;  %v2356_v54 = vld [vmem:[%s3928_s12 + $0x28] sm:$0xff] }
 0x4d7   :  { %2526 = vmatpush.msrb.mxu0 %v2500_v5  ;;  %v2355_v5 = vld [vmem:[%s3928_s12 + $0x20] sm:$0xff] }
 0x4d8   :  { %2635 = vmatmul.msk.f32.vlgmr.msra.gmra.mxu0 %vm509_vm0, %v2723_v44  ;;  %v2267_v44 = vld [vmem:[%s3927_s7 + $0x58] sm:$0xff] }
 0x4d9   :  { %2276 = vmatpush.msra.mxu3 %v2267_v44 }
 0x4db   :  { %2277 = vmatpush.msra.mxu3 %v2266_v10 }
 0x4dd   :  { %2278 = vmatpush.msra.mxu3 %v2265_v21 }
 0x4df   :  { %2279 = vmatpush.msra.mxu3 %v2264_v22 }
 0x4e1   :  { %2280 = vmatpush.msra.mxu3 %v2263_v24 }
 0x54d   :  { %v2165_v29 = vpop.f32.mrf.mxu0 }
 0x54e   :  { %v3821_v30 = vadd.f32 %v2703_v28, %v2165_v29  ;;  %v2262_v28 = vld [vmem:[%s3927_s7 + $0x30] sm:$0xff]  ;;  %v2261_v29 = vld [vmem:[%s3927_s7 + $0x28] sm:$0xff] }
 0x54f   :  { %2281 = vmatpush.msra.mxu3 %v2262_v28 }
 0x550   :  { %2627 = vmatmul.msk.f32.vlgmr.msrb.gmra.mxu1 %vm2174_vm1, %v3821_v30  ;;  %2634 = vmatmul.msk.f32.vlgmr.msrb.gmra.mxu2 %vm2174_vm1, %v3821_v30 }
 0x551   :  { %2282 = vmatpush.msra.mxu3 %v2261_v29  ;;  %2629 = vmatpush.msk.msrb.mxu1 %vm2178_vm13, %v2294_v36 }
 0x553   :  { %2283 = vmatpush.msra.mxu3 %v2260_v31  ;;  %2316 = vmatpush.msrb.mxu1 %v2293_v37 }
 0x555   :  { %v2455_v47 = vpop.f32.mrf.mxu0  ;;  %2284 = vmatpush.msra.mxu3 %v2259_v32 }
 0x557   :  { %2285 = vmatpush.msra.mxu3 %v2258_v34 }
 0x559   :  { %2286 = vmatpush.msra.mxu3 %v2257_v23 }
 0x55b   :  { %2287 = vmatpush.msra.mxu3 %v2256_v35 }
 0x5cd   :  { %v2199_v42 = vpop.f32.mrf.mxu1 }
 0x5ce   :  { %v2200_v43 = vadd.f32 %v2705_v41, %v2199_v42 }
 0x5d0   :  { %v2202_v46 = vmax.f32 %v2200_v43, 0.0 }
 0x5d2   :  { %2628 = vmatmul.msk.f32.vlgmr.msra.gmra.mxu1 %vm509_vm0, %v2202_v46 }
 0x5d3   :  { %v2435_v48 = vpop.f32.mrf.mxu2  ;;  %2374 = vmatpush.msra.mxu1 %v2358_v38 }
 0x5d4   :  { %v2456_v49 = vadd.f32 %v2455_v47, %v2435_v48 }
 0x5d5   :  { %2375 = vmatpush.msra.mxu1 %v2357_v39 }
 0x5d6   :  { %v2462_v50 = vadd.f32 %v2706_v25, %v2456_v49 }
 0x5d7   :  { %2376 = vmatpush.msra.mxu1 %v2356_v54 }
 0x5d8   :  { %v2463_v51 = vmax.f32 %v2462_v50, 0.0 }
 0x5d9   :  { %2377 = vmatpush.msra.mxu1 %v2355_v5 }
 0x5da   :  { %2636 = vmatmul.msk.f32.vlgmr.msra.gmra.mxu2 %vm867_vm5, %v2463_v51 }
 0x64f   :  { %v2231_v56 = vpop.f32.mrf.mxu1 }
 0x650   :  { %v2232_v57 = vadd.f32 %v2707_v55, %v2231_v56  ;;  %v2354_v55 = vld [vmem:[%s3928_s12 + $0x18] sm:$0xff]  ;;  %v2353_v56 = vld [vmem:[%s3928_s12 + $0x10] sm:$0xff] }
 0x651   :  { %2378 = vmatpush.msra.mxu1 %v2354_v55 }
 0x652   :  { %2234 = vmax.xlane.f32.xlu0 %v2232_v57 }
 0x653   :  { %2379 = vmatpush.msra.mxu1 %v2353_v56 }
 0x65d   :  { %v2496_v59 = vpop.f32.mrf.mxu2 }
 0x65e   :  { %v2497_v27 = vadd.f32 %v2708_v58, %v2496_v59  ;;  %v2351_v58 = vld [vmem:[%s3928_s12] sm:$0xff]  ;;  %v2704_v59 = vld [vmem:[#allocation27] ss:$0 sm:$0xff] }
 0x660   :  { %v2499_v61 = vmax.f32 %v2497_v27, 0.0 }
 0x662   :  { %2637 = vmatmul.msk.f32.vlgmr.msrb.gmra.mxu0 %vm509_vm0, %v2499_v61 }
 0x6c5   :  { %v2235_v62 = vpop.xlane.xlu0 %2234 }
 0x6c6   :  { %v2236_v63 = vsub.f32 %v2232_v57, %v2235_v62  ;;  %v2352_v57 = vld [vmem:[%s3928_s12 + $0x8] sm:$0xff]  ;;  %v2348_v62 = vadd.f32 %v2704_v59, %v3836_v40 }
 0x6c7   :  { %2380 = vmatpush.msra.mxu1 %v2352_v57 }
 0x6c8   :  { %v2237_v0 = vmul.f32 1.442695, %v2236_v63  ;;  %v2350_v63 = vmax.f32 %v2348_v62, 0.0 }
 0x6c9   :  { %2381 = vmatpush.msra.mxu1 %v2351_v58 }
 0x6ca   :  { %2711 = vpow2.f32 %v2237_v0 }
 0x6d0   :  { %v3841_v1 = vpop.eup %2711 }
 0x6d1   :  { %2239 = vadd.xlane.f32.xlu0 %v3841_v1 }
 0x6df   :  { %v2528_v3 = vpop.f32.mrf.mxu0 }
 0x6e0   :  { %v2529_v33 = vadd.f32 %v2709_v2, %v2528_v3 }
 0x6e2   :  { %v2531_v7 = vsub.f32 0.0, %v2529_v33 }
 0x6e4   :  { %v2532_v9 = vmul.f32 1.442695, %v2531_v7 }
 0x6e6   :  { %2713 = vpow2.f32 %v2532_v9 }
 0x6ec   :  { %v2714_v11 = vpop.eup %2713 }
 0x6ed   :  { %v2534_v12 = vadd.f32 1.0, %v2714_v11 }
 0x6ef   :  { %2715 = vrcp.f32 %v2534_v12  ;;  %v2546_v16 = vand.u32 2147483648, %v2534_v12  ;;  %v2544_v18 = vand.u32 2147483647, %v2534_v12  ;;  %vm2540_vm2 = vweird.f32 %v2534_v12 }
 0x6f1   :  { %v2547_v26 = vor.u32 1.1754944e-38, %v2546_v16  ;;  %vm2545_vm4 = vcmp.eq.f32.partialorder %v2544_v18, 8.507059e+37 }
 0x6f5   :  { %v2716_v13 = vpop.eup %2715 }
 0x6f6   :  { %v2536_v14 = vmul.f32 %v2716_v13, %v2534_v12  ;;  %vm2541_vm0 = vweird.f32 %v2716_v13 }
 0x6f7   :  { %vm2542_vm3 = vmor %vm2540_vm2, %vm2541_vm0 }
 0x6f8   :  { %v2537_v15 = vsub.f32 1.0, %v2536_v14 }
 0x6fa   :  { %v2538_v17 = vmul.f32 %v2716_v13, %v2537_v15 }
 0x6fc   :  { %v2539_v19 = vadd.f32 %v2716_v13, %v2538_v17 }
 0x6fe   :  { %v2543_v45 = vsel %vm2542_vm3, %v2716_v13, %v2539_v19 }
 0x6ff   :  { %v2548_v20 = vsel %vm2545_vm4, %v2547_v26, %v2543_v45 }
 0x700   :  { %2550 = vst [vmem:[%s3568_s14] sm:$0xff] %v2548_v20 }
 0x744   :  { %v2240_v41 = vpop.xlane.xlu0 %2239 }
 0x745   :  { %2717 = vrcp.f32 %v2240_v41  ;;  %v2252_v47 = vand.u32 2147483648, %v2240_v41  ;;  %v2250_v48 = vand.u32 2147483647, %v2240_v41  ;;  %vm2246_vm7 = vweird.f32 %v2240_v41 }
 0x747   :  { %v2253_v50 = vor.u32 1.1754944e-38, %v2252_v47  ;;  %vm2251_vm9 = vcmp.eq.f32.partialorder %v2250_v48, 8.507059e+37 }
 0x74b   :  { %v2718_v42 = vpop.eup %2717 }
 0x74c   :  { %v2242_v43 = vmul.f32 %v2718_v42, %v2240_v41  ;;  %vm2247_vm6 = vweird.f32 %v2718_v42 }
 0x74d   :  { %vm2248_vm8 = vmor %vm2246_vm7, %vm2247_vm6 }
 0x74e   :  { %v2243_v46 = vsub.f32 1.0, %v2242_v43 }
 0x750   :  { %v2244_v25 = vmul.f32 %v2718_v42, %v2243_v46 }
 0x752   :  { %v2245_v49 = vadd.f32 %v2718_v42, %v2244_v25 }
 0x754   :  { %v2249_v51 = vsel %vm2248_vm8, %v2718_v42, %v2245_v49 }
 0x755   :  { %v2254_v52 = vsel %vm2251_vm9, %v2253_v50, %v2249_v51 }
 0x756   :  { %v2255_v53 = vmul.f32 %v3841_v1, %v2254_v52  ;;  %v2710_v1 = vld [vmem:[#allocation28] ss:$0 sm:$0xff] }
 0x758   :  { %2288 = vmatmul.f32.vlgmr.msra.gmra.mxu3 %v2255_v53 }
 0x7db   :  { %v2289_v27 = vpop.f32.mrf.mxu3 }
 0x7dc   :  { %v2292_v61 = vmul.f32 %v2289_v27, %v3821_v30 }
 0x7de   :  { %2630 = vmatmul.msk.f32.vlgmr.msrb.gmra.mxu1 %vm2174_vm1, %v2292_v61 }
 0x7e6   :  { %2632 = vmatmul.msk.f32.vlgmr.msra.gmra.mxu1 %vm867_vm5, %v2350_v63 }
 0x85b   :  { %v2318_v0 = vpop.f32.mrf.mxu1 }
 0x85c   :  { %2321 = vst [vmem:[%s3558_s30] sm:$0xff] %v2318_v0 }
 0x863   :  { %v2383_v2 = vpop.f32.mrf.mxu1 }
 0x864   :  { %v2384_v3 = vadd.f32 %v2710_v1, %v2383_v2 }
 0x866   :  { %2386 = vmax.xlane.f32.xlu1 %v2384_v3 }
 0x8d9   :  { %v2387_v33 = vpop.xlane.xlu1 %2386 }
 0x8da   :  { %v2388_v4 = vsub.f32 %v2384_v3, %v2387_v33 }
 0x8dc   :  { %v2389_v6 = vmul.f32 1.442695, %v2388_v4 }
 0x8de   :  { %2719 = vpow2.f32 %v2389_v6 }
 0x8e4   :  { %v2720_v7 = vpop.eup %2719 }
 0x8e5   :  { %2391 = vadd.xlane.f32.xlu1 %v2720_v7 }
 0x958   :  { %v2392_v30 = vpop.xlane.xlu1 %2391 }
 0x959   :  { %2721 = vrcp.f32 %v2392_v30  ;;  %v2404_v60 = vand.u32 2147483648, %v2392_v30  ;;  %v2402_v10 = vand.u32 2147483647, %v2392_v30  ;;  %vm2398_vm10 = vweird.f32 %v2392_v30 }
 0x95b   :  { %v2405_v12 = vor.u32 1.1754944e-38, %v2404_v60  ;;  %vm2403_vm12 = vcmp.eq.f32.partialorder %v2402_v10, 8.507059e+37 }
 0x95f   :  { %v2722_v40 = vpop.eup %2721 }
 0x960   :  { %v2394_v8 = vmul.f32 %v2722_v40, %v2392_v30  ;;  %vm2399_vm5 = vweird.f32 %v2722_v40 }
 0x961   :  { %vm2400_vm11 = vmor %vm2398_vm10, %vm2399_vm5 }
 0x962   :  { %v2395_v9 = vsub.f32 1.0, %v2394_v8 }
 0x964   :  { %v2396_v44 = vmul.f32 %v2722_v40, %v2395_v9 }
 0x966   :  { %v2397_v11 = vadd.f32 %v2722_v40, %v2396_v44 }
 0x968   :  { %v2401_v13 = vsel %vm2400_vm11, %v2722_v40, %v2397_v11 }
 0x969   :  { %v2406_v14 = vsel %vm2403_vm12, %v2405_v12, %v2401_v13 }
 0x96a   :  { %v2407_v15 = vmul.f32 %v2720_v7, %v2406_v14 }
 0x96c   :  { %2408 = vst [vmem:[%s3563_s3] sm:$0xff] %v2407_v15 }
 0x96d   :  { %2563 = vsyncpa [#allocation3], 1 }
 0x96e   :  { %2564 = vsyncpa [#allocation5], 1 }
 0x96f   :  { %2565 = vsyncpa [#allocation8], 1 }
 0x970   :  { %2566 = vsyncpa [#allocation11], 1 }
 0x971   :  { %2567 = vsyncpa [#allocation14], 1 }
 0x972   :  { %2568 = vsyncpa [#allocation17], 1 }
 0x973   :  { %2569 = vsyncpa [#allocation20], 1 }
 0x974   :  { %2570 = vsyncpa [#allocation23], 1 }
 0x975   :  { %2571 = vsyncpa [#allocation26], 1 }
 0x976   :  { %2572 = vsyncpa [#allocation29], 1 }
 0x977   :  { %2573 = vsyncpa [#allocation32], 1 }
 0x978   :  { %2574 = vsyncpa [#allocation35], 1 }
 0x979   :  { %2575 = vsyncpa [#allocation38], 1 }

</bundles_post_ra>
